<compile_context>
chip_gen: v7x
topology: tpu7x:2x2x1
jax: 0.10.0
libtpu: 0.0.40
codegen_flags: <defaults>
</compile_context>

<pallas_src>
import functools
import math

import jax
import jax.numpy as jnp
from jax.experimental import pallas as pl
from jax.experimental.pallas import tpu as pltpu


# ----------------------------------------------------------------------------
# Kernel: one batch element per grid step; full encoder stack fused.
# ----------------------------------------------------------------------------
def transformer_kernel(raw_ref, wemb_ref, bemb_ref,
                       wqkv_ref, bqkv_ref, wo_ref, bo_ref,
                       g1_ref, be1_ref, w1_ref, bf1_ref, w2_ref, bf2_ref,
                       g2_ref, be2_ref, wp_ref, bp_ref,
                       out_ref, *, n_heads):
    S = raw_ref.shape[1]          # 1 + q_len
    E = wemb_ref.shape[1]         # n_features
    L = wqkv_ref.shape[0]         # n_layers
    H = n_heads
    Dh = E // H
    scale = 1.0 / math.sqrt(Dh)
    eps = 1e-5
    f32 = jnp.float32

    # Fused context+value embedding: packed raw row @ packed embedding matrix.
    raw = raw_ref[0]                                                   # (S, Din)
    h = jnp.dot(raw, wemb_ref[...], preferred_element_type=f32) + bemb_ref[...]  # (S, E)

    # Attention mask: position i may attend to {0 (context), i (itself)}.
    row = jax.lax.broadcasted_iota(jnp.int32, (S, S), 0)
    col = jax.lax.broadcasted_iota(jnp.int32, (S, S), 1)
    allowed = jnp.logical_or(col == 0, col == row)
    mask_bias = jnp.where(allowed, 0.0, -1e30).astype(f32)             # (S, S)

    for l in range(L):                                                 # static unroll
        # ---- self-attention (fused QKV projection) -----------------------
        qkv = jnp.dot(h, wqkv_ref[l], preferred_element_type=f32) + bqkv_ref[l]  # (S, 3E)
        wo_l = wo_ref[l]                                               # (E, E) = W_o^T
        attn_out = jnp.zeros((S, E), f32) + bo_ref[l]                  # start with out-proj bias
        for hh in range(H):
            lo = hh * Dh
            q_h = qkv[:, lo:lo + Dh]                                   # (S, Dh)
            k_h = qkv[:, E + lo:E + lo + Dh]
            v_h = qkv[:, 2 * E + lo:2 * E + lo + Dh]
            s = jnp.einsum('qd,kd->qk', q_h, k_h,
                           preferred_element_type=f32) * scale + mask_bias
            m = jnp.max(s, axis=-1, keepdims=True)
            e = jnp.exp(s - m)
            # TODO(synk): could use pl.reciprocal(..., approx=True) on the EUP;
            # exact divide kept here to preserve tight numerical agreement.
            p = e / jnp.sum(e, axis=-1, keepdims=True)
            o_h = jnp.dot(p, v_h, preferred_element_type=f32)          # (S, Dh)
            # per-head out-projection accumulation (avoids head concat)
            attn_out = attn_out + jnp.dot(o_h, wo_l[lo:lo + Dh, :],
                                          preferred_element_type=f32)

        h = h + attn_out                                               # residual (dropout=0)
        mu = jnp.mean(h, axis=-1, keepdims=True)
        xc = h - mu
        var = jnp.mean(xc * xc, axis=-1, keepdims=True)
        h = xc * jax.lax.rsqrt(var + eps) * g1_ref[l] + be1_ref[l]     # norm1

        # ---- feed-forward -------------------------------------------------
        ff = jnp.dot(h, w1_ref[l], preferred_element_type=f32) + bf1_ref[l]
        ff = jnp.maximum(ff, 0.0)                                      # ReLU
        ff = jnp.dot(ff, w2_ref[l], preferred_element_type=f32) + bf2_ref[l]
        h = h + ff                                                     # residual
        mu = jnp.mean(h, axis=-1, keepdims=True)
        xc = h - mu
        var = jnp.mean(xc * xc, axis=-1, keepdims=True)
        h = xc * jax.lax.rsqrt(var + eps) * g2_ref[l] + be2_ref[l]     # norm2

    # prediction head for all S rows; wrapper drops the context row.
    y = jnp.dot(h, wp_ref[...], preferred_element_type=f32) + bp_ref[...]   # (S, y_dim)
    out_ref[0] = y


# ----------------------------------------------------------------------------
# Wrapper: pack inputs / weights into kernel layout and launch the grid.
# ----------------------------------------------------------------------------
def transformer_prediction(z, x_q, params, n_heads):
    """z: (B, z_dim); x_q: (B, q_len, x_dim). Returns (B, q_len, y_dim)."""
    B, q_len, x_dim = x_q.shape
    z_dim = z.shape[-1]
    E = params["w_ve"].shape[0]
    S = q_len + 1
    L = len(params["layers"])
    y_dim = params["w_p"].shape[0]
    Din = z_dim + x_dim
    f32 = jnp.float32

    z = z.astype(f32)
    x_q = x_q.astype(f32)

    # Packed raw sequence: row 0 carries z (context slot), rows 1.. carry x_q.
    raw = jnp.zeros((B, S, Din), f32)
    raw = raw.at[:, 0, :z_dim].set(z)
    raw = raw.at[:, 1:, z_dim:].set(x_q)

    # Combined embedding matrix [W_ce^T ; W_ve^T] and per-row bias.
    if params["w_ce"] is not None:
        wce_t = params["w_ce"].T.astype(f32)                 # (z_dim, E)
        bce = params["b_ce"].astype(f32)
    else:                                                    # context_embedding is None
        wce_t = jnp.eye(E, dtype=f32)
        bce = jnp.zeros((E,), f32)
    w_emb = jnp.concatenate([wce_t, params["w_ve"].T.astype(f32)], axis=0)      # (Din, E)
    b_emb = jnp.concatenate(
        [bce[None, :], jnp.broadcast_to(params["b_ve"].astype(f32)[None, :], (q_len, E))],
        axis=0)                                                                 # (S, E)

    stack = lambda name: jnp.stack([lyr[name].astype(f32) for lyr in params["layers"]])
    w_qkv_t = jnp.swapaxes(stack("w_qkv"), 1, 2)             # (L, E, 3E)
    b_qkv = stack("b_qkv")[:, None, :]                       # (L, 1, 3E)
    w_o_t = jnp.swapaxes(stack("w_o"), 1, 2)                 # (L, E, E)
    b_o = stack("b_o")[:, None, :]                           # (L, 1, E)
    g1 = stack("g1")[:, None, :]
    be1 = stack("be1")[:, None, :]
    w1_t = jnp.swapaxes(stack("w1"), 1, 2)                   # (L, E, Hid)
    bf1 = stack("bf1")[:, None, :]                           # (L, 1, Hid)
    w2_t = jnp.swapaxes(stack("w2"), 1, 2)                   # (L, Hid, E)
    bf2 = stack("bf2")[:, None, :]
    g2 = stack("g2")[:, None, :]
    be2 = stack("be2")[:, None, :]
    w_p_t = params["w_p"].T.astype(f32)                      # (E, y_dim)
    b_p = params["b_p"].astype(f32)[None, :]                 # (1, y_dim)

    def _resident_spec(arr):
        nd = arr.ndim
        return pl.BlockSpec(arr.shape, lambda b, _nd=nd: (0,) * _nd)

    weights = (w_emb, b_emb, w_qkv_t, b_qkv, w_o_t, b_o, g1, be1,
               w1_t, bf1, w2_t, bf2, g2, be2, w_p_t, b_p)

    in_specs = [pl.BlockSpec((1, S, Din), lambda b: (b, 0, 0))]
    in_specs += [_resident_spec(w) for w in weights]

    kernel = functools.partial(transformer_kernel, n_heads=n_heads)

    y_all = pl.pallas_call(
        kernel,
        out_shape=jax.ShapeDtypeStruct((B, S, y_dim), f32),
        grid=(B,),
        in_specs=in_specs,
        out_specs=pl.BlockSpec((1, S, y_dim), lambda b: (b, 0, 0)),
        compiler_params=pltpu.CompilerParams(
            dimension_semantics=("parallel",)),
    )(raw, *weights)

    return y_all[:, 1:, :]                                   # drop the context row


# ----------------------------------------------------------------------------
# Pure-JAX reference mirroring the PyTorch forward (post-norm encoder layer).
# ----------------------------------------------------------------------------
def _layer_norm(x, g, b, eps=1e-5):
    mu = jnp.mean(x, axis=-1, keepdims=True)
    var = jnp.mean((x - mu) ** 2, axis=-1, keepdims=True)
    return (x - mu) * jax.lax.rsqrt(var + eps) * g + b


def _reference(z, x_q, params, n_heads):
    hp = jax.lax.Precision.HIGHEST
    B, q_len, _ = x_q.shape
    E = params["w_ve"].shape[0]
    H = n_heads
    Dh = E // H
    S = q_len + 1

    x = x_q.astype(jnp.float32)
    zz = z.astype(jnp.float32)[:, None, :]
    if params["w_ce"] is not None:
        zz = jnp.einsum('bsd,ed->bse', zz, params["w_ce"], precision=hp) + params["b_ce"]
    xe = jnp.einsum('bsd,ed->bse', x, params["w_ve"], precision=hp) + params["b_ve"]
    h = jnp.concatenate([zz, xe], axis=1)                    # (B, S, E)

    allowed = jnp.eye(S, dtype=bool)
    allowed = allowed.at[:, 0].set(True)
    bias = jnp.where(allowed, 0.0, -jnp.inf)

    for p in params["layers"]:
        qkv = jnp.einsum('bse,fe->bsf', h, p["w_qkv"], precision=hp) + p["b_qkv"]
        q, k, v = jnp.split(qkv, 3, axis=-1)
        sh = lambda t: t.reshape(B, S, H, Dh).transpose(0, 2, 1, 3)
        qh, kh, vh = sh(q), sh(k), sh(v)
        s = jnp.einsum('bhqd,bhkd->bhqk', qh, kh, precision=hp) / math.sqrt(Dh) + bias
        a = jax.nn.softmax(s, axis=-1)
        o = jnp.einsum('bhqk,bhkd->bhqd', a, vh, precision=hp)
        o = o.transpose(0, 2, 1, 3).reshape(B, S, E)
        o = jnp.einsum('bse,fe->bsf', o, p["w_o"], precision=hp) + p["b_o"]
        h = _layer_norm(h + o, p["g1"], p["be1"])
        ff = jax.nn.relu(jnp.einsum('bse,fe->bsf', h, p["w1"], precision=hp) + p["bf1"])
        ff = jnp.einsum('bsf,ef->bse', ff, p["w2"], precision=hp) + p["bf2"]
        h = _layer_norm(h + ff, p["g2"], p["be2"])

    y = jnp.einsum('bse,ye->bsy', h, params["w_p"], precision=hp) + params["b_p"]
    return y[:, 1:, :]


# ----------------------------------------------------------------------------
# Deterministic synthetic parameters (PyTorch Linear / LayerNorm layouts).
# ----------------------------------------------------------------------------
def init_params(key, x_dim, y_dim, E, n_heads, Hid, L, z_dim):
    ks = jax.random.split(key, 6 + 12 * L)
    it = iter(ks)
    nrm = lambda k, shape, s: s * jax.random.normal(k, shape, jnp.float32)

    params = {
        "w_ve": nrm(next(it), (E, x_dim), 1.0 / math.sqrt(x_dim)),
        "b_ve": nrm(next(it), (E,), 0.1),
    }
    if z_dim != E:
        params["w_ce"] = nrm(next(it), (E, z_dim), 1.0 / math.sqrt(z_dim))
        params["b_ce"] = nrm(next(it), (E,), 0.1)
    else:
        next(it); next(it)
        params["w_ce"] = None
        params["b_ce"] = None

    layers = []
    for _ in range(L):
        layers.append({
            "w_qkv": nrm(next(it), (3 * E, E), 1.0 / math.sqrt(E)),
            "b_qkv": nrm(next(it), (3 * E,), 0.05),
            "w_o":   nrm(next(it), (E, E), 1.0 / math.sqrt(E)),
            "b_o":   nrm(next(it), (E,), 0.05),
            "g1":    1.0 + 0.05 * jax.random.normal(next(it), (E,), jnp.float32),
            "be1":   nrm(next(it), (E,), 0.05),
            "w1":    nrm(next(it), (Hid, E), 1.0 / math.sqrt(E)),
            "bf1":   nrm(next(it), (Hid,), 0.05),
            "w2":    nrm(next(it), (E, Hid), 1.0 / math.sqrt(Hid)),
            "bf2":   nrm(next(it), (E,), 0.05),
            "g2":    1.0 + 0.05 * jax.random.normal(next(it), (E,), jnp.float32),
            "be2":   nrm(next(it), (E,), 0.05),
        })
    params["layers"] = layers
    params["w_p"] = nrm(next(it), (y_dim, E), 1.0 / math.sqrt(E))
    params["b_p"] = nrm(next(it), (y_dim,), 0.1)
    return params


if __name__ == "__main__":
    jax.config.update("jax_default_matmul_precision", "highest")

    key = jax.random.PRNGKey(0)
    B, q_len = 2, 8
    x_dim, y_dim = 4, 4
    n_features, n_heads, n_hidden, n_layers = 32, 4, 64, 2
    z_dim = 24  # != n_features -> exercises the context_embedding Linear

    k_p, k_z, k_x = jax.random.split(key, 3)
    params = init_params(k_p, x_dim, y_dim, n_features, n_heads, n_hidden, n_layers, z_dim)
    z = jax.random.normal(k_z, (B, z_dim), jnp.float32)
    x_q = jax.random.normal(k_x, (B, q_len, x_dim), jnp.float32)

    out = transformer_prediction(z, x_q, params, n_heads)
    out = jax.block_until_ready(out)

    ref = _reference(z, x_q, params, n_heads)
    assert out.shape == (B, q_len, y_dim), out.shape
    assert jnp.allclose(out, ref, atol=1e-3, rtol=1e-3), (out, ref)

    print("KERNEL_OK")
</pallas_src>

<mosaic_0001>
module attributes {stable_mosaic.version = 11 : i64} {
  func.func @transformer_kernel(%arg0: i32, %arg1: memref<1x9x28xf32, #tpu.memory_space<vmem>>, %arg2: memref<28x32xf32, #tpu.memory_space<vmem>>, %arg3: memref<9x32xf32, #tpu.memory_space<vmem>>, %arg4: memref<2x32x96xf32, #tpu.memory_space<vmem>>, %arg5: memref<2x1x96xf32, #tpu.memory_space<vmem>>, %arg6: memref<2x32x32xf32, #tpu.memory_space<vmem>>, %arg7: memref<2x1x32xf32, #tpu.memory_space<vmem>>, %arg8: memref<2x1x32xf32, #tpu.memory_space<vmem>>, %arg9: memref<2x1x32xf32, #tpu.memory_space<vmem>>, %arg10: memref<2x32x64xf32, #tpu.memory_space<vmem>>, %arg11: memref<2x1x64xf32, #tpu.memory_space<vmem>>, %arg12: memref<2x64x32xf32, #tpu.memory_space<vmem>>, %arg13: memref<2x1x32xf32, #tpu.memory_space<vmem>>, %arg14: memref<2x1x32xf32, #tpu.memory_space<vmem>>, %arg15: memref<2x1x32xf32, #tpu.memory_space<vmem>>, %arg16: memref<32x4xf32, #tpu.memory_space<vmem>>, %arg17: memref<1x4xf32, #tpu.memory_space<vmem>>, %arg18: memref<1x9x4xf32, #tpu.memory_space<vmem>>) attributes {dimension_semantics = [#tpu.dimension_semantics<parallel>], iteration_bounds = array<i64: 2>, scalar_prefetch = 0 : i64, scratch_operands = 0 : i64, tpu.core_type = #tpu.core_type<tc>, window_params = [{transform_indices = @transform_0, window_bounds = array<i64: 1, 9, 28>}, {pipeline_mode = #tpu.pipeline_mode<synchronous>, transform_indices = @transform_1, window_bounds = array<i64: 28, 32>}, {pipeline_mode = #tpu.pipeline_mode<synchronous>, transform_indices = @transform_2, window_bounds = array<i64: 9, 32>}, {pipeline_mode = #tpu.pipeline_mode<synchronous>, transform_indices = @transform_3, window_bounds = array<i64: 2, 32, 96>}, {pipeline_mode = #tpu.pipeline_mode<synchronous>, transform_indices = @transform_4, window_bounds = array<i64: 2, 1, 96>}, {pipeline_mode = #tpu.pipeline_mode<synchronous>, transform_indices = @transform_5, window_bounds = array<i64: 2, 32, 32>}, {pipeline_mode = #tpu.pipeline_mode<synchronous>, transform_indices = @transform_6, window_bounds = array<i64: 2, 1, 32>}, {pipeline_mode = #tpu.pipeline_mode<synchronous>, transform_indices = @transform_7, window_bounds = array<i64: 2, 1, 32>}, {pipeline_mode = #tpu.pipeline_mode<synchronous>, transform_indices = @transform_8, window_bounds = array<i64: 2, 1, 32>}, {pipeline_mode = #tpu.pipeline_mode<synchronous>, transform_indices = @transform_9, window_bounds = array<i64: 2, 32, 64>}, {pipeline_mode = #tpu.pipeline_mode<synchronous>, transform_indices = @transform_10, window_bounds = array<i64: 2, 1, 64>}, {pipeline_mode = #tpu.pipeline_mode<synchronous>, transform_indices = @transform_11, window_bounds = array<i64: 2, 64, 32>}, {pipeline_mode = #tpu.pipeline_mode<synchronous>, transform_indices = @transform_12, window_bounds = array<i64: 2, 1, 32>}, {pipeline_mode = #tpu.pipeline_mode<synchronous>, transform_indices = @transform_13, window_bounds = array<i64: 2, 1, 32>}, {pipeline_mode = #tpu.pipeline_mode<synchronous>, transform_indices = @transform_14, window_bounds = array<i64: 2, 1, 32>}, {pipeline_mode = #tpu.pipeline_mode<synchronous>, transform_indices = @transform_15, window_bounds = array<i64: 32, 4>}, {pipeline_mode = #tpu.pipeline_mode<synchronous>, transform_indices = @transform_16, window_bounds = array<i64: 1, 4>}, {transform_indices = @transform_17, window_bounds = array<i64: 1, 9, 4>}]} {
    %c0 = arith.constant 0 : index
    %c0_0 = arith.constant 0 : index
    %c0_1 = arith.constant 0 : index
    %0 = vector.load %arg1[%c0, %c0_0, %c0_1] : memref<1x9x28xf32, #tpu.memory_space<vmem>>, vector<1x9x28xf32>
    %1 = vector.shape_cast %0 : vector<1x9x28xf32> to vector<9x28xf32>
    %c0_2 = arith.constant 0 : index
    %c0_3 = arith.constant 0 : index
    %2 = vector.load %arg2[%c0_2, %c0_3] : memref<28x32xf32, #tpu.memory_space<vmem>>, vector<28x32xf32>
    %cst = arith.constant dense<0.000000e+00> : vector<9x32xf32>
    %3 = tpu.matmul %1, %2, %cst {dimension_numbers = #tpu.dot_dimension_numbers<[1], [0], [0], [1], [0, 0, 1, 1], [], []>, precision = #tpu.contract_precision<fp32>} : vector<9x28xf32>, vector<28x32xf32>, vector<9x32xf32> -> vector<9x32xf32>
    %c0_4 = arith.constant 0 : index
    %c0_5 = arith.constant 0 : index
    %4 = vector.load %arg3[%c0_4, %c0_5] : memref<9x32xf32, #tpu.memory_space<vmem>>, vector<9x32xf32>
    %5 = arith.addf %3, %4 : vector<9x32xf32>
    %6 = tpu.iota {dimensions = array<i32: 0>} : vector<9x9xi32>
    %7 = tpu.iota {dimensions = array<i32: 1>} : vector<9x9xi32>
    %c0_i32 = arith.constant 0 : i32
    %8 = vector.broadcast %c0_i32 : i32 to vector<9x9xi32>
    %9 = arith.cmpi eq, %7, %8 : vector<9x9xi32>
    %10 = arith.cmpi eq, %7, %6 : vector<9x9xi32>
    %11 = arith.ori %9, %10 : vector<9x9xi1>
    %cst_6 = arith.constant 0.000000e+00 : f32
    %cst_7 = arith.constant -1.000000e+30 : f32
    %12 = vector.broadcast %cst_6 : f32 to vector<9x9xf32>
    %13 = vector.broadcast %cst_7 : f32 to vector<9x9xf32>
    %14 = arith.select %11, %12, %13 : vector<9x9xi1>, vector<9x9xf32>
    %c0_8 = arith.constant 0 : index
    %c0_9 = arith.constant 0 : index
    %c0_10 = arith.constant 0 : index
    %15 = vector.load %arg4[%c0_8, %c0_9, %c0_10] : memref<2x32x96xf32, #tpu.memory_space<vmem>>, vector<1x32x96xf32>
    %16 = vector.shape_cast %15 : vector<1x32x96xf32> to vector<32x96xf32>
    %cst_11 = arith.constant dense<0.000000e+00> : vector<9x96xf32>
    %17 = tpu.matmul %5, %16, %cst_11 {dimension_numbers = #tpu.dot_dimension_numbers<[1], [0], [0], [1], [0, 0, 1, 1], [], []>, precision = #tpu.contract_precision<fp32>} : vector<9x32xf32>, vector<32x96xf32>, vector<9x96xf32> -> vector<9x96xf32>
    %c0_12 = arith.constant 0 : index
    %c0_13 = arith.constant 0 : index
    %c0_14 = arith.constant 0 : index
    %18 = vector.load %arg5[%c0_12, %c0_13, %c0_14] : memref<2x1x96xf32, #tpu.memory_space<vmem>>, vector<1x1x96xf32>
    %19 = vector.shape_cast %18 : vector<1x1x96xf32> to vector<1x96xf32>
    %20 = vector.broadcast %19 : vector<1x96xf32> to vector<9x96xf32>
    %21 = arith.addf %17, %20 : vector<9x96xf32>
    %c0_15 = arith.constant 0 : index
    %c0_16 = arith.constant 0 : index
    %c0_17 = arith.constant 0 : index
    %22 = vector.load %arg6[%c0_15, %c0_16, %c0_17] : memref<2x32x32xf32, #tpu.memory_space<vmem>>, vector<1x32x32xf32>
    %23 = vector.shape_cast %22 : vector<1x32x32xf32> to vector<32x32xf32>
    %cst_18 = arith.constant 0.000000e+00 : f32
    %24 = vector.broadcast %cst_18 : f32 to vector<9x32xf32>
    %c0_19 = arith.constant 0 : index
    %c0_20 = arith.constant 0 : index
    %c0_21 = arith.constant 0 : index
    %25 = vector.load %arg7[%c0_19, %c0_20, %c0_21] : memref<2x1x32xf32, #tpu.memory_space<vmem>>, vector<1x1x32xf32>
    %26 = vector.shape_cast %25 : vector<1x1x32xf32> to vector<1x32xf32>
    %27 = vector.broadcast %26 : vector<1x32xf32> to vector<9x32xf32>
    %28 = arith.addf %24, %27 : vector<9x32xf32>
    %29 = vector.extract_strided_slice %21 {offsets = [0, 0], sizes = [9, 8], strides = [1, 1]} : vector<9x96xf32> to vector<9x8xf32>
    %30 = vector.extract_strided_slice %21 {offsets = [0, 32], sizes = [9, 8], strides = [1, 1]} : vector<9x96xf32> to vector<9x8xf32>
    %31 = vector.extract_strided_slice %21 {offsets = [0, 64], sizes = [9, 8], strides = [1, 1]} : vector<9x96xf32> to vector<9x8xf32>
    "tpu.trace_start"() <{level = 10 : i32, message = "qd,kd->qk"}> : () -> ()
    %cst_22 = arith.constant dense<0.000000e+00> : vector<9x9xf32>
    %32 = tpu.matmul %29, %30, %cst_22 {dimension_numbers = #tpu.dot_dimension_numbers<[1], [1], [0], [0], [0, 0, 1, 0], [], []>, precision = #tpu.contract_precision<fp32>} : vector<9x8xf32>, vector<9x8xf32>, vector<9x9xf32> -> vector<9x9xf32>
    "tpu.trace_stop"() : () -> ()
    %cst_23 = arith.constant 0.353553385 : f32
    %33 = vector.broadcast %cst_23 : f32 to vector<9x9xf32>
    %34 = arith.mulf %32, %33 : vector<9x9xf32>
    %35 = arith.addf %34, %14 : vector<9x9xf32>
    %cst_24 = arith.constant dense<0xFF800000> : vector<9xf32>
    %36 = vector.multi_reduction <maximumf>, %35, %cst_24 [1] : vector<9x9xf32> to vector<9xf32>
    %37 = vector.shape_cast %36 : vector<9xf32> to vector<9x1xf32>
    %38 = vector.broadcast %37 : vector<9x1xf32> to vector<9x9xf32>
    %39 = arith.subf %35, %38 : vector<9x9xf32>
    %40 = math.exp %39 : vector<9x9xf32>
    %cst_25 = arith.constant dense<0.000000e+00> : vector<9xf32>
    %41 = vector.multi_reduction <add>, %40, %cst_25 [1] : vector<9x9xf32> to vector<9xf32>
    %42 = vector.shape_cast %41 : vector<9xf32> to vector<9x1xf32>
    %43 = vector.broadcast %42 : vector<9x1xf32> to vector<9x9xf32>
    %44 = arith.divf %40, %43 : vector<9x9xf32>
    %cst_26 = arith.constant dense<0.000000e+00> : vector<9x8xf32>
    %45 = tpu.matmul %44, %31, %cst_26 {dimension_numbers = #tpu.dot_dimension_numbers<[1], [0], [0], [1], [0, 0, 1, 1], [], []>, precision = #tpu.contract_precision<fp32>} : vector<9x9xf32>, vector<9x8xf32>, vector<9x8xf32> -> vector<9x8xf32>
    %46 = vector.extract_strided_slice %23 {offsets = [0, 0], sizes = [8, 32], strides = [1, 1]} : vector<32x32xf32> to vector<8x32xf32>
    %cst_27 = arith.constant dense<0.000000e+00> : vector<9x32xf32>
    %47 = tpu.matmul %45, %46, %cst_27 {dimension_numbers = #tpu.dot_dimension_numbers<[1], [0], [0], [1], [0, 0, 1, 1], [], []>, precision = #tpu.contract_precision<fp32>} : vector<9x8xf32>, vector<8x32xf32>, vector<9x32xf32> -> vector<9x32xf32>
    %48 = arith.addf %28, %47 : vector<9x32xf32>
    %49 = vector.extract_strided_slice %21 {offsets = [0, 8], sizes = [9, 8], strides = [1, 1]} : vector<9x96xf32> to vector<9x8xf32>
    %50 = vector.extract_strided_slice %21 {offsets = [0, 40], sizes = [9, 8], strides = [1, 1]} : vector<9x96xf32> to vector<9x8xf32>
    %51 = vector.extract_strided_slice %21 {offsets = [0, 72], sizes = [9, 8], strides = [1, 1]} : vector<9x96xf32> to vector<9x8xf32>
    "tpu.trace_start"() <{level = 10 : i32, message = "qd,kd->qk"}> : () -> ()
    %cst_28 = arith.constant dense<0.000000e+00> : vector<9x9xf32>
    %52 = tpu.matmul %49, %50, %cst_28 {dimension_numbers = #tpu.dot_dimension_numbers<[1], [1], [0], [0], [0, 0, 1, 0], [], []>, precision = #tpu.contract_precision<fp32>} : vector<9x8xf32>, vector<9x8xf32>, vector<9x9xf32> -> vector<9x9xf32>
    "tpu.trace_stop"() : () -> ()
    %cst_29 = arith.constant 0.353553385 : f32
    %53 = vector.broadcast %cst_29 : f32 to vector<9x9xf32>
    %54 = arith.mulf %52, %53 : vector<9x9xf32>
    %55 = arith.addf %54, %14 : vector<9x9xf32>
    %cst_30 = arith.constant dense<0xFF800000> : vector<9xf32>
    %56 = vector.multi_reduction <maximumf>, %55, %cst_30 [1] : vector<9x9xf32> to vector<9xf32>
    %57 = vector.shape_cast %56 : vector<9xf32> to vector<9x1xf32>
    %58 = vector.broadcast %57 : vector<9x1xf32> to vector<9x9xf32>
    %59 = arith.subf %55, %58 : vector<9x9xf32>
    %60 = math.exp %59 : vector<9x9xf32>
    %cst_31 = arith.constant dense<0.000000e+00> : vector<9xf32>
    %61 = vector.multi_reduction <add>, %60, %cst_31 [1] : vector<9x9xf32> to vector<9xf32>
    %62 = vector.shape_cast %61 : vector<9xf32> to vector<9x1xf32>
    %63 = vector.broadcast %62 : vector<9x1xf32> to vector<9x9xf32>
    %64 = arith.divf %60, %63 : vector<9x9xf32>
    %cst_32 = arith.constant dense<0.000000e+00> : vector<9x8xf32>
    %65 = tpu.matmul %64, %51, %cst_32 {dimension_numbers = #tpu.dot_dimension_numbers<[1], [0], [0], [1], [0, 0, 1, 1], [], []>, precision = #tpu.contract_precision<fp32>} : vector<9x9xf32>, vector<9x8xf32>, vector<9x8xf32> -> vector<9x8xf32>
    %66 = vector.extract_strided_slice %23 {offsets = [8, 0], sizes = [8, 32], strides = [1, 1]} : vector<32x32xf32> to vector<8x32xf32>
    %cst_33 = arith.constant dense<0.000000e+00> : vector<9x32xf32>
    %67 = tpu.matmul %65, %66, %cst_33 {dimension_numbers = #tpu.dot_dimension_numbers<[1], [0], [0], [1], [0, 0, 1, 1], [], []>, precision = #tpu.contract_precision<fp32>} : vector<9x8xf32>, vector<8x32xf32>, vector<9x32xf32> -> vector<9x32xf32>
    %68 = arith.addf %48, %67 : vector<9x32xf32>
    %69 = vector.extract_strided_slice %21 {offsets = [0, 16], sizes = [9, 8], strides = [1, 1]} : vector<9x96xf32> to vector<9x8xf32>
    %70 = vector.extract_strided_slice %21 {offsets = [0, 48], sizes = [9, 8], strides = [1, 1]} : vector<9x96xf32> to vector<9x8xf32>
    %71 = vector.extract_strided_slice %21 {offsets = [0, 80], sizes = [9, 8], strides = [1, 1]} : vector<9x96xf32> to vector<9x8xf32>
    "tpu.trace_start"() <{level = 10 : i32, message = "qd,kd->qk"}> : () -> ()
    %cst_34 = arith.constant dense<0.000000e+00> : vector<9x9xf32>
    %72 = tpu.matmul %69, %70, %cst_34 {dimension_numbers = #tpu.dot_dimension_numbers<[1], [1], [0], [0], [0, 0, 1, 0], [], []>, precision = #tpu.contract_precision<fp32>} : vector<9x8xf32>, vector<9x8xf32>, vector<9x9xf32> -> vector<9x9xf32>
    "tpu.trace_stop"() : () -> ()
    %cst_35 = arith.constant 0.353553385 : f32
    %73 = vector.broadcast %cst_35 : f32 to vector<9x9xf32>
    %74 = arith.mulf %72, %73 : vector<9x9xf32>
    %75 = arith.addf %74, %14 : vector<9x9xf32>
    %cst_36 = arith.constant dense<0xFF800000> : vector<9xf32>
    %76 = vector.multi_reduction <maximumf>, %75, %cst_36 [1] : vector<9x9xf32> to vector<9xf32>
    %77 = vector.shape_cast %76 : vector<9xf32> to vector<9x1xf32>
    %78 = vector.broadcast %77 : vector<9x1xf32> to vector<9x9xf32>
    %79 = arith.subf %75, %78 : vector<9x9xf32>
    %80 = math.exp %79 : vector<9x9xf32>
    %cst_37 = arith.constant dense<0.000000e+00> : vector<9xf32>
    %81 = vector.multi_reduction <add>, %80, %cst_37 [1] : vector<9x9xf32> to vector<9xf32>
    %82 = vector.shape_cast %81 : vector<9xf32> to vector<9x1xf32>
    %83 = vector.broadcast %82 : vector<9x1xf32> to vector<9x9xf32>
    %84 = arith.divf %80, %83 : vector<9x9xf32>
    %cst_38 = arith.constant dense<0.000000e+00> : vector<9x8xf32>
    %85 = tpu.matmul %84, %71, %cst_38 {dimension_numbers = #tpu.dot_dimension_numbers<[1], [0], [0], [1], [0, 0, 1, 1], [], []>, precision = #tpu.contract_precision<fp32>} : vector<9x9xf32>, vector<9x8xf32>, vector<9x8xf32> -> vector<9x8xf32>
    %86 = vector.extract_strided_slice %23 {offsets = [16, 0], sizes = [8, 32], strides = [1, 1]} : vector<32x32xf32> to vector<8x32xf32>
    %cst_39 = arith.constant dense<0.000000e+00> : vector<9x32xf32>
    %87 = tpu.matmul %85, %86, %cst_39 {dimension_numbers = #tpu.dot_dimension_numbers<[1], [0], [0], [1], [0, 0, 1, 1], [], []>, precision = #tpu.contract_precision<fp32>} : vector<9x8xf32>, vector<8x32xf32>, vector<9x32xf32> -> vector<9x32xf32>
    %88 = arith.addf %68, %87 : vector<9x32xf32>
    %89 = vector.extract_strided_slice %21 {offsets = [0, 24], sizes = [9, 8], strides = [1, 1]} : vector<9x96xf32> to vector<9x8xf32>
    %90 = vector.extract_strided_slice %21 {offsets = [0, 56], sizes = [9, 8], strides = [1, 1]} : vector<9x96xf32> to vector<9x8xf32>
    %91 = vector.extract_strided_slice %21 {offsets = [0, 88], sizes = [9, 8], strides = [1, 1]} : vector<9x96xf32> to vector<9x8xf32>
    "tpu.trace_start"() <{level = 10 : i32, message = "qd,kd->qk"}> : () -> ()
    %cst_40 = arith.constant dense<0.000000e+00> : vector<9x9xf32>
    %92 = tpu.matmul %89, %90, %cst_40 {dimension_numbers = #tpu.dot_dimension_numbers<[1], [1], [0], [0], [0, 0, 1, 0], [], []>, precision = #tpu.contract_precision<fp32>} : vector<9x8xf32>, vector<9x8xf32>, vector<9x9xf32> -> vector<9x9xf32>
    "tpu.trace_stop"() : () -> ()
    %cst_41 = arith.constant 0.353553385 : f32
    %93 = vector.broadcast %cst_41 : f32 to vector<9x9xf32>
    %94 = arith.mulf %92, %93 : vector<9x9xf32>
    %95 = arith.addf %94, %14 : vector<9x9xf32>
    %cst_42 = arith.constant dense<0xFF800000> : vector<9xf32>
    %96 = vector.multi_reduction <maximumf>, %95, %cst_42 [1] : vector<9x9xf32> to vector<9xf32>
    %97 = vector.shape_cast %96 : vector<9xf32> to vector<9x1xf32>
    %98 = vector.broadcast %97 : vector<9x1xf32> to vector<9x9xf32>
    %99 = arith.subf %95, %98 : vector<9x9xf32>
    %100 = math.exp %99 : vector<9x9xf32>
    %cst_43 = arith.constant dense<0.000000e+00> : vector<9xf32>
    %101 = vector.multi_reduction <add>, %100, %cst_43 [1] : vector<9x9xf32> to vector<9xf32>
    %102 = vector.shape_cast %101 : vector<9xf32> to vector<9x1xf32>
    %103 = vector.broadcast %102 : vector<9x1xf32> to vector<9x9xf32>
    %104 = arith.divf %100, %103 : vector<9x9xf32>
    %cst_44 = arith.constant dense<0.000000e+00> : vector<9x8xf32>
    %105 = tpu.matmul %104, %91, %cst_44 {dimension_numbers = #tpu.dot_dimension_numbers<[1], [0], [0], [1], [0, 0, 1, 1], [], []>, precision = #tpu.contract_precision<fp32>} : vector<9x9xf32>, vector<9x8xf32>, vector<9x8xf32> -> vector<9x8xf32>
    %106 = vector.extract_strided_slice %23 {offsets = [24, 0], sizes = [8, 32], strides = [1, 1]} : vector<32x32xf32> to vector<8x32xf32>
    %cst_45 = arith.constant dense<0.000000e+00> : vector<9x32xf32>
    %107 = tpu.matmul %105, %106, %cst_45 {dimension_numbers = #tpu.dot_dimension_numbers<[1], [0], [0], [1], [0, 0, 1, 1], [], []>, precision = #tpu.contract_precision<fp32>} : vector<9x8xf32>, vector<8x32xf32>, vector<9x32xf32> -> vector<9x32xf32>
    %108 = arith.addf %88, %107 : vector<9x32xf32>
    %109 = arith.addf %5, %108 : vector<9x32xf32>
    %cst_46 = arith.constant dense<0.000000e+00> : vector<9xf32>
    %110 = vector.multi_reduction <add>, %109, %cst_46 [1] : vector<9x32xf32> to vector<9xf32>
    %111 = vector.shape_cast %110 : vector<9xf32> to vector<9x1xf32>
    %cst_47 = arith.constant 3.200000e+01 : f32
    %112 = vector.broadcast %cst_47 : f32 to vector<9x1xf32>
    %113 = arith.divf %111, %112 : vector<9x1xf32>
    %114 = vector.broadcast %113 : vector<9x1xf32> to vector<9x32xf32>
    %115 = arith.subf %109, %114 : vector<9x32xf32>
    %116 = arith.mulf %115, %115 : vector<9x32xf32>
    %cst_48 = arith.constant dense<0.000000e+00> : vector<9xf32>
    %117 = vector.multi_reduction <add>, %116, %cst_48 [1] : vector<9x32xf32> to vector<9xf32>
    %118 = vector.shape_cast %117 : vector<9xf32> to vector<9x1xf32>
    %cst_49 = arith.constant 3.200000e+01 : f32
    %119 = vector.broadcast %cst_49 : f32 to vector<9x1xf32>
    %120 = arith.divf %118, %119 : vector<9x1xf32>
    %cst_50 = arith.constant 9.99999974E-6 : f32
    %121 = vector.broadcast %cst_50 : f32 to vector<9x1xf32>
    %122 = arith.addf %120, %121 : vector<9x1xf32>
    %123 = math.rsqrt %122 : vector<9x1xf32>
    %124 = vector.broadcast %123 : vector<9x1xf32> to vector<9x32xf32>
    %125 = arith.mulf %115, %124 : vector<9x32xf32>
    %c0_51 = arith.constant 0 : index
    %c0_52 = arith.constant 0 : index
    %c0_53 = arith.constant 0 : index
    %126 = vector.load %arg8[%c0_51, %c0_52, %c0_53] : memref<2x1x32xf32, #tpu.memory_space<vmem>>, vector<1x1x32xf32>
    %127 = vector.shape_cast %126 : vector<1x1x32xf32> to vector<1x32xf32>
    %128 = vector.broadcast %127 : vector<1x32xf32> to vector<9x32xf32>
    %129 = arith.mulf %125, %128 : vector<9x32xf32>
    %c0_54 = arith.constant 0 : index
    %c0_55 = arith.constant 0 : index
    %c0_56 = arith.constant 0 : index
    %130 = vector.load %arg9[%c0_54, %c0_55, %c0_56] : memref<2x1x32xf32, #tpu.memory_space<vmem>>, vector<1x1x32xf32>
    %131 = vector.shape_cast %130 : vector<1x1x32xf32> to vector<1x32xf32>
    %132 = vector.broadcast %131 : vector<1x32xf32> to vector<9x32xf32>
    %133 = arith.addf %129, %132 : vector<9x32xf32>
    %c0_57 = arith.constant 0 : index
    %c0_58 = arith.constant 0 : index
    %c0_59 = arith.constant 0 : index
    %134 = vector.load %arg10[%c0_57, %c0_58, %c0_59] : memref<2x32x64xf32, #tpu.memory_space<vmem>>, vector<1x32x64xf32>
    %135 = vector.shape_cast %134 : vector<1x32x64xf32> to vector<32x64xf32>
    %cst_60 = arith.constant dense<0.000000e+00> : vector<9x64xf32>
    %136 = tpu.matmul %133, %135, %cst_60 {dimension_numbers = #tpu.dot_dimension_numbers<[1], [0], [0], [1], [0, 0, 1, 1], [], []>, precision = #tpu.contract_precision<fp32>} : vector<9x32xf32>, vector<32x64xf32>, vector<9x64xf32> -> vector<9x64xf32>
    %c0_61 = arith.constant 0 : index
    %c0_62 = arith.constant 0 : index
    %c0_63 = arith.constant 0 : index
    %137 = vector.load %arg11[%c0_61, %c0_62, %c0_63] : memref<2x1x64xf32, #tpu.memory_space<vmem>>, vector<1x1x64xf32>
    %138 = vector.shape_cast %137 : vector<1x1x64xf32> to vector<1x64xf32>
    %139 = vector.broadcast %138 : vector<1x64xf32> to vector<9x64xf32>
    %140 = arith.addf %136, %139 : vector<9x64xf32>
    %cst_64 = arith.constant 0.000000e+00 : f32
    %141 = vector.broadcast %cst_64 : f32 to vector<9x64xf32>
    %142 = arith.maximumf %140, %141 : vector<9x64xf32>
    %c0_65 = arith.constant 0 : index
    %c0_66 = arith.constant 0 : index
    %c0_67 = arith.constant 0 : index
    %143 = vector.load %arg12[%c0_65, %c0_66, %c0_67] : memref<2x64x32xf32, #tpu.memory_space<vmem>>, vector<1x64x32xf32>
    %144 = vector.shape_cast %143 : vector<1x64x32xf32> to vector<64x32xf32>
    %cst_68 = arith.constant dense<0.000000e+00> : vector<9x32xf32>
    %145 = tpu.matmul %142, %144, %cst_68 {dimension_numbers = #tpu.dot_dimension_numbers<[1], [0], [0], [1], [0, 0, 1, 1], [], []>, precision = #tpu.contract_precision<fp32>} : vector<9x64xf32>, vector<64x32xf32>, vector<9x32xf32> -> vector<9x32xf32>
    %c0_69 = arith.constant 0 : index
    %c0_70 = arith.constant 0 : index
    %c0_71 = arith.constant 0 : index
    %146 = vector.load %arg13[%c0_69, %c0_70, %c0_71] : memref<2x1x32xf32, #tpu.memory_space<vmem>>, vector<1x1x32xf32>
    %147 = vector.shape_cast %146 : vector<1x1x32xf32> to vector<1x32xf32>
    %148 = vector.broadcast %147 : vector<1x32xf32> to vector<9x32xf32>
    %149 = arith.addf %145, %148 : vector<9x32xf32>
    %150 = arith.addf %133, %149 : vector<9x32xf32>
    %cst_72 = arith.constant dense<0.000000e+00> : vector<9xf32>
    %151 = vector.multi_reduction <add>, %150, %cst_72 [1] : vector<9x32xf32> to vector<9xf32>
    %152 = vector.shape_cast %151 : vector<9xf32> to vector<9x1xf32>
    %cst_73 = arith.constant 3.200000e+01 : f32
    %153 = vector.broadcast %cst_73 : f32 to vector<9x1xf32>
    %154 = arith.divf %152, %153 : vector<9x1xf32>
    %155 = vector.broadcast %154 : vector<9x1xf32> to vector<9x32xf32>
    %156 = arith.subf %150, %155 : vector<9x32xf32>
    %157 = arith.mulf %156, %156 : vector<9x32xf32>
    %cst_74 = arith.constant dense<0.000000e+00> : vector<9xf32>
    %158 = vector.multi_reduction <add>, %157, %cst_74 [1] : vector<9x32xf32> to vector<9xf32>
    %159 = vector.shape_cast %158 : vector<9xf32> to vector<9x1xf32>
    %cst_75 = arith.constant 3.200000e+01 : f32
    %160 = vector.broadcast %cst_75 : f32 to vector<9x1xf32>
    %161 = arith.divf %159, %160 : vector<9x1xf32>
    %cst_76 = arith.constant 9.99999974E-6 : f32
    %162 = vector.broadcast %cst_76 : f32 to vector<9x1xf32>
    %163 = arith.addf %161, %162 : vector<9x1xf32>
    %164 = math.rsqrt %163 : vector<9x1xf32>
    %165 = vector.broadcast %164 : vector<9x1xf32> to vector<9x32xf32>
    %166 = arith.mulf %156, %165 : vector<9x32xf32>
    %c0_77 = arith.constant 0 : index
    %c0_78 = arith.constant 0 : index
    %c0_79 = arith.constant 0 : index
    %167 = vector.load %arg14[%c0_77, %c0_78, %c0_79] : memref<2x1x32xf32, #tpu.memory_space<vmem>>, vector<1x1x32xf32>
    %168 = vector.shape_cast %167 : vector<1x1x32xf32> to vector<1x32xf32>
    %169 = vector.broadcast %168 : vector<1x32xf32> to vector<9x32xf32>
    %170 = arith.mulf %166, %169 : vector<9x32xf32>
    %c0_80 = arith.constant 0 : index
    %c0_81 = arith.constant 0 : index
    %c0_82 = arith.constant 0 : index
    %171 = vector.load %arg15[%c0_80, %c0_81, %c0_82] : memref<2x1x32xf32, #tpu.memory_space<vmem>>, vector<1x1x32xf32>
    %172 = vector.shape_cast %171 : vector<1x1x32xf32> to vector<1x32xf32>
    %173 = vector.broadcast %172 : vector<1x32xf32> to vector<9x32xf32>
    %174 = arith.addf %170, %173 : vector<9x32xf32>
    %c1 = arith.constant 1 : index
    %c0_83 = arith.constant 0 : index
    %c0_84 = arith.constant 0 : index
    %175 = vector.load %arg4[%c1, %c0_83, %c0_84] : memref<2x32x96xf32, #tpu.memory_space<vmem>>, vector<1x32x96xf32>
    %176 = vector.shape_cast %175 : vector<1x32x96xf32> to vector<32x96xf32>
    %cst_85 = arith.constant dense<0.000000e+00> : vector<9x96xf32>
    %177 = tpu.matmul %174, %176, %cst_85 {dimension_numbers = #tpu.dot_dimension_numbers<[1], [0], [0], [1], [0, 0, 1, 1], [], []>, precision = #tpu.contract_precision<fp32>} : vector<9x32xf32>, vector<32x96xf32>, vector<9x96xf32> -> vector<9x96xf32>
    %c1_86 = arith.constant 1 : index
    %c0_87 = arith.constant 0 : index
    %c0_88 = arith.constant 0 : index
    %178 = vector.load %arg5[%c1_86, %c0_87, %c0_88] : memref<2x1x96xf32, #tpu.memory_space<vmem>>, vector<1x1x96xf32>
    %179 = vector.shape_cast %178 : vector<1x1x96xf32> to vector<1x96xf32>
    %180 = vector.broadcast %179 : vector<1x96xf32> to vector<9x96xf32>
    %181 = arith.addf %177, %180 : vector<9x96xf32>
    %c1_89 = arith.constant 1 : index
    %c0_90 = arith.constant 0 : index
    %c0_91 = arith.constant 0 : index
    %182 = vector.load %arg6[%c1_89, %c0_90, %c0_91] : memref<2x32x32xf32, #tpu.memory_space<vmem>>, vector<1x32x32xf32>
    %183 = vector.shape_cast %182 : vector<1x32x32xf32> to vector<32x32xf32>
    %cst_92 = arith.constant 0.000000e+00 : f32
    %184 = vector.broadcast %cst_92 : f32 to vector<9x32xf32>
    %c1_93 = arith.constant 1 : index
    %c0_94 = arith.constant 0 : index
    %c0_95 = arith.constant 0 : index
    %185 = vector.load %arg7[%c1_93, %c0_94, %c0_95] : memref<2x1x32xf32, #tpu.memory_space<vmem>>, vector<1x1x32xf32>
    %186 = vector.shape_cast %185 : vector<1x1x32xf32> to vector<1x32xf32>
    %187 = vector.broadcast %186 : vector<1x32xf32> to vector<9x32xf32>
    %188 = arith.addf %184, %187 : vector<9x32xf32>
    %189 = vector.extract_strided_slice %181 {offsets = [0, 0], sizes = [9, 8], strides = [1, 1]} : vector<9x96xf32> to vector<9x8xf32>
    %190 = vector.extract_strided_slice %181 {offsets = [0, 32], sizes = [9, 8], strides = [1, 1]} : vector<9x96xf32> to vector<9x8xf32>
    %191 = vector.extract_strided_slice %181 {offsets = [0, 64], sizes = [9, 8], strides = [1, 1]} : vector<9x96xf32> to vector<9x8xf32>
    "tpu.trace_start"() <{level = 10 : i32, message = "qd,kd->qk"}> : () -> ()
    %cst_96 = arith.constant dense<0.000000e+00> : vector<9x9xf32>
    %192 = tpu.matmul %189, %190, %cst_96 {dimension_numbers = #tpu.dot_dimension_numbers<[1], [1], [0], [0], [0, 0, 1, 0], [], []>, precision = #tpu.contract_precision<fp32>} : vector<9x8xf32>, vector<9x8xf32>, vector<9x9xf32> -> vector<9x9xf32>
    "tpu.trace_stop"() : () -> ()
    %cst_97 = arith.constant 0.353553385 : f32
    %193 = vector.broadcast %cst_97 : f32 to vector<9x9xf32>
    %194 = arith.mulf %192, %193 : vector<9x9xf32>
    %195 = arith.addf %194, %14 : vector<9x9xf32>
    %cst_98 = arith.constant dense<0xFF800000> : vector<9xf32>
    %196 = vector.multi_reduction <maximumf>, %195, %cst_98 [1] : vector<9x9xf32> to vector<9xf32>
    %197 = vector.shape_cast %196 : vector<9xf32> to vector<9x1xf32>
    %198 = vector.broadcast %197 : vector<9x1xf32> to vector<9x9xf32>
    %199 = arith.subf %195, %198 : vector<9x9xf32>
    %200 = math.exp %199 : vector<9x9xf32>
    %cst_99 = arith.constant dense<0.000000e+00> : vector<9xf32>
    %201 = vector.multi_reduction <add>, %200, %cst_99 [1] : vector<9x9xf32> to vector<9xf32>
    %202 = vector.shape_cast %201 : vector<9xf32> to vector<9x1xf32>
    %203 = vector.broadcast %202 : vector<9x1xf32> to vector<9x9xf32>
    %204 = arith.divf %200, %203 : vector<9x9xf32>
    %cst_100 = arith.constant dense<0.000000e+00> : vector<9x8xf32>
    %205 = tpu.matmul %204, %191, %cst_100 {dimension_numbers = #tpu.dot_dimension_numbers<[1], [0], [0], [1], [0, 0, 1, 1], [], []>, precision = #tpu.contract_precision<fp32>} : vector<9x9xf32>, vector<9x8xf32>, vector<9x8xf32> -> vector<9x8xf32>
    %206 = vector.extract_strided_slice %183 {offsets = [0, 0], sizes = [8, 32], strides = [1, 1]} : vector<32x32xf32> to vector<8x32xf32>
    %cst_101 = arith.constant dense<0.000000e+00> : vector<9x32xf32>
    %207 = tpu.matmul %205, %206, %cst_101 {dimension_numbers = #tpu.dot_dimension_numbers<[1], [0], [0], [1], [0, 0, 1, 1], [], []>, precision = #tpu.contract_precision<fp32>} : vector<9x8xf32>, vector<8x32xf32>, vector<9x32xf32> -> vector<9x32xf32>
    %208 = arith.addf %188, %207 : vector<9x32xf32>
    %209 = vector.extract_strided_slice %181 {offsets = [0, 8], sizes = [9, 8], strides = [1, 1]} : vector<9x96xf32> to vector<9x8xf32>
    %210 = vector.extract_strided_slice %181 {offsets = [0, 40], sizes = [9, 8], strides = [1, 1]} : vector<9x96xf32> to vector<9x8xf32>
    %211 = vector.extract_strided_slice %181 {offsets = [0, 72], sizes = [9, 8], strides = [1, 1]} : vector<9x96xf32> to vector<9x8xf32>
    "tpu.trace_start"() <{level = 10 : i32, message = "qd,kd->qk"}> : () -> ()
    %cst_102 = arith.constant dense<0.000000e+00> : vector<9x9xf32>
    %212 = tpu.matmul %209, %210, %cst_102 {dimension_numbers = #tpu.dot_dimension_numbers<[1], [1], [0], [0], [0, 0, 1, 0], [], []>, precision = #tpu.contract_precision<fp32>} : vector<9x8xf32>, vector<9x8xf32>, vector<9x9xf32> -> vector<9x9xf32>
    "tpu.trace_stop"() : () -> ()
    %cst_103 = arith.constant 0.353553385 : f32
    %213 = vector.broadcast %cst_103 : f32 to vector<9x9xf32>
    %214 = arith.mulf %212, %213 : vector<9x9xf32>
    %215 = arith.addf %214, %14 : vector<9x9xf32>
    %cst_104 = arith.constant dense<0xFF800000> : vector<9xf32>
    %216 = vector.multi_reduction <maximumf>, %215, %cst_104 [1] : vector<9x9xf32> to vector<9xf32>
    %217 = vector.shape_cast %216 : vector<9xf32> to vector<9x1xf32>
    %218 = vector.broadcast %217 : vector<9x1xf32> to vector<9x9xf32>
    %219 = arith.subf %215, %218 : vector<9x9xf32>
    %220 = math.exp %219 : vector<9x9xf32>
    %cst_105 = arith.constant dense<0.000000e+00> : vector<9xf32>
    %221 = vector.multi_reduction <add>, %220, %cst_105 [1] : vector<9x9xf32> to vector<9xf32>
    %222 = vector.shape_cast %221 : vector<9xf32> to vector<9x1xf32>
    %223 = vector.broadcast %222 : vector<9x1xf32> to vector<9x9xf32>
    %224 = arith.divf %220, %223 : vector<9x9xf32>
    %cst_106 = arith.constant dense<0.000000e+00> : vector<9x8xf32>
    %225 = tpu.matmul %224, %211, %cst_106 {dimension_numbers = #tpu.dot_dimension_numbers<[1], [0], [0], [1], [0, 0, 1, 1], [], []>, precision = #tpu.contract_precision<fp32>} : vector<9x9xf32>, vector<9x8xf32>, vector<9x8xf32> -> vector<9x8xf32>
    %226 = vector.extract_strided_slice %183 {offsets = [8, 0], sizes = [8, 32], strides = [1, 1]} : vector<32x32xf32> to vector<8x32xf32>
    %cst_107 = arith.constant dense<0.000000e+00> : vector<9x32xf32>
    %227 = tpu.matmul %225, %226, %cst_107 {dimension_numbers = #tpu.dot_dimension_numbers<[1], [0], [0], [1], [0, 0, 1, 1], [], []>, precision = #tpu.contract_precision<fp32>} : vector<9x8xf32>, vector<8x32xf32>, vector<9x32xf32> -> vector<9x32xf32>
    %228 = arith.addf %208, %227 : vector<9x32xf32>
    %229 = vector.extract_strided_slice %181 {offsets = [0, 16], sizes = [9, 8], strides = [1, 1]} : vector<9x96xf32> to vector<9x8xf32>
    %230 = vector.extract_strided_slice %181 {offsets = [0, 48], sizes = [9, 8], strides = [1, 1]} : vector<9x96xf32> to vector<9x8xf32>
    %231 = vector.extract_strided_slice %181 {offsets = [0, 80], sizes = [9, 8], strides = [1, 1]} : vector<9x96xf32> to vector<9x8xf32>
    "tpu.trace_start"() <{level = 10 : i32, message = "qd,kd->qk"}> : () -> ()
    %cst_108 = arith.constant dense<0.000000e+00> : vector<9x9xf32>
    %232 = tpu.matmul %229, %230, %cst_108 {dimension_numbers = #tpu.dot_dimension_numbers<[1], [1], [0], [0], [0, 0, 1, 0], [], []>, precision = #tpu.contract_precision<fp32>} : vector<9x8xf32>, vector<9x8xf32>, vector<9x9xf32> -> vector<9x9xf32>
    "tpu.trace_stop"() : () -> ()
    %cst_109 = arith.constant 0.353553385 : f32
    %233 = vector.broadcast %cst_109 : f32 to vector<9x9xf32>
    %234 = arith.mulf %232, %233 : vector<9x9xf32>
    %235 = arith.addf %234, %14 : vector<9x9xf32>
    %cst_110 = arith.constant dense<0xFF800000> : vector<9xf32>
    %236 = vector.multi_reduction <maximumf>, %235, %cst_110 [1] : vector<9x9xf32> to vector<9xf32>
    %237 = vector.shape_cast %236 : vector<9xf32> to vector<9x1xf32>
    %238 = vector.broadcast %237 : vector<9x1xf32> to vector<9x9xf32>
    %239 = arith.subf %235, %238 : vector<9x9xf32>
    %240 = math.exp %239 : vector<9x9xf32>
    %cst_111 = arith.constant dense<0.000000e+00> : vector<9xf32>
    %241 = vector.multi_reduction <add>, %240, %cst_111 [1] : vector<9x9xf32> to vector<9xf32>
    %242 = vector.shape_cast %241 : vector<9xf32> to vector<9x1xf32>
    %243 = vector.broadcast %242 : vector<9x1xf32> to vector<9x9xf32>
    %244 = arith.divf %240, %243 : vector<9x9xf32>
    %cst_112 = arith.constant dense<0.000000e+00> : vector<9x8xf32>
    %245 = tpu.matmul %244, %231, %cst_112 {dimension_numbers = #tpu.dot_dimension_numbers<[1], [0], [0], [1], [0, 0, 1, 1], [], []>, precision = #tpu.contract_precision<fp32>} : vector<9x9xf32>, vector<9x8xf32>, vector<9x8xf32> -> vector<9x8xf32>
    %246 = vector.extract_strided_slice %183 {offsets = [16, 0], sizes = [8, 32], strides = [1, 1]} : vector<32x32xf32> to vector<8x32xf32>
    %cst_113 = arith.constant dense<0.000000e+00> : vector<9x32xf32>
    %247 = tpu.matmul %245, %246, %cst_113 {dimension_numbers = #tpu.dot_dimension_numbers<[1], [0], [0], [1], [0, 0, 1, 1], [], []>, precision = #tpu.contract_precision<fp32>} : vector<9x8xf32>, vector<8x32xf32>, vector<9x32xf32> -> vector<9x32xf32>
    %248 = arith.addf %228, %247 : vector<9x32xf32>
    %249 = vector.extract_strided_slice %181 {offsets = [0, 24], sizes = [9, 8], strides = [1, 1]} : vector<9x96xf32> to vector<9x8xf32>
    %250 = vector.extract_strided_slice %181 {offsets = [0, 56], sizes = [9, 8], strides = [1, 1]} : vector<9x96xf32> to vector<9x8xf32>
    %251 = vector.extract_strided_slice %181 {offsets = [0, 88], sizes = [9, 8], strides = [1, 1]} : vector<9x96xf32> to vector<9x8xf32>
    "tpu.trace_start"() <{level = 10 : i32, message = "qd,kd->qk"}> : () -> ()
    %cst_114 = arith.constant dense<0.000000e+00> : vector<9x9xf32>
    %252 = tpu.matmul %249, %250, %cst_114 {dimension_numbers = #tpu.dot_dimension_numbers<[1], [1], [0], [0], [0, 0, 1, 0], [], []>, precision = #tpu.contract_precision<fp32>} : vector<9x8xf32>, vector<9x8xf32>, vector<9x9xf32> -> vector<9x9xf32>
    "tpu.trace_stop"() : () -> ()
    %cst_115 = arith.constant 0.353553385 : f32
    %253 = vector.broadcast %cst_115 : f32 to vector<9x9xf32>
    %254 = arith.mulf %252, %253 : vector<9x9xf32>
    %255 = arith.addf %254, %14 : vector<9x9xf32>
    %cst_116 = arith.constant dense<0xFF800000> : vector<9xf32>
    %256 = vector.multi_reduction <maximumf>, %255, %cst_116 [1] : vector<9x9xf32> to vector<9xf32>
    %257 = vector.shape_cast %256 : vector<9xf32> to vector<9x1xf32>
    %258 = vector.broadcast %257 : vector<9x1xf32> to vector<9x9xf32>
    %259 = arith.subf %255, %258 : vector<9x9xf32>
    %260 = math.exp %259 : vector<9x9xf32>
    %cst_117 = arith.constant dense<0.000000e+00> : vector<9xf32>
    %261 = vector.multi_reduction <add>, %260, %cst_117 [1] : vector<9x9xf32> to vector<9xf32>
    %262 = vector.shape_cast %261 : vector<9xf32> to vector<9x1xf32>
    %263 = vector.broadcast %262 : vector<9x1xf32> to vector<9x9xf32>
    %264 = arith.divf %260, %263 : vector<9x9xf32>
    %cst_118 = arith.constant dense<0.000000e+00> : vector<9x8xf32>
    %265 = tpu.matmul %264, %251, %cst_118 {dimension_numbers = #tpu.dot_dimension_numbers<[1], [0], [0], [1], [0, 0, 1, 1], [], []>, precision = #tpu.contract_precision<fp32>} : vector<9x9xf32>, vector<9x8xf32>, vector<9x8xf32> -> vector<9x8xf32>
    %266 = vector.extract_strided_slice %183 {offsets = [24, 0], sizes = [8, 32], strides = [1, 1]} : vector<32x32xf32> to vector<8x32xf32>
    %cst_119 = arith.constant dense<0.000000e+00> : vector<9x32xf32>
    %267 = tpu.matmul %265, %266, %cst_119 {dimension_numbers = #tpu.dot_dimension_numbers<[1], [0], [0], [1], [0, 0, 1, 1], [], []>, precision = #tpu.contract_precision<fp32>} : vector<9x8xf32>, vector<8x32xf32>, vector<9x32xf32> -> vector<9x32xf32>
    %268 = arith.addf %248, %267 : vector<9x32xf32>
    %269 = arith.addf %174, %268 : vector<9x32xf32>
    %cst_120 = arith.constant dense<0.000000e+00> : vector<9xf32>
    %270 = vector.multi_reduction <add>, %269, %cst_120 [1] : vector<9x32xf32> to vector<9xf32>
    %271 = vector.shape_cast %270 : vector<9xf32> to vector<9x1xf32>
    %cst_121 = arith.constant 3.200000e+01 : f32
    %272 = vector.broadcast %cst_121 : f32 to vector<9x1xf32>
    %273 = arith.divf %271, %272 : vector<9x1xf32>
    %274 = vector.broadcast %273 : vector<9x1xf32> to vector<9x32xf32>
    %275 = arith.subf %269, %274 : vector<9x32xf32>
    %276 = arith.mulf %275, %275 : vector<9x32xf32>
    %cst_122 = arith.constant dense<0.000000e+00> : vector<9xf32>
    %277 = vector.multi_reduction <add>, %276, %cst_122 [1] : vector<9x32xf32> to vector<9xf32>
    %278 = vector.shape_cast %277 : vector<9xf32> to vector<9x1xf32>
    %cst_123 = arith.constant 3.200000e+01 : f32
    %279 = vector.broadcast %cst_123 : f32 to vector<9x1xf32>
    %280 = arith.divf %278, %279 : vector<9x1xf32>
    %cst_124 = arith.constant 9.99999974E-6 : f32
    %281 = vector.broadcast %cst_124 : f32 to vector<9x1xf32>
    %282 = arith.addf %280, %281 : vector<9x1xf32>
    %283 = math.rsqrt %282 : vector<9x1xf32>
    %284 = vector.broadcast %283 : vector<9x1xf32> to vector<9x32xf32>
    %285 = arith.mulf %275, %284 : vector<9x32xf32>
    %c1_125 = arith.constant 1 : index
    %c0_126 = arith.constant 0 : index
    %c0_127 = arith.constant 0 : index
    %286 = vector.load %arg8[%c1_125, %c0_126, %c0_127] : memref<2x1x32xf32, #tpu.memory_space<vmem>>, vector<1x1x32xf32>
    %287 = vector.shape_cast %286 : vector<1x1x32xf32> to vector<1x32xf32>
    %288 = vector.broadcast %287 : vector<1x32xf32> to vector<9x32xf32>
    %289 = arith.mulf %285, %288 : vector<9x32xf32>
    %c1_128 = arith.constant 1 : index
    %c0_129 = arith.constant 0 : index
    %c0_130 = arith.constant 0 : index
    %290 = vector.load %arg9[%c1_128, %c0_129, %c0_130] : memref<2x1x32xf32, #tpu.memory_space<vmem>>, vector<1x1x32xf32>
    %291 = vector.shape_cast %290 : vector<1x1x32xf32> to vector<1x32xf32>
    %292 = vector.broadcast %291 : vector<1x32xf32> to vector<9x32xf32>
    %293 = arith.addf %289, %292 : vector<9x32xf32>
    %c1_131 = arith.constant 1 : index
    %c0_132 = arith.constant 0 : index
    %c0_133 = arith.constant 0 : index
    %294 = vector.load %arg10[%c1_131, %c0_132, %c0_133] : memref<2x32x64xf32, #tpu.memory_space<vmem>>, vector<1x32x64xf32>
    %295 = vector.shape_cast %294 : vector<1x32x64xf32> to vector<32x64xf32>
    %cst_134 = arith.constant dense<0.000000e+00> : vector<9x64xf32>
    %296 = tpu.matmul %293, %295, %cst_134 {dimension_numbers = #tpu.dot_dimension_numbers<[1], [0], [0], [1], [0, 0, 1, 1], [], []>, precision = #tpu.contract_precision<fp32>} : vector<9x32xf32>, vector<32x64xf32>, vector<9x64xf32> -> vector<9x64xf32>
    %c1_135 = arith.constant 1 : index
    %c0_136 = arith.constant 0 : index
    %c0_137 = arith.constant 0 : index
    %297 = vector.load %arg11[%c1_135, %c0_136, %c0_137] : memref<2x1x64xf32, #tpu.memory_space<vmem>>, vector<1x1x64xf32>
    %298 = vector.shape_cast %297 : vector<1x1x64xf32> to vector<1x64xf32>
    %299 = vector.broadcast %298 : vector<1x64xf32> to vector<9x64xf32>
    %300 = arith.addf %296, %299 : vector<9x64xf32>
    %cst_138 = arith.constant 0.000000e+00 : f32
    %301 = vector.broadcast %cst_138 : f32 to vector<9x64xf32>
    %302 = arith.maximumf %300, %301 : vector<9x64xf32>
    %c1_139 = arith.constant 1 : index
    %c0_140 = arith.constant 0 : index
    %c0_141 = arith.constant 0 : index
    %303 = vector.load %arg12[%c1_139, %c0_140, %c0_141] : memref<2x64x32xf32, #tpu.memory_space<vmem>>, vector<1x64x32xf32>
    %304 = vector.shape_cast %303 : vector<1x64x32xf32> to vector<64x32xf32>
    %cst_142 = arith.constant dense<0.000000e+00> : vector<9x32xf32>
    %305 = tpu.matmul %302, %304, %cst_142 {dimension_numbers = #tpu.dot_dimension_numbers<[1], [0], [0], [1], [0, 0, 1, 1], [], []>, precision = #tpu.contract_precision<fp32>} : vector<9x64xf32>, vector<64x32xf32>, vector<9x32xf32> -> vector<9x32xf32>
    %c1_143 = arith.constant 1 : index
    %c0_144 = arith.constant 0 : index
    %c0_145 = arith.constant 0 : index
    %306 = vector.load %arg13[%c1_143, %c0_144, %c0_145] : memref<2x1x32xf32, #tpu.memory_space<vmem>>, vector<1x1x32xf32>
    %307 = vector.shape_cast %306 : vector<1x1x32xf32> to vector<1x32xf32>
    %308 = vector.broadcast %307 : vector<1x32xf32> to vector<9x32xf32>
    %309 = arith.addf %305, %308 : vector<9x32xf32>
    %310 = arith.addf %293, %309 : vector<9x32xf32>
    %cst_146 = arith.constant dense<0.000000e+00> : vector<9xf32>
    %311 = vector.multi_reduction <add>, %310, %cst_146 [1] : vector<9x32xf32> to vector<9xf32>
    %312 = vector.shape_cast %311 : vector<9xf32> to vector<9x1xf32>
    %cst_147 = arith.constant 3.200000e+01 : f32
    %313 = vector.broadcast %cst_147 : f32 to vector<9x1xf32>
    %314 = arith.divf %312, %313 : vector<9x1xf32>
    %315 = vector.broadcast %314 : vector<9x1xf32> to vector<9x32xf32>
    %316 = arith.subf %310, %315 : vector<9x32xf32>
    %317 = arith.mulf %316, %316 : vector<9x32xf32>
    %cst_148 = arith.constant dense<0.000000e+00> : vector<9xf32>
    %318 = vector.multi_reduction <add>, %317, %cst_148 [1] : vector<9x32xf32> to vector<9xf32>
    %319 = vector.shape_cast %318 : vector<9xf32> to vector<9x1xf32>
    %cst_149 = arith.constant 3.200000e+01 : f32
    %320 = vector.broadcast %cst_149 : f32 to vector<9x1xf32>
    %321 = arith.divf %319, %320 : vector<9x1xf32>
    %cst_150 = arith.constant 9.99999974E-6 : f32
    %322 = vector.broadcast %cst_150 : f32 to vector<9x1xf32>
    %323 = arith.addf %321, %322 : vector<9x1xf32>
    %324 = math.rsqrt %323 : vector<9x1xf32>
    %325 = vector.broadcast %324 : vector<9x1xf32> to vector<9x32xf32>
    %326 = arith.mulf %316, %325 : vector<9x32xf32>
    %c1_151 = arith.constant 1 : index
    %c0_152 = arith.constant 0 : index
    %c0_153 = arith.constant 0 : index
    %327 = vector.load %arg14[%c1_151, %c0_152, %c0_153] : memref<2x1x32xf32, #tpu.memory_space<vmem>>, vector<1x1x32xf32>
    %328 = vector.shape_cast %327 : vector<1x1x32xf32> to vector<1x32xf32>
    %329 = vector.broadcast %328 : vector<1x32xf32> to vector<9x32xf32>
    %330 = arith.mulf %326, %329 : vector<9x32xf32>
    %c1_154 = arith.constant 1 : index
    %c0_155 = arith.constant 0 : index
    %c0_156 = arith.constant 0 : index
    %331 = vector.load %arg15[%c1_154, %c0_155, %c0_156] : memref<2x1x32xf32, #tpu.memory_space<vmem>>, vector<1x1x32xf32>
    %332 = vector.shape_cast %331 : vector<1x1x32xf32> to vector<1x32xf32>
    %333 = vector.broadcast %332 : vector<1x32xf32> to vector<9x32xf32>
    %334 = arith.addf %330, %333 : vector<9x32xf32>
    %c0_157 = arith.constant 0 : index
    %c0_158 = arith.constant 0 : index
    %335 = vector.load %arg16[%c0_157, %c0_158] : memref<32x4xf32, #tpu.memory_space<vmem>>, vector<32x4xf32>
    %cst_159 = arith.constant dense<0.000000e+00> : vector<9x4xf32>
    %336 = tpu.matmul %334, %335, %cst_159 {dimension_numbers = #tpu.dot_dimension_numbers<[1], [0], [0], [1], [0, 0, 1, 1], [], []>, precision = #tpu.contract_precision<fp32>} : vector<9x32xf32>, vector<32x4xf32>, vector<9x4xf32> -> vector<9x4xf32>
    %c0_160 = arith.constant 0 : index
    %c0_161 = arith.constant 0 : index
    %337 = vector.load %arg17[%c0_160, %c0_161] : memref<1x4xf32, #tpu.memory_space<vmem>>, vector<1x4xf32>
    %338 = vector.broadcast %337 : vector<1x4xf32> to vector<9x4xf32>
    %339 = arith.addf %336, %338 : vector<9x4xf32>
    %c0_162 = arith.constant 0 : index
    %c0_163 = arith.constant 0 : index
    %c0_164 = arith.constant 0 : index
    %340 = vector.load %arg18[%c0_162, %c0_163, %c0_164] : memref<1x9x4xf32, #tpu.memory_space<vmem>>, vector<1x9x4xf32>
    %341 = vector.shape_cast %340 : vector<1x9x4xf32> to vector<9x4xf32>
    %342 = vector.shape_cast %339 : vector<9x4xf32> to vector<1x9x4xf32>
    tpu.vector_store %arg18[%c0_162, %c0_163, %c0_164], %342 {strides = array<i32>} : memref<1x9x4xf32, #tpu.memory_space<vmem>>, vector<1x9x4xf32>,
    return
  }
  func.func @transform_0(%arg0: i32) -> (i32, i32, i32) {
    %c0_i32 = arith.constant 0 : i32
    %c0_i32_0 = arith.constant 0 : i32
    %c0_i32_1 = arith.constant 0 : i32
    return %arg0, %c0_i32, %c0_i32_0 : i32, i32, i32
  }
  func.func @transform_1(%arg0: i32) -> (i32, i32) {
    %c0_i32 = arith.constant 0 : i32
    %c0_i32_0 = arith.constant 0 : i32
    %c0_i32_1 = arith.constant 0 : i32
    return %c0_i32, %c0_i32_0 : i32, i32
  }
  func.func @transform_2(%arg0: i32) -> (i32, i32) {
    %c0_i32 = arith.constant 0 : i32
    %c0_i32_0 = arith.constant 0 : i32
    %c0_i32_1 = arith.constant 0 : i32
    return %c0_i32, %c0_i32_0 : i32, i32
  }
  func.func @transform_3(%arg0: i32) -> (i32, i32, i32) {
    %c0_i32 = arith.constant 0 : i32
    %c0_i32_0 = arith.constant 0 : i32
    %c0_i32_1 = arith.constant 0 : i32
    %c0_i32_2 = arith.constant 0 : i32
    return %c0_i32, %c0_i32_0, %c0_i32_1 : i32, i32, i32
  }
  func.func @transform_4(%arg0: i32) -> (i32, i32, i32) {
    %c0_i32 = arith.constant 0 : i32
    %c0_i32_0 = arith.constant 0 : i32
    %c0_i32_1 = arith.constant 0 : i32
    %c0_i32_2 = arith.constant 0 : i32
    return %c0_i32, %c0_i32_0, %c0_i32_1 : i32, i32, i32
  }
  func.func @transform_5(%arg0: i32) -> (i32, i32, i32) {
    %c0_i32 = arith.constant 0 : i32
    %c0_i32_0 = arith.constant 0 : i32
    %c0_i32_1 = arith.constant 0 : i32
    %c0_i32_2 = arith.constant 0 : i32
    return %c0_i32, %c0_i32_0, %c0_i32_1 : i32, i32, i32
  }
  func.func @transform_6(%arg0: i32) -> (i32, i32, i32) {
    %c0_i32 = arith.constant 0 : i32
    %c0_i32_0 = arith.constant 0 : i32
    %c0_i32_1 = arith.constant 0 : i32
    %c0_i32_2 = arith.constant 0 : i32
    return %c0_i32, %c0_i32_0, %c0_i32_1 : i32, i32, i32
  }
  func.func @transform_7(%arg0: i32) -> (i32, i32, i32) {
    %c0_i32 = arith.constant 0 : i32
    %c0_i32_0 = arith.constant 0 : i32
    %c0_i32_1 = arith.constant 0 : i32
    %c0_i32_2 = arith.constant 0 : i32
    return %c0_i32, %c0_i32_0, %c0_i32_1 : i32, i32, i32
  }
  func.func @transform_8(%arg0: i32) -> (i32, i32, i32) {
    %c0_i32 = arith.constant 0 : i32
    %c0_i32_0 = arith.constant 0 : i32
    %c0_i32_1 = arith.constant 0 : i32
    %c0_i32_2 = arith.constant 0 : i32
    return %c0_i32, %c0_i32_0, %c0_i32_1 : i32, i32, i32
  }
  func.func @transform_9(%arg0: i32) -> (i32, i32, i32) {
    %c0_i32 = arith.constant 0 : i32
    %c0_i32_0 = arith.constant 0 : i32
    %c0_i32_1 = arith.constant 0 : i32
    %c0_i32_2 = arith.constant 0 : i32
    return %c0_i32, %c0_i32_0, %c0_i32_1 : i32, i32, i32
  }
  func.func @transform_10(%arg0: i32) -> (i32, i32, i32) {
    %c0_i32 = arith.constant 0 : i32
    %c0_i32_0 = arith.constant 0 : i32
    %c0_i32_1 = arith.constant 0 : i32
    %c0_i32_2 = arith.constant 0 : i32
    return %c0_i32, %c0_i32_0, %c0_i32_1 : i32, i32, i32
  }
  func.func @transform_11(%arg0: i32) -> (i32, i32, i32) {
    %c0_i32 = arith.constant 0 : i32
    %c0_i32_0 = arith.constant 0 : i32
    %c0_i32_1 = arith.constant 0 : i32
    %c0_i32_2 = arith.constant 0 : i32
    return %c0_i32, %c0_i32_0, %c0_i32_1 : i32, i32, i32
  }
  func.func @transform_12(%arg0: i32) -> (i32, i32, i32) {
    %c0_i32 = arith.constant 0 : i32
    %c0_i32_0 = arith.constant 0 : i32
    %c0_i32_1 = arith.constant 0 : i32
    %c0_i32_2 = arith.constant 0 : i32
    return %c0_i32, %c0_i32_0, %c0_i32_1 : i32, i32, i32
  }
  func.func @transform_13(%arg0: i32) -> (i32, i32, i32) {
    %c0_i32 = arith.constant 0 : i32
    %c0_i32_0 = arith.constant 0 : i32
    %c0_i32_1 = arith.constant 0 : i32
    %c0_i32_2 = arith.constant 0 : i32
    return %c0_i32, %c0_i32_0, %c0_i32_1 : i32, i32, i32
  }
  func.func @transform_14(%arg0: i32) -> (i32, i32, i32) {
    %c0_i32 = arith.constant 0 : i32
    %c0_i32_0 = arith.constant 0 : i32
    %c0_i32_1 = arith.constant 0 : i32
    %c0_i32_2 = arith.constant 0 : i32
    return %c0_i32, %c0_i32_0, %c0_i32_1 : i32, i32, i32
  }
  func.func @transform_15(%arg0: i32) -> (i32, i32) {
    %c0_i32 = arith.constant 0 : i32
    %c0_i32_0 = arith.constant 0 : i32
    %c0_i32_1 = arith.constant 0 : i32
    return %c0_i32, %c0_i32_0 : i32, i32
  }
  func.func @transform_16(%arg0: i32) -> (i32, i32) {
    %c0_i32 = arith.constant 0 : i32
    %c0_i32_0 = arith.constant 0 : i32
    %c0_i32_1 = arith.constant 0 : i32
    return %c0_i32, %c0_i32_0 : i32, i32
  }
  func.func @transform_17(%arg0: i32) -> (i32, i32, i32) {
    %c0_i32 = arith.constant 0 : i32
    %c0_i32_0 = arith.constant 0 : i32
    %c0_i32_1 = arith.constant 0 : i32
    return %arg0, %c0_i32, %c0_i32_0 : i32, i32, i32
  }
}

</mosaic_0001>

<bundles_post_ra>
// kernel: tpu_custom_call.1
= control target key start
LH: loop header
LB: loop body
LE: loop exit
PB: predicated region body
PF: predicated region fallthrough
CT: control target
= control target key end

     0   :  { %s21654_s24 = smov 0   ;;  %s22839_s0 = inlined_call_operand.vmem [shape: f32[2,9,28], index: 0, kind: input, shape index: {}]   ;;  %s22840_s1 = inlined_call_operand.vmem [shape: f32[28,32], index: 1, kind: input, shape index: {}]   ;;  %s22841_s2 = inlined_call_operand.vmem [shape: f32[9,32], index: 2, kind: input, shape index: {}]   ;;  %s22842_s3 = inlined_call_operand.vmem [shape: f32[2,32,96], index: 3, kind: input, shape index: {}]   ;;  %s22843_s4 = inlined_call_operand.vmem [shape: f32[2,1,96], index: 4, kind: input, shape index: {}]   ;;  %s22844_s5 = inlined_call_operand.vmem [shape: f32[2,32,32], index: 5, kind: input, shape index: {}]   ;;  %s22845_s6 = inlined_call_operand.vmem [shape: f32[2,1,32], index: 6, kind: input, shape index: {}]   ;;  %s22846_s7 = inlined_call_operand.vmem [shape: f32[2,1,32], index: 7, kind: input, shape index: {}]   ;;  %s22847_s8 = inlined_call_operand.vmem [shape: f32[2,1,32], index: 8, kind: input, shape index: {}]   ;;  %s22848_s9 = inlined_call_operand.vmem [shape: f32[2,32,64], index: 9, kind: input, shape index: {}]   ;;  %s22849_s10 = inlined_call_operand.vmem [shape: f32[2,1,64], index: 10, kind: input, shape index: {}]   ;;  %s22850_s11 = inlined_call_operand.vmem [shape: f32[2,64,32], index: 11, kind: input, shape index: {}]   ;;  %s22851_s12 = inlined_call_operand.vmem [shape: f32[2,1,32], index: 12, kind: input, shape index: {}]   ;;  %s22852_s13 = inlined_call_operand.vmem [shape: f32[2,1,32], index: 13, kind: input, shape index: {}]   ;;  %s22853_s14 = inlined_call_operand.vmem [shape: f32[2,1,32], index: 14, kind: input, shape index: {}]   ;;  %s22854_s15 = inlined_call_operand.vmem [shape: f32[32,4], index: 15, kind: input, shape index: {}]   ;;  %s22855_s16 = inlined_call_operand.vmem [shape: f32[1,4], index: 16, kind: input, shape index: {}]   ;;  %s22856_s17 = inlined_call_operand.vmem [shape: f32[2,9,4], index: 17, kind: output, shape index: {}]  }
   0x1   :  { %22873 = sst [smem:[#allocation2_spill]] %s22839_s0 }
   0x2   :  { %22874 = sst [smem:[#allocation3_spill]] %s22840_s1 }
   0x3 LB: > { %s17770_s25 = sadd.s32 4294967295, %s21550_s24   ;;  %p17774_p0 = scmp.ge.s32.totalorder %s21550_s24, 1  ;;  %s21550_s24 = sphi %s21654_s24, %s27_s24  }
   0x4   : > { %p487_p1 = scmp.lt.s32.totalorder %s21550_s24, 3 }
   0x6   : > { %p488_p2 = pnand %p17774_p0, %p487_p1 }
   0x7   : > { %s22875_s28 = sld [smem:[#allocation3_spill]] (!%p488_p2)  ;;  %vm564_vm0 = vcmask (!%p488_p2), 1043456   ;;  %p539_p3 = scmp.lt.s32.totalorder (!%p488_p2), %s17770_s25, 1  ;;  %vm557_vm1 = vcmask (!%p488_p2), 228352   ;;  %v1108_v47 = vld [vmem:[%s22842_s3] sm:$0xff] (!%p488_p2)  ;;  %v1109_v48 = vld [vmem:[%s22842_s3 + $0x8] sm:$0xff] (!%p488_p2) }
   0x8   : > { %491 = sbr.rel (%p488_p2) target bundleno = 7826 (0x1e92), region = 88  ;;  %s22876_s23 = sld [smem:[#allocation2_spill]] (!%p488_p2)  ;;  %v1127_v49 = vand.u32 (!%p488_p2), 4294901760, %v1108_v47  ;;  %v1130_v50 = vand.u32 (!%p488_p2), 4294901760, %v1109_v48  ;;  %v1110_v54 = vld [vmem:[%s22842_s3 + $0x10] sm:$0xff] (!%p488_p2)  ;;  %v1111_v55 = vld [vmem:[%s22842_s3 + $0x18] sm:$0xff] (!%p488_p2) }
   0x9   : > { %v1133_v56 = vand.u32 (!%p488_p2), 4294901760, %v1110_v54  ;;  %v1136_v57 = vand.u32 (!%p488_p2), 4294901760, %v1111_v55  ;;  %vm1119_vm2 = vcmask (!%p488_p2), 261120   ;;  %vm1672_vm3 = vcmask (!%p488_p2), 64512   ;;  %s21552_s30 = smov (!%p488_p2), 88   ;;  %s21553_s18 = smov (!%p488_p2), 96  }
   0xa   : > { %v21704_v51 = vpack.c.bf16 (!%p488_p2), %v1130_v50, %v1127_v49  ;;  %v1217_v52 = vsub.f32 (!%p488_p2), %v1108_v47, %v1127_v49  ;;  %v1224_v53 = vsub.f32 (!%p488_p2), %v1109_v48, %v1130_v50  ;;  %s21554_s19 = smov (!%p488_p2), 120   ;;  %vm2191_vm9 = vcmask (!%p488_p2), 65536   ;;  %s21556_s1 = smov (!%p488_p2), 64  }
   0xb   : > { %v21714_v60 = vpack.c.bf16 (!%p488_p2), %v1136_v57, %v1133_v56  ;;  %v1231_v63 = vsub.f32 (!%p488_p2), %v1110_v54, %v1133_v56  ;;  %vm2187_vm10 = vcmask (!%p488_p2), 72704   ;;  %s22871_s21 = smov (!%p488_p2), 80   ;;  %s22869_s22 = smov (!%p488_p2), 112   ;;  %vm2222_vm11 = vcmask (!%p488_p2), 1040384  }
   0xc   : > { %20277 = vmatprep.subr.bf16.mxu1 (!%p488_p2), %v21704_v51  ;;  %v1218_v58 = vand.u32 (!%p488_p2), 4294901760, %v1217_v52  ;;  %v1225_v59 = vand.u32 (!%p488_p2), 4294901760, %v1224_v53  ;;  %s22863_s27 = smov (!%p488_p2), 104   ;;  %s22859_s29 = smov (!%p488_p2), 48   ;;  %vm7897_vm12 = vcmask (!%p488_p2), 253952   ;;  %vm8502_vm13 = vcmask (!%p488_p2), 523264  }
   0xd   : > { %v551_v0 = vld [vmem:[%s22875_s28] sm:$0xff] (!%p488_p2)  ;;  %v552_v1 = vld [vmem:[%s22875_s28 + $0x8] sm:$0xff] (!%p488_p2)  ;;  %v553_v2 = vld [vmem:[%s22875_s28 + $0x10] sm:$0xff] (!%p488_p2)  ;;  %20279 = vmatpush3.bf16.msra.mxu1 (!%p488_p2), %v21704_v51  ;;  %s22881_s0 = smov (!%p488_p2), 104   ;;  %vm17713_vm14 = vcmask (!%p488_p2), 24576   ;;  %vm17711_vm15 = vcmask (!%p488_p2), 31744  }
   0xe   : > { %v569_v3 = vand.u32 (!%p488_p2), 4294901760, %v551_v0  ;;  %v572_v4 = vand.u32 (!%p488_p2), 4294901760, %v552_v1  ;;  %v554_v5 = vld [vmem:[%s22875_s28 + $0x18] sm:$0xf] (!%p488_p2)  ;;  %v575_v6 = vand.u32 (!%p488_p2), 4294901760, %v553_v2  ;;  %v1219_v61 = vsub.f32 (!%p488_p2), %v1217_v52, %v1218_v58  ;;  %20281 = vmatprep.subr.bf16.mxu1 (!%p488_p2), %v21714_v60 }
   0xf   : > { %v566_v7 = vsel %vm564_vm0, %v554_v5, 0  ;;  %s22886_s25 = smov (!%p539_p3, %s17770_s25), 1  ;;  %v1226_v62 = vsub.f32 %v1224_v53, %v1225_v59 }
  0x10   : > { %v21676_v8 = vpack.c.bf16 %v572_v4, %v569_v3  ;;  %v578_v9 = vand.u32 4294901760, %v566_v7  ;;  %v659_v10 = vsub.f32 %v551_v0, %v569_v3  ;;  %v666_v11 = vsub.f32 %v552_v1, %v572_v4  ;;  %s22858_s20 = sshll.u32 %s22886_s25, 4 }
  0x11   : > { %v673_v12 = vsub.f32 %v553_v2, %v575_v6  ;;  %s543_s26 = scalar_lea.vmem %s22876_s23, %s22858_s20  ;;  %v1238_v0 = vsub.f32 %v1111_v55, %v1136_v57  ;;  %v1220_v1 = vand.u32 4294901760, %v1219_v61  ;;  %v1227_v2 = vand.u32 4294901760, %v1226_v62  ;;  %20283 = vmatpush3.bf16.msra.mxu1 %v21714_v60  ;;  %s22867_s23 = smov 56  }
  0x12   : > { %20229 = vmatprep.subr.bf16.mxu0 %v21676_v8  ;;  %v21680_v13 = vpack.c.bf16 %v578_v9, %v575_v6  ;;  %v660_v14 = vand.u32 4294901760, %v659_v10  ;;  %v667_v15 = vand.u32 4294901760, %v666_v11  ;;  %v680_v16 = vsub.f32 %v566_v7, %v578_v9  ;;  %v549_v17 = vld [vmem:[%s543_s26] sm:$0xff]  ;;  %v550_v18 = vld [vmem:[%s543_s26 + $0x8] sm:$0x1]  ;;  %s22865_s26 = smov 72  }
  0x13   : > { %20231 = vmatpush3.bf16.msra.mxu0 %v21676_v8  ;;  %v674_v19 = vand.u32 4294901760, %v673_v12  ;;  %v559_v20 = vsel %vm557_vm1, %v549_v17, 0  ;;  %v562_v21 = vsel %vm557_vm1, %v550_v18, 0  ;;  %v20244_v43 = vpack.c.bf16 %v666_v11, %v659_v10  ;;  %s22861_s20 = smov 40  }
  0x14   : > { %20233 = vmatprep.subr.bf16.mxu0 %v21680_v13  ;;  %v661_v22 = vsub.f32 %v659_v10, %v660_v14  ;;  %v668_v23 = vsub.f32 %v666_v11, %v667_v15  ;;  %v637_v24 = vand.u32 4294901760, %v559_v20  ;;  %v647_v25 = vand.u32 4294901760, %v562_v21 }
  0x15   : > { %v681_v26 = vand.u32 4294901760, %v680_v16  ;;  %v675_v29 = vsub.f32 %v673_v12, %v674_v19  ;;  %v20248_v44 = vpack.c.bf16 %v680_v16, %v673_v12  ;;  %v20260_v45 = vpack.c.bf16 %v667_v15, %v660_v14  ;;  %v556_v15 = vld [vmem:[%s22841_s2 + $0x8] sm:$0x1] }
  0x16   : > { %v662_v27 = vand.u32 4294901760, %v661_v22  ;;  %v669_v28 = vand.u32 4294901760, %v668_v23  ;;  %v638_v30 = vsub.f32 %v559_v20, %v637_v24  ;;  %v648_v31 = vsub.f32 %v562_v21, %v647_v25 }
  0x17   : > { %20235 = vmatpush3.bf16.msra.mxu0 %v21680_v13  ;;  %v682_v32 = vsub.f32 %v680_v16, %v681_v26  ;;  %v676_v36 = vand.u32 4294901760, %v675_v29  ;;  %v20264_v46 = vpack.c.bf16 %v681_v26, %v674_v19  ;;  %v1232_v3 = vand.u32 4294901760, %v1231_v63  ;;  %v555_v16 = vld [vmem:[%s22841_s2] sm:$0xff] }
  0x18   : > { %v20236_v33 = vpack.c.bf16 %v669_v28, %v662_v27  ;;  %v639_v34 = vand.u32 4294901760, %v638_v30  ;;  %v649_v35 = vand.u32 4294901760, %v648_v31  ;;  %v1239_v4 = vand.u32 4294901760, %v1238_v0 }
  0x19   : > { %v683_v37 = vand.u32 4294901760, %v682_v32  ;;  %v20284_v5 = vpack.c.bf16 %v1227_v2, %v1220_v1  ;;  %v1233_v6 = vsub.f32 %v1231_v63, %v1232_v3  ;;  %v20292_v11 = vpack.c.bf16 %v1224_v53, %v1217_v52 }
  0x1a   : > { %20237 = vmatprep.subr.bf16.mxu0 %v20236_v33  ;;  %v640_v38 = vsub.f32 %v638_v30, %v639_v34  ;;  %v650_v39 = vsub.f32 %v648_v31, %v649_v35  ;;  %v1240_v7 = vsub.f32 %v1238_v0, %v1239_v4  ;;  %v20296_v12 = vpack.c.bf16 %v1238_v0, %v1231_v63 }
  0x1b   : > { %v20240_v42 = vpack.c.bf16 %v683_v37, %v676_v36  ;;  %20285 = vmatprep.subr.bf16.mxu1 %v20284_v5  ;;  %v20312_v14 = vpack.c.bf16 %v1239_v4, %v1232_v3 }
  0x1c   : > { %v641_v40 = vand.u32 4294901760, %v640_v38  ;;  %v651_v41 = vand.u32 4294901760, %v650_v39  ;;  %v1241_v9 = vand.u32 4294901760, %v1240_v7 }
  0x1e   : > { %18700 = vmatprep.mubr.f32.mxu0 %v641_v40 }
  0x1f   : > { %18701 = vmatmul.mubr.f32.vlgmr.msra.gmra.mrb[0].mxu0 %v651_v41 }
  0x20   : > { %20239 = vmatpush3.bf16.msra.mxu0 %v20236_v33  ;;  %18711 = vmatprep.mubr.f32.mxu0 %v637_v24  ;;  %v17779_v33 = vld [vmem:[%s22843_s4] ss:$0 sm:$0xff] }
  0x21   : > { %20241 = vmatprep.subr.bf16.mxu0 %v20240_v42 }
  0x24   : > { %20243 = vmatpush3.bf16.msra.mxu0 %v20240_v42 }
  0x25   : > { %20245 = vmatprep.subr.bf16.mxu0 %v20244_v43 }
  0x27   : > { %18712 = vmatmul.mubr.f32.vlgmr.msra.gmra.mrb[0].mxu0 %v647_v25 }
  0x28   : > { %20247 = vmatpush3.bf16.msra.mxu0 %v20244_v43  ;;  %18722 = vmatprep.mubr.f32.mxu0 %v638_v30 }
  0x29   : > { %20249 = vmatprep.subr.bf16.mxu0 %v20248_v44 }
  0x2c   : > { %20251 = vmatpush3.bf16.msra.mxu0 %v20248_v44 }
  0x2d   : > { %20253 = vmatprep.subr.bf16.mxu0 %v21676_v8 }
  0x2f   : > { %18723 = vmatmul.mubr.f32.vlgmr.msra.gmra.mrb[0].mxu0 %v648_v31 }
  0x30   : > { %20255 = vmatpush3.bf16.msra.mxu0 %v21676_v8  ;;  %18733 = vmatprep.mubr.f32.mxu0 %v639_v34 }
  0x31   : > { %20257 = vmatprep.subr.bf16.mxu0 %v21680_v13 }
  0x34   : > { %20259 = vmatpush3.bf16.msra.mxu0 %v21680_v13 }
  0x35   : > { %20261 = vmatprep.subr.bf16.mxu0 %v20260_v45 }
  0x37   : > { %18734 = vmatmul.mubr.f32.vlgmr.msra.gmra.mrb[0].mxu0 %v649_v35 }
  0x38   : > { %20263 = vmatpush3.bf16.msra.mxu0 %v20260_v45  ;;  %18744 = vmatprep.mubr.f32.mxu0 %v637_v24 }
  0x39   : > { %20265 = vmatprep.subr.bf16.mxu0 %v20264_v46 }
  0x3c   : > { %20267 = vmatpush3.bf16.msra.mxu0 %v20264_v46 }
  0x3d   : > { %20269 = vmatprep.subr.bf16.mxu0 %v21676_v8 }
  0x3f   : > { %18745 = vmatmul.mubr.f32.vlgmr.msra.gmra.mrb[0].mxu0 %v647_v25 }
  0x40   : > { %20271 = vmatpush3.bf16.msra.mxu0 %v21676_v8  ;;  %18755 = vmatprep.mubr.f32.mxu0 %v637_v24  ;;  %v1234_v8 = vand.u32 4294901760, %v1233_v6 }
  0x41   : > { %20273 = vmatprep.subr.bf16.mxu0 %v21680_v13 }
  0x42   : > { %v20288_v10 = vpack.c.bf16 %v1241_v9, %v1234_v8 }
  0x44   : > { %20275 = vmatpush3.bf16.msra.mxu0 %v21680_v13  ;;  %v20308_v13 = vpack.c.bf16 %v1225_v59, %v1218_v58 }
  0x47   : > { %18756 = vmatmul.mubr.f32.vlgmr.msra.gmra.mrb[0].mxu0 %v647_v25 }
 0x11a   : > { %v18757_v17 = vpop.f32.mrb[0].mxu0 }
 0x11b   : > { %v21724_v18 = vadd.f32 %v18757_v17, %v556_v15  ;;  %v1086_v19 = vpop.f32.mrb[1].mxu0 }
 0x11c   : > { %v21726_v20 = vadd.f32 %v1086_v19, %v555_v16 }
 0x11d   : > { %v1124_v21 = vsel %vm1119_vm2, %v21724_v18, 0 }
 0x11e   : > { %v1205_v22 = vand.u32 4294901760, %v1124_v21  ;;  %v1121_v23 = vsel %vm1119_vm2, %v21726_v20, 0 }
 0x11f   : > { %v1195_v24 = vand.u32 4294901760, %v1121_v23 }
 0x120   : > { %v1206_v25 = vsub.f32 %v1124_v21, %v1205_v22 }
 0x121   : > { %v1196_v26 = vsub.f32 %v1121_v23, %v1195_v24 }
 0x122   : > { %v1207_v27 = vand.u32 4294901760, %v1206_v25 }
 0x123   : > { %v1197_v28 = vand.u32 4294901760, %v1196_v26 }
 0x124   : > { %v1208_v29 = vsub.f32 %v1206_v25, %v1207_v27 }
 0x125   : > { %v1198_v30 = vsub.f32 %v1196_v26, %v1197_v28 }
 0x126   : > { %v1209_v32 = vand.u32 4294901760, %v1208_v29 }
 0x127   : > { %v1199_v31 = vand.u32 4294901760, %v1198_v30 }
 0x129   : > { %18766 = vmatprep.mubr.f32.mxu1 %v1199_v31 }
 0x12a   : > { %18767 = vmatmul.mubr.f32.vlgmr.msra.gmra.mrb[0].mxu1 %v1209_v32 }
 0x12b   : > { %20287 = vmatpush3.bf16.msra.mxu1 %v20284_v5  ;;  %18777 = vmatprep.mubr.f32.mxu1 %v1195_v24 }
 0x12c   : > { %20289 = vmatprep.subr.bf16.mxu1 %v20288_v10 }
 0x12f   : > { %20291 = vmatpush3.bf16.msra.mxu1 %v20288_v10 }
 0x130   : > { %20293 = vmatprep.subr.bf16.mxu1 %v20292_v11 }
 0x132   : > { %18778 = vmatmul.mubr.f32.vlgmr.msra.gmra.mrb[0].mxu1 %v1205_v22 }
 0x133   : > { %20295 = vmatpush3.bf16.msra.mxu1 %v20292_v11  ;;  %18788 = vmatprep.mubr.f32.mxu1 %v1196_v26 }
 0x134   : > { %20297 = vmatprep.subr.bf16.mxu1 %v20296_v12 }
 0x137   : > { %20299 = vmatpush3.bf16.msra.mxu1 %v20296_v12 }
 0x138   : > { %20301 = vmatprep.subr.bf16.mxu1 %v21704_v51 }
 0x13a   : > { %18789 = vmatmul.mubr.f32.vlgmr.msra.gmra.mrb[0].mxu1 %v1206_v25 }
 0x13b   : > { %20303 = vmatpush3.bf16.msra.mxu1 %v21704_v51  ;;  %18799 = vmatprep.mubr.f32.mxu1 %v1197_v28 }
 0x13c   : > { %20305 = vmatprep.subr.bf16.mxu1 %v21714_v60 }
 0x13f   : > { %20307 = vmatpush3.bf16.msra.mxu1 %v21714_v60 }
 0x140   : > { %20309 = vmatprep.subr.bf16.mxu1 %v20308_v13 }
 0x142   : > { %18800 = vmatmul.mubr.f32.vlgmr.msra.gmra.mrb[0].mxu1 %v1207_v27 }
 0x143   : > { %20311 = vmatpush3.bf16.msra.mxu1 %v20308_v13  ;;  %18810 = vmatprep.mubr.f32.mxu1 %v1195_v24 }
 0x144   : > { %20313 = vmatprep.subr.bf16.mxu1 %v20312_v14 }
 0x147   : > { %20315 = vmatpush3.bf16.msra.mxu1 %v20312_v14 }
 0x148   : > { %20317 = vmatprep.subr.bf16.mxu1 %v21704_v51 }
 0x14a   : > { %18811 = vmatmul.mubr.f32.vlgmr.msra.gmra.mrb[0].mxu1 %v1205_v22 }
 0x14b   : > { %20319 = vmatpush3.bf16.msra.mxu1 %v21704_v51  ;;  %18821 = vmatprep.mubr.f32.mxu1 %v1195_v24 }
 0x14c   : > { %20321 = vmatprep.subr.bf16.mxu1 %v21714_v60 }
 0x14f   : > { %20323 = vmatpush3.bf16.msra.mxu1 %v21714_v60 }
 0x152   : > { %18822 = vmatmul.mubr.f32.vlgmr.msra.gmra.mrb[0].mxu1 %v1205_v22 }
 0x225   : > { %v18823_v34 = vpop.f32.mrb[0].mxu1 }
 0x226   : > { %v21743_v35 = vadd.f32 %v18823_v34, %v17779_v33  ;;  %v1644_v36 = vpop.f32.mrb[1].mxu1 }
 0x227   : > { %v21745_v37 = vadd.f32 %v17779_v33, %v1644_v36 }
 0x228   : > { %3230 = vrot.lane.b32.xlu1 %v21743_v35, %s21552_s30  ;;  %v1675_v44 = vsel %vm1672_vm3, %v21743_v35, 0 }
 0x229   : > { %1668 = vrot.lane.b32.xlu0 %v21745_v37, %s21553_s18  ;;  %v1673_v38 = vsel %vm1672_vm3, %v21745_v37, 0  ;;  %v21766_v46 = vand.u32 4294901760, %v1675_v44 }
 0x22a   : > { %v21753_v39 = vand.u32 4294901760, %v1673_v38 }
 0x22b   : > { %v1759_v51 = vsub.f32 %v1675_v44, %v21766_v46 }
 0x22c   : > { %3228 = vrot.lane.b32.xlu1 %v21745_v37, %s21552_s30  ;;  %v1749_v40 = vsub.f32 %v1673_v38, %v21753_v39 }
 0x22d   : > { %1670 = vrot.lane.b32.xlu0 %v21743_v35, %s21553_s18  ;;  %v1760_v57 = vand.u32 4294901760, %v1759_v51 }
 0x22e   : > { %v1750_v41 = vand.u32 4294901760, %v1749_v40 }
 0x22f   : > { %v1761_v61 = vsub.f32 %v1759_v51, %v1760_v57 }
 0x230   : > { %3226 = vrot.lane.b32.xlu1 %v21743_v35, %s21554_s19  ;;  %v1751_v42 = vsub.f32 %v1749_v40, %v1750_v41 }
 0x231   : > { %3224 = vrot.lane.b32.xlu0 %v21745_v37, %s21554_s19  ;;  %v1762_v0 = vand.u32 4294901760, %v1761_v61 }
 0x232   : > { %v1752_v43 = vand.u32 4294901760, %v1751_v42 }
 0x234   : > { %18828 = vmatprep.mubr.f32.mxu0 %v1752_v43 }
 0x29a   : > { %v3231_v3 = vpop.permute.xlu1 %3230 }
 0x29b   : > { %v1669_v45 = vpop.permute.xlu0 %1668  ;;  %v3238_v8 = vsel %vm1672_vm3, %v3231_v3, 0 }
 0x29c   : > { %v1677_v47 = vsel %vm1672_vm3, %v1669_v45, 0  ;;  %v3244_v11 = vand.u32 4294901760, %v3238_v8  ;;  %v21555_v45 = vmov -1e+30  }
 0x29d   : > { %v1682_v48 = vand.u32 4294901760, %v1677_v47 }
 0x29e   : > { %v3229_v4 = vpop.permute.xlu1 %3228  ;;  %v3336_v15 = vsub.f32 %v3238_v8, %v3244_v11 }
 0x29f   : > { %v1770_v49 = vsub.f32 %v1677_v47, %v1682_v48  ;;  %v1671_v50 = vpop.permute.xlu0 %1670  ;;  %v3236_v6 = vsel %vm1672_vm3, %v3229_v4, 0 }
 0x2a0   : > { %v1679_v52 = vsel %vm1672_vm3, %v1671_v50, 0  ;;  %v3241_v9 = vand.u32 4294901760, %v3236_v6  ;;  %v3337_v21 = vand.u32 4294901760, %v3336_v15 }
 0x2a1   : > { %v1771_v53 = vand.u32 4294901760, %v1770_v49  ;;  %v1685_v54 = vand.u32 4294901760, %v1679_v52 }
 0x2a2   : > { %v3329_v13 = vsub.f32 %v3236_v6, %v3241_v9  ;;  %v3227_v14 = vpop.permute.xlu1 %3226  ;;  %v20372_v24 = vpack.c.bf16 %v3244_v11, %v3241_v9  ;;  %v3338_v26 = vsub.f32 %v3336_v15, %v3337_v21 }
 0x2a3   : > { %v20324_v55 = vpack.c.bf16 %v1685_v54, %v1682_v48  ;;  %v1777_v56 = vsub.f32 %v1679_v52, %v1685_v54  ;;  %v1772_v58 = vsub.f32 %v1770_v49, %v1771_v53  ;;  %v3225_v7 = vpop.permute.xlu0 %3224  ;;  %v3234_v16 = vsel %vm1672_vm3, %v3227_v14, 0 }
 0x2a4   : > { %v3232_v10 = vsel %vm1672_vm3, %v3225_v7, 0  ;;  %v3330_v19 = vand.u32 4294901760, %v3329_v13  ;;  %v3317_v22 = vand.u32 4294901760, %v3234_v16  ;;  %v3339_v31 = vand.u32 4294901760, %v3338_v26 }
 0x2a5   : > { %v1778_v59 = vand.u32 4294901760, %v1777_v56  ;;  %20325 = vmatprep.subr.bf16.mxu0 %v20324_v55  ;;  %v1773_v62 = vand.u32 4294901760, %v1772_v58  ;;  %v20332_v2 = vpack.c.bf16 %v1777_v56, %v1770_v49  ;;  %v3307_v12 = vand.u32 4294901760, %v3232_v10 }
 0x2a6   : > { %20327 = vmatpush3.bf16.xpose.msra.mxu0 %v20324_v55  ;;  %v3331_v25 = vsub.f32 %v3329_v13, %v3330_v19  ;;  %v3318_v27 = vsub.f32 %v3234_v16, %v3317_v22  ;;  %v20380_v38 = vpack.c.bf16 %v3336_v15, %v3329_v13 }
 0x2a7   : > { %v1779_v60 = vsub.f32 %v1777_v56, %v1778_v59  ;;  %v20340_v5 = vpack.c.bf16 %v1778_v59, %v1771_v53  ;;  %v3308_v17 = vsub.f32 %v3232_v10, %v3307_v12 }
 0x2a8   : > { %v3332_v29 = vand.u32 4294901760, %v3331_v25  ;;  %v3319_v30 = vand.u32 4294901760, %v3318_v27 }
 0x2a9   : > { %v1780_v63 = vand.u32 4294901760, %v1779_v60  ;;  %v3309_v23 = vand.u32 4294901760, %v3308_v17 }
 0x2aa   : > { %v20376_v33 = vpack.c.bf16 %v3339_v31, %v3332_v29  ;;  %v3320_v34 = vsub.f32 %v3318_v27, %v3319_v30 }
 0x2ab   : > { %v20328_v1 = vpack.c.bf16 %v1780_v63, %v1773_v62  ;;  %v3310_v28 = vsub.f32 %v3308_v17, %v3309_v23 }
 0x2ac   : > { %v3321_v36 = vand.u32 4294901760, %v3320_v34 }
 0x2ad   : > { %18829 = vmatmul.mubr.f32.vlgmr.msra.gmra.mrb[2].mxu0 %v1762_v0  ;;  %20329 = vmatprep.subr.bf16.mxu0 %v20328_v1  ;;  %v3311_v32 = vand.u32 4294901760, %v3310_v28 }
 0x2ae   : > { %20331 = vmatpush3.bf16.xpose.msra.mxu0 %v20328_v1  ;;  %18835 = vmatprep.mubr.f32.mxu0 %v21753_v39 }
 0x2af   : > { %20333 = vmatprep.subr.bf16.mxu0 %v20332_v2 }
 0x2b5   : > { %18836 = vmatmul.mubr.f32.vlgmr.msra.gmra.mrb[2].mxu0 %v21766_v46 }
 0x2b6   : > { %20335 = vmatpush3.bf16.xpose.msra.mxu0 %v20332_v2  ;;  %18842 = vmatprep.mubr.f32.mxu0 %v1749_v40  ;;  %v1096_v40 = vlaneseq }
 0x2b7   : > { %20337 = vmatprep.subr.bf16.mxu0 %v20324_v55 }
 0x2b8   : > { %v1100_v43 = vand.u32 127, %v1096_v40 }
 0x2ba   : > { %vm1101_vm4 = vcmp.eq.s32.totalorder %v1100_v43, 0 }
 0x2bd   : > { %18843 = vmatmul.mubr.f32.vlgmr.msra.gmra.mrb[2].mxu0 %v1759_v51 }
 0x2be   : > { %20339 = vmatpush3.bf16.xpose.msra.mxu0 %v20324_v55  ;;  %18849 = vmatprep.mubr.f32.mxu0 %v1750_v41  ;;  %v1097_v41 = vshrl.u32 %v1096_v40, 7 }
 0x2bf   : > { %20341 = vmatprep.subr.bf16.mxu0 %v20340_v5 }
 0x2c0   : > { %v1098_v42 = vadd.s32 8, %v1097_v41  ;;  %vm1102_vm6 = vcmp.eq.s32.totalorder %v1100_v43, %v1097_v41 }
 0x2c1   : > { %vm1104_vm8 = vmor %vm1101_vm4, %vm1102_vm6 }
 0x2c2   : > { %vm1103_vm5 = vcmp.eq.s32.totalorder %v1100_v43, %v1098_v42  ;;  %v21783_v49 = vsel %vm1104_vm8, 0.0, %v21555_v45 }
 0x2c3   : > { %vm1105_vm7 = vmor %vm1101_vm4, %vm1103_vm5 }
 0x2c5   : > { %18850 = vmatmul.mubr.f32.vlgmr.msra.gmra.mrb[2].mxu0 %v1760_v57 }
 0x2c6   : > { %20343 = vmatpush3.bf16.xpose.msra.mxu0 %v20340_v5  ;;  %18856 = vmatprep.mubr.f32.mxu0 %v21753_v39 }
 0x2c7   : > { %20345 = vmatprep.subr.bf16.mxu0 %v20324_v55 }
 0x2cd   : > { %18857 = vmatmul.mubr.f32.vlgmr.msra.gmra.mrb[2].mxu0 %v21766_v46 }
 0x2ce   : > { %20347 = vmatpush3.bf16.xpose.msra.mxu0 %v20324_v55  ;;  %18863 = vmatprep.mubr.f32.mxu0 %v21753_v39  ;;  %v20388_v39 = vpack.c.bf16 %v3337_v21, %v3330_v19 }
 0x2cf   : > { %20373 = vmatprep.subr.bf16.mxu0 %v20372_v24 }
 0x2d5   : > { %18864 = vmatmul.mubr.f32.vlgmr.msra.gmra.mrb[2].mxu0 %v21766_v46  ;;  %v21781_v46 = vsel %vm1105_vm7, 0.0, %v21555_v45 }
 0x2d6   : > { %20375 = vmatpush3.bf16.xpose.msra.mxu0 %v20372_v24  ;;  %18942 = vmatprep.mubr.f32.mxu0 %v3311_v32 }
 0x2d7   : > { %20377 = vmatprep.subr.bf16.mxu0 %v20376_v33 }
 0x2dd   : > { %18943 = vmatmul.mubr.f32.vlgmr.msra.gmra.mrb[4].mxu0 %v3321_v36 }
 0x2de   : > { %20379 = vmatpush3.bf16.xpose.msra.mxu0 %v20376_v33  ;;  %18949 = vmatprep.mubr.f32.mxu0 %v3307_v12 }
 0x2df   : > { %20381 = vmatprep.subr.bf16.mxu0 %v20380_v38 }
 0x2e5   : > { %18950 = vmatmul.mubr.f32.vlgmr.msra.gmra.mrb[4].mxu0 %v3317_v22 }
 0x2e6   : > { %20383 = vmatpush3.bf16.xpose.msra.mxu0 %v20380_v38  ;;  %18956 = vmatprep.mubr.f32.mxu0 %v3308_v17 }
 0x2e7   : > { %20385 = vmatprep.subr.bf16.mxu0 %v20372_v24 }
 0x2ed   : > { %18957 = vmatmul.mubr.f32.vlgmr.msra.gmra.mrb[4].mxu0 %v3318_v27 }
 0x2ee   : > { %20387 = vmatpush3.bf16.xpose.msra.mxu0 %v20372_v24  ;;  %18963 = vmatprep.mubr.f32.mxu0 %v3309_v23 }
 0x2ef   : > { %20389 = vmatprep.subr.bf16.mxu0 %v20388_v39 }
 0x2f5   : > { %18964 = vmatmul.mubr.f32.vlgmr.msra.gmra.mrb[4].mxu0 %v3319_v30 }
 0x2f6   : > { %20391 = vmatpush3.bf16.xpose.msra.mxu0 %v20388_v39  ;;  %18970 = vmatprep.mubr.f32.mxu0 %v3307_v12 }
 0x2f7   : > { %20393 = vmatprep.subr.bf16.mxu0 %v20372_v24 }
 0x2fd   : > { %18971 = vmatmul.mubr.f32.vlgmr.msra.gmra.mrb[4].mxu0 %v3317_v22 }
 0x2fe   : > { %20395 = vmatpush3.bf16.xpose.msra.mxu0 %v20372_v24  ;;  %18977 = vmatprep.mubr.f32.mxu0 %v3307_v12 }
 0x305   : > { %18978 = vmatmul.mubr.f32.vlgmr.msra.gmra.mrb[4].mxu0 %v3317_v22 }
 0x3a8   : > { %v18865_v44 = vpop.f32.mrb[2].mxu0 }
 0x3a9   : > { %v2184_v47 = vmul.f32 0.35355338, %v18865_v44  ;;  %v2173_v48 = vpop.f32.mrb[3].mxu0 }
 0x3aa   : > { %v2183_v50 = vmul.f32 0.35355338, %v2173_v48 }
 0x3ab   : > { %v2186_v51 = vadd.f32 %v2184_v47, %v21781_v46 }
 0x3ac   : > { %v2185_v52 = vadd.f32 %v2183_v50, %v21783_v49 }
 0x3ad   : > { %v2192_v53 = vsel %vm2191_vm9, %v2186_v51, -inf }
 0x3ae   : > { %2193 = vmax.xlane.f32.xlu1 %v2192_v53  ;;  %v2188_v54 = vsel %vm2187_vm10, %v2185_v52, -inf }
 0x3af   : > { %2189 = vmax.xlane.f32.xlu0 %v2188_v54 }
 0x3bf   : > { %2213 = vrot.lane.b32.xlu1 %v21743_v35, %s21556_s1 }
 0x3c3   : > { %4784 = vrot.lane.b32.xlu1 %v21745_v37, %s22871_s21 }
 0x3c7   : > { %4786 = vrot.lane.b32.xlu1 %v21743_v35, %s22871_s21 }
 0x3cb   : > { %4782 = vrot.lane.b32.xlu1 %v21743_v35, %s22869_s22 }
 0x3d8   : > { %v18979_v55 = vpop.f32.mrb[4].mxu0 }
 0x3d9   : > { %v3732_v56 = vpop.f32.mrb[5].mxu0  ;;  %v3743_v57 = vmul.f32 0.35355338, %v18979_v55 }
 0x3da   : > { %v3742_v31 = vmul.f32 0.35355338, %v3732_v56 }
 0x3db   : > { %v3745_v58 = vadd.f32 %v3743_v57, %v21781_v46 }
 0x3dc   : > { %v21835_v34 = vadd.f32 %v3742_v31, %v21783_v49 }
 0x3dd   : > { %v3749_v59 = vsel %vm2191_vm9, %v3745_v58, -inf }
 0x3de   : > { %v3746_v40 = vsel %vm2187_vm10, %v21835_v34, -inf }
 0x3ef   : > { %3750 = vmax.xlane.f32.xlu1 %v3749_v59 }
 0x400   : > { %3770 = vrot.lane.b32.xlu1 %v21743_v35, %s22867_s23 }
 0x404   : > { %6340 = vrot.lane.b32.xlu1 %v21745_v37, %s22865_s26 }
 0x408   : > { %6342 = vrot.lane.b32.xlu1 %v21743_v35, %s22865_s26 }
 0x40c   : > { %6338 = vrot.lane.b32.xlu1 %v21743_v35, %s22863_s27 }
 0x43b   : > { %v2194_v60 = vpop.xlane.xlu1 %2193 }
 0x43c   : > { %v2196_v61 = vsub.f32 %v2186_v51, %v2194_v60  ;;  %v2190_v62 = vpop.xlane.xlu0 %2189 }
 0x43d   : > { %v2195_v63 = vsub.f32 %v2185_v52, %v2190_v62 }
 0x43e   : > { %v2199_v0 = vmul.f32 1.442695, %v2196_v61 }
 0x43f   : > { %v2197_v1 = vmul.f32 1.442695, %v2195_v63  ;;  %v2214_v2 = vpop.permute.xlu1 %2213 }
 0x440   : > { %21464 = vpow2.f32 %v2199_v0  ;;  %v2223_v53 = vsel %vm2222_vm11, %v2214_v2, 0 }
 0x441   : > { %21466 = vpow2.f32 %v2197_v1  ;;  %v2229_v55 = vand.u32 4294901760, %v2223_v53 }
 0x443   : > { %v4785_v3 = vpop.permute.xlu1 %4784 }
 0x444   : > { %v4792_v4 = vsel %vm1672_vm3, %v4785_v3, 0 }
 0x445   : > { %v4797_v5 = vand.u32 4294901760, %v4792_v4 }
 0x447   : > { %v4885_v6 = vsub.f32 %v4792_v4, %v4797_v5  ;;  %v4787_v7 = vpop.permute.xlu1 %4786 }
 0x448   : > { %v4794_v8 = vsel %vm1672_vm3, %v4787_v7, 0 }
 0x449   : > { %v4886_v9 = vand.u32 4294901760, %v4885_v6  ;;  %v4800_v10 = vand.u32 4294901760, %v4794_v8 }
 0x44a   : > { %v21809_v11 = vpop.eup %21464 }
 0x44b   : > { %v21811_v12 = vpack.c.bf16 %v4800_v10, %v4797_v5  ;;  %v4892_v13 = vsub.f32 %v4794_v8, %v4800_v10  ;;  %v2204_v14 = vsel %vm2191_vm9, %v21809_v11, 0.0  ;;  %v21815_v15 = vpop.eup %21466  ;;  %v4887_v16 = vsub.f32 %v4885_v6, %v4886_v9  ;;  %v4783_v27 = vpop.permute.xlu1 %4782 }
 0x44c   : > { %2205 = vadd.xlane.f32.xlu0 %v2204_v14  ;;  %v2201_v22 = vsel %vm2187_vm10, %v21815_v15, 0.0  ;;  %v4790_v56 = vsel %vm1672_vm3, %v4783_v27, 0 }
 0x44d   : > { %v4893_v17 = vand.u32 4294901760, %v4892_v13  ;;  %20421 = vmatprep.subr.bf16.mxu0 %v21811_v12  ;;  %v21818_v19 = vpack.c.bf16 %v4892_v13, %v4885_v6  ;;  %v4888_v24 = vand.u32 4294901760, %v4887_v16  ;;  %v21877_v59 = vand.u32 4294901760, %v4790_v56 }
 0x44e   : > { %20423 = vmatpush3.bf16.xpose.msra.mxu0 %v21811_v12 }
 0x44f   : > { %v4894_v21 = vsub.f32 %v4892_v13, %v4893_v17  ;;  %v21823_v23 = vpack.c.bf16 %v4893_v17, %v4886_v9  ;;  %v21881_v0 = vsub.f32 %v4790_v56, %v21877_v59 }
 0x450   : > { %2202 = vadd.xlane.f32.xlu0 %v2201_v22 }
 0x451   : > { %v4895_v25 = vand.u32 4294901760, %v4894_v21  ;;  %v4875_v13 = vand.u32 4294901760, %v21881_v0 }
 0x453   : > { %v21825_v26 = vpack.c.bf16 %v4895_v25, %v4888_v24 }
 0x455   : > { %20425 = vmatprep.subr.bf16.mxu0 %v21825_v26 }
 0x466   : > { %2211 = vrot.lane.b32.xlu0 %v21745_v37, %s21556_s1 }
 0x46a   : > { %4780 = vrot.lane.b32.xlu0 %v21745_v37, %s22869_s22  ;;  %s22882_s22 = smov 48  }
 0x47c   : > { %v3751_v28 = vpop.xlane.xlu1 %3750 }
 0x47d   : > { %v3753_v29 = vsub.f32 %v3745_v58, %v3751_v28  ;;  %v21875_v58 = vsub.f32 %v2223_v53, %v2229_v55  ;;  %v4876_v28 = vsub.f32 %v21881_v0, %v4875_v13 }
 0x47f   : > { %v3756_v30 = vmul.f32 1.442695, %v3753_v29  ;;  %v2322_v61 = vand.u32 4294901760, %v21875_v58 }
 0x480   : > { %v21832_v32 = vpop.permute.xlu1 %3770 }
 0x481   : > { %21468 = vpow2.f32 %v3756_v30  ;;  %v2323_v5 = vsub.f32 %v21875_v58, %v2322_v61 }
 0x483   : > { %v2324_v22 = vand.u32 4294901760, %v2323_v5 }
 0x484   : > { %v6341_v33 = vpop.permute.xlu1 %6340 }
 0x485   : > { %v21838_v36 = vsel %vm1672_vm3, %v6341_v33, 0 }
 0x486   : > { %v6353_v38 = vand.u32 4294901760, %v21838_v36 }
 0x488   : > { %v6343_v39 = vpop.permute.xlu1 %6342  ;;  %v21849_v42 = vsub.f32 %v21838_v36, %v6353_v38 }
 0x489   : > { %v21844_v41 = vsel %vm1672_vm3, %v6343_v39, 0  ;;  %3747 = vmax.xlane.f32.xlu0 %v3746_v40 }
 0x48a   : > { %v6356_v43 = vand.u32 4294901760, %v21844_v41  ;;  %v6442_v48 = vand.u32 4294901760, %v21849_v42 }
 0x48b   : > { %v21852_v44 = vpop.eup %21468 }
 0x48c   : > { %v21857_v45 = vsub.f32 %v21844_v41, %v6356_v43  ;;  %v3761_v47 = vsel %vm2191_vm9, %v21852_v44, 0.0 }
 0x48d   : > { %3762 = vadd.xlane.f32.xlu0 %v3761_v47  ;;  %v4877_v47 = vand.u32 4294901760, %v4876_v28 }
 0x48e   : > { %v6449_v50 = vand.u32 4294901760, %v21857_v45  ;;  %v21865_v51 = vpack.c.bf16 %v21857_v45, %v21849_v42 }
 0x490   : > { %v21871_v52 = vpack.c.bf16 %v6449_v50, %v6442_v48 }
 0x4d9   : > { %v2206_v54 = vpop.xlane.xlu0 %2205 }
 0x4da   : > { %21470 = vrcp.f32 %v2206_v54 }
 0x4dd   : > { %v2203_v57 = vpop.xlane.xlu0 %2202 }
 0x4de   : > { %21472 = vrcp.f32 %v2203_v57 }
 0x4e1   : > { %v2212_v60 = vpop.permute.xlu0 %2211 }
 0x4e2   : > { %v2226_v62 = vand.u32 4294901760, %v2212_v60 }
 0x4e4   : > { %v21471_v63 = vpop.eup %21470  ;;  %v21883_v1 = vpack.c.bf16 %v2229_v55, %v2226_v62  ;;  %v2314_v2 = vsub.f32 %v2212_v60, %v2226_v62 }
 0x4e5   : > { %v2210_v3 = vmul.f32 %v21471_v63, %v21809_v11  ;;  %v4781_v4 = vpop.permute.xlu0 %4780  ;;  %v3779_v63 = vsel %vm2222_vm11, %v21832_v32, 0 }
 0x4e6   : > { %v2315_v6 = vand.u32 4294901760, %v2314_v2  ;;  %v4788_v7 = vsel %vm1672_vm3, %v4781_v4, 0  ;;  %20349 = vmatprep.subr.bf16.mxu1 %v21883_v1  ;;  %v20356_v57 = vpack.c.bf16 %v21875_v58, %v2314_v2  ;;  %v6450_v58 = vsub.f32 %v21857_v45, %v6449_v50 }
 0x4e7   : > { %v21891_v8 = vand.u32 4294901760, %v4788_v7  ;;  %20351 = vmatpush3.bf16.msra.mxu1 %v21883_v1  ;;  %v2220_v9 = vsel %vm2187_vm10, %v2210_v3, 0 }
 0x4e8   : > { %v21473_v10 = vpop.eup %21472  ;;  %v2316_v11 = vsub.f32 %v2314_v2, %v2315_v6  ;;  %v21896_v14 = vand.u32 4294901760, %v2220_v9  ;;  %v6451_v41 = vand.u32 4294901760, %v6450_v58  ;;  %v6339_v2 = vpop.permute.xlu1 %6338 }
 0x4e9   : > { %v2208_v16 = vmul.f32 %v21473_v10, %v21815_v15  ;;  %v4864_v17 = vsub.f32 %v4788_v7, %v21891_v8  ;;  %v6346_v3 = vsel %vm1672_vm3, %v6339_v2, 0 }
 0x4ea   : > { %v2317_v21 = vand.u32 4294901760, %v2316_v11  ;;  %v2303_v24 = vsub.f32 %v2220_v9, %v21896_v14 }
 0x4eb   : > { %v4865_v25 = vand.u32 4294901760, %v4864_v17  ;;  %v2217_v27 = vsel %vm2187_vm10, %v2208_v16, 0 }
 0x4ec   : > { %v20352_v29 = vpack.c.bf16 %v2324_v22, %v2317_v21  ;;  %v2292_v30 = vand.u32 4294901760, %v2217_v27  ;;  %v2304_v33 = vand.u32 4294901760, %v2303_v24 }
 0x4ed   : > { %v4866_v31 = vsub.f32 %v4864_v17, %v4865_v25 }
 0x4ee   : > { %20353 = vmatprep.subr.bf16.mxu1 %v20352_v29  ;;  %v2293_v39 = vsub.f32 %v2217_v27, %v2292_v30  ;;  %v2305_v53 = vsub.f32 %v2303_v24, %v2304_v33 }
 0x4ef   : > { %v4867_v40 = vand.u32 4294901760, %v4866_v31 }
 0x4f0   : > { %v2294_v15 = vand.u32 4294901760, %v2293_v39  ;;  %v2306_v56 = vand.u32 4294901760, %v2305_v53 }
 0x4f1   : > { %19056 = vmatprep.mubr.f32.mxu0 %v4867_v40 }
 0x4f2   : > { %19057 = vmatmul.mubr.f32.vlgmr.msra.gmra.mrb[6].mxu0 %v4877_v47  ;;  %v2295_v54 = vsub.f32 %v2293_v39, %v2294_v15 }
 0x4f3   : > { %20427 = vmatpush3.bf16.xpose.msra.mxu0 %v21825_v26  ;;  %19063 = vmatprep.mubr.f32.mxu0 %v21891_v8  ;;  %v21926_v26 = vpack.c.bf16 %v6356_v43, %v6353_v38 }
 0x4f4   : > { %20429 = vmatprep.subr.bf16.mxu0 %v21818_v19  ;;  %v2296_v55 = vand.u32 4294901760, %v2295_v54 }
 0x4f6   : > { %18870 = vmatprep.mubr.f32.mxu1 %v2296_v55 }
 0x4f7   : > { %18871 = vmatmul.mubr.f32.vlgmr.msra.gmra.mrb[2].mxu1 %v2306_v56 }
 0x4f8   : > { %20355 = vmatpush3.bf16.msra.mxu1 %v20352_v29  ;;  %18877 = vmatprep.mubr.f32.mxu1 %v2292_v30 }
 0x4f9   : > { %20357 = vmatprep.subr.bf16.mxu1 %v20356_v57 }
 0x4fa   : > { %19064 = vmatmul.mubr.f32.vlgmr.msra.gmra.mrb[6].mxu0 %v21877_v59 }
 0x4fb   : > { %20431 = vmatpush3.bf16.xpose.msra.mxu0 %v21818_v19  ;;  %19070 = vmatprep.mubr.f32.mxu0 %v4864_v17  ;;  %v20364_v19 = vpack.c.bf16 %v2322_v61, %v2315_v6  ;;  %v6429_v6 = vand.u32 4294901760, %v6346_v3 }
 0x4fc   : > { %20433 = vmatprep.subr.bf16.mxu0 %v21811_v12 }
 0x4fd   : > { %v6430_v10 = vsub.f32 %v6346_v3, %v6429_v6 }
 0x4ff   : > { %18878 = vmatmul.mubr.f32.vlgmr.msra.gmra.mrb[2].mxu1 %v21896_v14 }
 0x500   : > { %20359 = vmatpush3.bf16.msra.mxu1 %v20356_v57  ;;  %18884 = vmatprep.mubr.f32.mxu1 %v2293_v39 }
 0x501   : > { %20361 = vmatprep.subr.bf16.mxu1 %v21883_v1 }
 0x502   : > { %19071 = vmatmul.mubr.f32.vlgmr.msra.gmra.mrb[6].mxu0 %v21881_v0 }
 0x503   : > { %20435 = vmatpush3.bf16.xpose.msra.mxu0 %v21811_v12  ;;  %19077 = vmatprep.mubr.f32.mxu0 %v4865_v25 }
 0x504   : > { %20437 = vmatprep.subr.bf16.mxu0 %v21823_v23 }
 0x507   : > { %18885 = vmatmul.mubr.f32.vlgmr.msra.gmra.mrb[2].mxu1 %v2303_v24  ;;  %v6431_v24 = vand.u32 4294901760, %v6430_v10 }
 0x508   : > { %20363 = vmatpush3.bf16.msra.mxu1 %v21883_v1  ;;  %18891 = vmatprep.mubr.f32.mxu1 %v2294_v15 }
 0x509   : > { %20365 = vmatprep.subr.bf16.mxu1 %v20364_v19 }
 0x50a   : > { %19078 = vmatmul.mubr.f32.vlgmr.msra.gmra.mrb[6].mxu0 %v4875_v13 }
 0x50b   : > { %20439 = vmatpush3.bf16.xpose.msra.mxu0 %v21823_v23  ;;  %19084 = vmatprep.mubr.f32.mxu0 %v21891_v8  ;;  %v6443_v23 = vsub.f32 %v21849_v42, %v6442_v48  ;;  %v1654_v48 = vld [vmem:[%s22844_s5] sm:$0xff] }
 0x50c   : > { %20441 = vmatprep.subr.bf16.mxu0 %v21811_v12  ;;  %v21955_v50 = vand.u32 4294901760, %v1654_v48 }
 0x50d   : > { %v6444_v43 = vand.u32 4294901760, %v6443_v23 }
 0x50f   : > { %18892 = vmatmul.mubr.f32.vlgmr.msra.gmra.mrb[2].mxu1 %v2304_v33  ;;  %v6432_v33 = vsub.f32 %v6430_v10, %v6431_v24 }
 0x510   : > { %20367 = vmatpush3.bf16.msra.mxu1 %v20364_v19  ;;  %18898 = vmatprep.mubr.f32.mxu1 %v2292_v30 }
 0x511   : > { %20369 = vmatprep.subr.bf16.mxu1 %v21883_v1  ;;  %v6433_v15 = vand.u32 4294901760, %v6432_v33 }
 0x512   : > { %19085 = vmatmul.mubr.f32.vlgmr.msra.gmra.mrb[6].mxu0 %v21877_v59 }
 0x513   : > { %20443 = vmatpush3.bf16.xpose.msra.mxu0 %v21811_v12  ;;  %19091 = vmatprep.mubr.f32.mxu0 %v21891_v8  ;;  %v20472_v12 = vpack.c.bf16 %v6451_v41, %v6444_v43 }
 0x514   : > { %20469 = vmatprep.subr.bf16.mxu0 %v21926_v26 }
 0x516   : > { %v3748_v36 = vpop.xlane.xlu0 %3747 }
 0x517   : > { %v3752_v38 = vsub.f32 %v21835_v34, %v3748_v36  ;;  %18899 = vmatmul.mubr.f32.vlgmr.msra.gmra.mrb[2].mxu1 %v21896_v14 }
 0x518   : > { %20371 = vmatpush3.bf16.msra.mxu1 %v21883_v1  ;;  %18905 = vmatprep.mubr.f32.mxu1 %v2292_v30  ;;  %v3785_v1 = vand.u32 4294901760, %v3779_v63 }
 0x519   : > { %v3754_v45 = vmul.f32 1.442695, %v3752_v38  ;;  %18908 = vmatprep.subr.mxu1 %v21955_v50 }
 0x51a   : > { %19092 = vmatmul.mubr.f32.vlgmr.msra.gmra.mrb[6].mxu0 %v21877_v59  ;;  %v21960_v59 = vsub.f32 %v1654_v48, %v21955_v50  ;;  %v21972_v0 = vpop.xlane.xlu0 %3762  ;;  %v3877_v5 = vsub.f32 %v3779_v63, %v3785_v1 }
 0x51b   : > { %21474 = vpow2.f32 %v3754_v45  ;;  %20471 = vmatpush3.bf16.xpose.msra.mxu0 %v21926_v26 }
 0x51c   : > { %20473 = vmatprep.subr.bf16.mxu0 %v20472_v12  ;;  %v21963_v60 = vand.u32 4294901760, %v21960_v59  ;;  %v3878_v8 = vand.u32 4294901760, %v3877_v5 }
 0x51e   : > { %v2823_v61 = vsub.f32 %v21960_v59, %v21963_v60  ;;  %v3879_v16 = vsub.f32 %v3877_v5, %v3878_v8 }
 0x51f   : > { %18906 = vmatmul.mubr.f32.vlgmr.msra.gmra.mrb[2].mxu1 %v21896_v14 }
 0x520   : > { %18909 = vmatpush3.msra.mxu1 %v21955_v50  ;;  %v21967_v62 = vand.u32 4294901760, %v2823_v61  ;;  %v3880_v30 = vand.u32 4294901760, %v3879_v16 }
 0x522   : > { %18913 = vmatprep.subr.mxu1 %v21967_v62 }
 0x525   : > { %v21944_v42 = vpop.eup %21474 }
 0x526   : > { %v3758_v34 = vsel %vm2187_vm10, %v21944_v42, 0.0 }
 0x527   : > { %3759 = vadd.xlane.f32.xlu0 %v3758_v34 }
 0x53d   : > { %3768 = vrot.lane.b32.xlu0 %v21745_v37, %s22867_s23 }
 0x541   : > { %6336 = vrot.lane.b32.xlu0 %v21745_v37, %s22863_s27  ;;  %s22883_s27 = smov 40  }
 0x5b4   : > { %v21975_v4 = vpop.xlane.xlu0 %3759 }
 0x5b5   : > { %21476 = vrcp.f32 %v21975_v4 }
 0x5b6   : > { %21478 = vrcp.f32 %v21972_v0 }
 0x5b8   : > { %v3769_v7 = vpop.permute.xlu0 %3768 }
 0x5b9   : > { %v3782_v9 = vand.u32 4294901760, %v3769_v7 }
 0x5bb   : > { %v21977_v13 = vpack.c.bf16 %v3785_v1, %v3782_v9  ;;  %v3870_v11 = vsub.f32 %v3769_v7, %v3782_v9 }
 0x5bc   : > { %v6337_v14 = vpop.permute.xlu0 %6336 }
 0x5bd   : > { %v3871_v32 = vand.u32 4294901760, %v3870_v11  ;;  %v6344_v17 = vsel %vm1672_vm3, %v6337_v14, 0  ;;  %v21980_v21 = vpack.c.bf16 %v3877_v5, %v3870_v11 }
 0x5be   : > { %v6419_v22 = vand.u32 4294901760, %v6344_v17 }
 0x5bf   : > { %v3872_v25 = vsub.f32 %v3870_v11, %v3871_v32  ;;  %v21982_v27 = vpack.c.bf16 %v3878_v8, %v3871_v32  ;;  %v21477_v2 = vpop.eup %21476 }
 0x5c0   : > { %v6420_v28 = vsub.f32 %v6344_v17, %v6419_v22  ;;  %v21479_v3 = vpop.eup %21478 }
 0x5c1   : > { %v3873_v29 = vand.u32 4294901760, %v3872_v25  ;;  %v3767_v4 = vmul.f32 %v21479_v3, %v21852_v44 }
 0x5c2   : > { %v6421_v31 = vand.u32 4294901760, %v6420_v28 }
 0x5c3   : > { %v21984_v39 = vpack.c.bf16 %v3880_v30, %v3873_v29 }
 0x5c4   : > { %v6422_v40 = vsub.f32 %v6420_v28, %v6421_v31 }
 0x5c6   : > { %v6423_v47 = vand.u32 4294901760, %v6422_v40 }
 0x5c8   : > { %19170 = vmatprep.mubr.f32.mxu0 %v6423_v47 }
 0x5c9   : > { %19171 = vmatmul.mubr.f32.vlgmr.msra.gmra.mrb[8].mxu0 %v6433_v15 }
 0x5ca   : > { %20475 = vmatpush3.bf16.xpose.msra.mxu0 %v20472_v12  ;;  %19177 = vmatprep.mubr.f32.mxu0 %v6419_v22 }
 0x5cb   : > { %20477 = vmatprep.subr.bf16.mxu0 %v21865_v51 }
 0x5d1   : > { %19178 = vmatmul.mubr.f32.vlgmr.msra.gmra.mrb[8].mxu0 %v6429_v6 }
 0x5d2   : > { %20479 = vmatpush3.bf16.xpose.msra.mxu0 %v21865_v51  ;;  %19184 = vmatprep.mubr.f32.mxu0 %v6420_v28 }
 0x5d3   : > { %20481 = vmatprep.subr.bf16.mxu0 %v21926_v26 }
 0x5d9   : > { %19185 = vmatmul.mubr.f32.vlgmr.msra.gmra.mrb[8].mxu0 %v6430_v10 }
 0x5da   : > { %20483 = vmatpush3.bf16.xpose.msra.mxu0 %v21926_v26  ;;  %19191 = vmatprep.mubr.f32.mxu0 %v6421_v31 }
 0x5db   : > { %20485 = vmatprep.subr.bf16.mxu0 %v21871_v52 }
 0x5e1   : > { %19192 = vmatmul.mubr.f32.vlgmr.msra.gmra.mrb[8].mxu0 %v6431_v24 }
 0x5e2   : > { %20487 = vmatpush3.bf16.xpose.msra.mxu0 %v21871_v52  ;;  %19198 = vmatprep.mubr.f32.mxu0 %v6419_v22 }
 0x5e3   : > { %20489 = vmatprep.subr.bf16.mxu0 %v21926_v26 }
 0x5e9   : > { %19199 = vmatmul.mubr.f32.vlgmr.msra.gmra.mrb[8].mxu0 %v6429_v6 }
 0x5ea   : > { %20491 = vmatpush3.bf16.xpose.msra.mxu0 %v21926_v26  ;;  %19205 = vmatprep.mubr.f32.mxu0 %v6419_v22 }
 0x5ed   : > { %v19093_v51 = vpop.f32.mrb[6].mxu0 }
 0x5ee   : > { %v5299_v53 = vmul.f32 0.35355338, %v19093_v51  ;;  %v5288_v54 = vpop.f32.mrb[7].mxu0 }
 0x5ef   : > { %v5298_v55 = vmul.f32 0.35355338, %v5288_v54 }
 0x5f0   : > { %v21995_v56 = vadd.f32 %v5299_v53, %v21781_v46 }
 0x5f1   : > { %19206 = vmatmul.mubr.f32.vlgmr.msra.gmra.mrb[8].mxu0 %v6429_v6  ;;  %v21998_v57 = vadd.f32 %v5298_v55, %v21783_v49 }
 0x5f2   : > { %v18907_v19 = vpop.f32.mrb[2].mxu1  ;;  %v5305_v52 = vsel %vm2191_vm9, %v21995_v56, -inf }
 0x5f3   : > { %v2731_v58 = vsel %vm1672_vm3, %v18907_v19, 0  ;;  %v2717_v23 = vpop.f32.mrb[3].mxu1  ;;  %5306 = vmax.xlane.f32.xlu1 %v5305_v52  ;;  %v5302_v26 = vsel %vm2187_vm10, %v21998_v57, -inf }
 0x5f4   : > { %v2809_v36 = vand.u32 4294901760, %v2731_v58  ;;  %v2728_v41 = vsel %vm1672_vm3, %v2717_v23, 0  ;;  %5303 = vmax.xlane.f32.xlu0 %v5302_v26 }
 0x5f5   : > { %v2799_v38 = vand.u32 4294901760, %v2728_v41 }
 0x5f6   : > { %v2810_v43 = vsub.f32 %v2731_v58, %v2809_v36 }
 0x5f7   : > { %v2800_v45 = vsub.f32 %v2728_v41, %v2799_v38 }
 0x5f8   : > { %v2811_v12 = vand.u32 4294901760, %v2810_v43 }
 0x5f9   : > { %v2801_v34 = vand.u32 4294901760, %v2800_v45 }
 0x5fa   : > { %v2812_v48 = vsub.f32 %v2810_v43, %v2811_v12 }
 0x5fb   : > { %v2802_v61 = vsub.f32 %v2800_v45, %v2801_v34 }
 0x5fc   : > { %v2813_v1 = vand.u32 4294901760, %v2812_v48 }
 0x5fd   : > { %v2803_v63 = vand.u32 4294901760, %v2802_v61 }
 0x5ff   : > { %18910 = vmatprep.mubr.f32.mxu1 %v2803_v63 }
 0x600   : > { %18911 = vmatmul.mubr.f32.vlgmr.msra.gmra.mrb[4].mxu1 %v2813_v1 }
 0x601   : > { %18914 = vmatpush3.msra.mxu1 %v21967_v62  ;;  %18915 = vmatprep.mubr.f32.mxu1 %v2799_v38  ;;  %v3765_v62 = vmul.f32 %v21477_v2, %v21944_v42 }
 0x602   : > { %18918 = vmatprep.subr.mxu1 %v21960_v59 }
 0x603   : > { %v3774_v0 = vsel %vm2187_vm10, %v3765_v62, 0 }
 0x604   : > { %5326 = vrot.lane.b32.xlu1 %v21743_v35, %s22859_s29  ;;  %v3848_v5 = vand.u32 4294901760, %v3774_v0 }
 0x606   : > { %v3849_v6 = vsub.f32 %v3774_v0, %v3848_v5 }
 0x608   : > { %18916 = vmatmul.mubr.f32.vlgmr.msra.gmra.mrb[4].mxu1 %v2809_v36  ;;  %v3850_v8 = vand.u32 4294901760, %v3849_v6 }
 0x609   : > { %18919 = vmatpush3.msra.mxu1 %v21960_v59  ;;  %18920 = vmatprep.mubr.f32.mxu1 %v2800_v45  ;;  %v3777_v59 = vsel %vm2187_vm10, %v3767_v4, 0 }
 0x60a   : > { %18923 = vmatprep.subr.mxu1 %v21955_v50  ;;  %v3858_v42 = vand.u32 4294901760, %v3777_v59  ;;  %v3851_v9 = vsub.f32 %v3849_v6, %v3850_v8 }
 0x60c   : > { %v3859_v7 = vsub.f32 %v3777_v59, %v3858_v42  ;;  %v3852_v11 = vand.u32 4294901760, %v3851_v9 }
 0x60e   : > { %v3860_v44 = vand.u32 4294901760, %v3859_v7 }
 0x610   : > { %18921 = vmatmul.mubr.f32.vlgmr.msra.gmra.mrb[4].mxu1 %v2810_v43  ;;  %v3861_v10 = vsub.f32 %v3859_v7, %v3860_v44 }
 0x611   : > { %18924 = vmatpush3.msra.mxu1 %v21955_v50  ;;  %18925 = vmatprep.mubr.f32.mxu1 %v2801_v34 }
 0x612   : > { %18928 = vmatprep.subr.mxu1 %v21963_v60 }
 0x618   : > { %18926 = vmatmul.mubr.f32.vlgmr.msra.gmra.mrb[4].mxu1 %v2811_v12 }
 0x619   : > { %18929 = vmatpush3.msra.mxu1 %v21963_v60  ;;  %18930 = vmatprep.mubr.f32.mxu1 %v2799_v38  ;;  %v3862_v60 = vand.u32 4294901760, %v3861_v10 }
 0x61a   : > { %18933 = vmatprep.subr.mxu1 %v21955_v50 }
 0x620   : > { %18931 = vmatmul.mubr.f32.vlgmr.msra.gmra.mrb[4].mxu1 %v2809_v36 }
 0x621   : > { %18934 = vmatpush3.msra.mxu1 %v21955_v50  ;;  %18935 = vmatprep.mubr.f32.mxu1 %v2799_v38 }
 0x622   : > { %20397 = vmatprep.subr.bf16.mxu1 %v21977_v13 }
 0x628   : > { %18936 = vmatmul.mubr.f32.vlgmr.msra.gmra.mrb[4].mxu1 %v2809_v36 }
 0x629   : > { %20399 = vmatpush3.bf16.msra.mxu1 %v21977_v13  ;;  %18984 = vmatprep.mubr.f32.mxu1 %v3852_v11 }
 0x62a   : > { %20401 = vmatprep.subr.bf16.mxu1 %v21984_v39 }
 0x62c   : > { %18985 = vmatmul.mubr.f32.vlgmr.msra.gmra.mrb[6].mxu1 %v3862_v60 }
 0x62d   : > { %20403 = vmatpush3.bf16.msra.mxu1 %v21984_v39  ;;  %18991 = vmatprep.mubr.f32.mxu1 %v3848_v5 }
 0x62e   : > { %20405 = vmatprep.subr.bf16.mxu1 %v21980_v21 }
 0x634   : > { %18992 = vmatmul.mubr.f32.vlgmr.msra.gmra.mrb[6].mxu1 %v3858_v42 }
 0x635   : > { %20407 = vmatpush3.bf16.msra.mxu1 %v21980_v21  ;;  %18998 = vmatprep.mubr.f32.mxu1 %v3849_v6 }
 0x636   : > { %20409 = vmatprep.subr.bf16.mxu1 %v21977_v13 }
 0x63c   : > { %18999 = vmatmul.mubr.f32.vlgmr.msra.gmra.mrb[6].mxu1 %v3859_v7 }
 0x63d   : > { %20411 = vmatpush3.bf16.msra.mxu1 %v21977_v13  ;;  %19005 = vmatprep.mubr.f32.mxu1 %v3850_v8 }
 0x63e   : > { %20413 = vmatprep.subr.bf16.mxu1 %v21982_v27 }
 0x644   : > { %19006 = vmatmul.mubr.f32.vlgmr.msra.gmra.mrb[6].mxu1 %v3860_v44 }
 0x645   : > { %20415 = vmatpush3.bf16.msra.mxu1 %v21982_v27  ;;  %19012 = vmatprep.mubr.f32.mxu1 %v3848_v5  ;;  %v1655_v27 = vld [vmem:[%s22844_s5 + $0x8] sm:$0xff] }
 0x646   : > { %20417 = vmatprep.subr.bf16.mxu1 %v21977_v13  ;;  %v22047_v28 = vand.u32 4294901760, %v1655_v27 }
 0x648   : > { %v4377_v29 = vsub.f32 %v1655_v27, %v22047_v28 }
 0x64a   : > { %v4378_v30 = vand.u32 4294901760, %v4377_v29 }
 0x64c   : > { %19013 = vmatmul.mubr.f32.vlgmr.msra.gmra.mrb[6].mxu1 %v3858_v42  ;;  %v4379_v31 = vsub.f32 %v4377_v29, %v4378_v30 }
 0x64d   : > { %20419 = vmatpush3.bf16.msra.mxu1 %v21977_v13  ;;  %19019 = vmatprep.mubr.f32.mxu1 %v3848_v5 }
 0x64e   : > { %19022 = vmatprep.subr.mxu1 %v22047_v28  ;;  %v4380_v33 = vand.u32 4294901760, %v4379_v31 }
 0x654   : > { %19020 = vmatmul.mubr.f32.vlgmr.msra.gmra.mrb[6].mxu1 %v3858_v42 }
 0x655   : > { %19023 = vmatpush3.msra.mxu1 %v22047_v28 }
 0x656   : > { %19027 = vmatprep.subr.mxu1 %v4380_v33 }
 0x680   : > { %v5307_v50 = vpop.xlane.xlu1 %5306 }
 0x681   : > { %v5309_v14 = vsub.f32 %v21995_v56, %v5307_v50  ;;  %v5304_v16 = vpop.xlane.xlu0 %5303 }
 0x682   : > { %v5308_v32 = vsub.f32 %v21998_v57, %v5304_v16 }
 0x683   : > { %v5312_v17 = vmul.f32 1.442695, %v5309_v14 }
 0x684   : > { %v5310_v21 = vmul.f32 1.442695, %v5308_v32  ;;  %v5327_v2 = vpop.permute.xlu1 %5326 }
 0x685   : > { %21480 = vpow2.f32 %v5312_v17  ;;  %v5335_v4 = vsel %vm2222_vm11, %v5327_v2, 0 }
 0x686   : > { %21482 = vpow2.f32 %v5310_v21  ;;  %v5341_v42 = vand.u32 4294901760, %v5335_v4 }
 0x688   : > { %v5433_v44 = vsub.f32 %v5335_v4, %v5341_v42 }
 0x68a   : > { %v5434_v60 = vand.u32 4294901760, %v5433_v44 }
 0x68c   : > { %v5435_v17 = vsub.f32 %v5433_v44, %v5434_v60 }
 0x68f   : > { %v22037_v22 = vpop.eup %21480 }
 0x690   : > { %v5317_v24 = vsel %vm2191_vm9, %v22037_v22, 0.0  ;;  %v21483_v25 = vpop.eup %21482 }
 0x691   : > { %5318 = vadd.xlane.f32.xlu0 %v5317_v24  ;;  %v5314_v13 = vsel %vm2187_vm10, %v21483_v25, 0.0 }
 0x695   : > { %5315 = vadd.xlane.f32.xlu0 %v5314_v13 }
 0x6ab   : > { %5324 = vrot.lane.b32.xlu0 %v21745_v37, %s22859_s29  ;;  %s22880_s29 = smov 72  }
 0x6c4   : > { %v19207_v39 = vpop.f32.mrb[8].mxu0 }
 0x6c5   : > { %v6855_v40 = vmul.f32 0.35355338, %v19207_v39  ;;  %v6844_v47 = vpop.f32.mrb[9].mxu0 }
 0x6c6   : > { %v6854_v15 = vmul.f32 0.35355338, %v6844_v47 }
 0x6c7   : > { %v22053_v51 = vadd.f32 %v6855_v40, %v21781_v46 }
 0x6c8   : > { %v22056_v53 = vadd.f32 %v6854_v15, %v21783_v49 }
 0x6c9   : > { %v6861_v54 = vsel %vm2191_vm9, %v22053_v51, -inf }
 0x6ca   : > { %6862 = vmax.xlane.f32.xlu0 %v6861_v54  ;;  %v6858_v55 = vsel %vm2187_vm10, %v22056_v53, -inf }
 0x6cb   : > { %6859 = vmax.xlane.f32.xlu1 %v6858_v55 }
 0x71e   : > { %v5319_v43 = vpop.xlane.xlu0 %5318 }
 0x722   : > { %v5316_v61 = vpop.xlane.xlu0 %5315 }
 0x723   : > { %21484 = vrcp.f32 %v5316_v61 }
 0x724   : > { %21486 = vrcp.f32 %v5319_v43 }
 0x726   : > { %v5325_v62 = vpop.permute.xlu0 %5324 }
 0x727   : > { %v19021_v56 = vpop.f32.mrb[6].mxu1  ;;  %v5338_v5 = vand.u32 4294901760, %v5325_v62 }
 0x728   : > { %v4287_v57 = vsel %vm1672_vm3, %v19021_v56, 0  ;;  %v4273_v19 = vpop.f32.mrb[7].mxu1 }
 0x729   : > { %v22063_v52 = vand.u32 4294901760, %v4287_v57  ;;  %v4284_v58 = vsel %vm1672_vm3, %v4273_v19, 0  ;;  %v5426_v8 = vsub.f32 %v5325_v62, %v5338_v5  ;;  %v20444_v16 = vpack.c.bf16 %v5341_v42, %v5338_v5 }
 0x72a   : > { %v4355_v23 = vand.u32 4294901760, %v4284_v58 }
 0x72b   : > { %v4366_v26 = vsub.f32 %v4287_v57, %v22063_v52  ;;  %v5427_v11 = vand.u32 4294901760, %v5426_v8  ;;  %v20452_v15 = vpack.c.bf16 %v5433_v44, %v5426_v8  ;;  %v1656_v57 = vld [vmem:[%s22844_s5 + $0x10] sm:$0xff] }
 0x72c   : > { %v4356_v36 = vsub.f32 %v4284_v58, %v4355_v23  ;;  %v22101_v19 = vand.u32 4294901760, %v1656_v57 }
 0x72d   : > { %v4367_v41 = vand.u32 4294901760, %v4366_v26  ;;  %v21485_v63 = vpop.eup %21484  ;;  %v5428_v32 = vsub.f32 %v5426_v8, %v5427_v11  ;;  %v20460_v56 = vpack.c.bf16 %v5434_v60, %v5427_v11 }
 0x72e   : > { %v4357_v38 = vand.u32 4294901760, %v4356_v36  ;;  %v21487_v1 = vpop.eup %21486  ;;  %v5321_v3 = vmul.f32 %v21485_v63, %v21483_v25 }
 0x72f   : > { %v4368_v45 = vsub.f32 %v4366_v26, %v4367_v41  ;;  %v5323_v0 = vmul.f32 %v21487_v1, %v22037_v22 }
 0x730   : > { %v4358_v12 = vsub.f32 %v4356_v36, %v4357_v38  ;;  %v5330_v59 = vsel %vm2187_vm10, %v5321_v3, 0 }
 0x731   : > { %v4369_v48 = vand.u32 4294901760, %v4368_v45  ;;  %v22073_v6 = vand.u32 4294901760, %v5330_v59  ;;  %v5333_v7 = vsel %vm2187_vm10, %v5323_v0, 0 }
 0x732   : > { %v4359_v34 = vand.u32 4294901760, %v4358_v12  ;;  %v5414_v9 = vand.u32 4294901760, %v5333_v7 }
 0x733   : > { %v5405_v10 = vsub.f32 %v5330_v59, %v22073_v6 }
 0x734   : > { %19024 = vmatprep.mubr.f32.mxu1 %v4359_v34  ;;  %v5415_v50 = vsub.f32 %v5333_v7, %v5414_v9 }
 0x735   : > { %19025 = vmatmul.mubr.f32.vlgmr.msra.gmra.mrb[4].mxu1 %v4369_v48  ;;  %v5406_v14 = vand.u32 4294901760, %v5405_v10 }
 0x736   : > { %19028 = vmatpush3.msra.mxu1 %v4380_v33  ;;  %19029 = vmatprep.mubr.f32.mxu1 %v4355_v23  ;;  %v5416_v22 = vand.u32 4294901760, %v5415_v50  ;;  %v5436_v33 = vand.u32 4294901760, %v5435_v17 }
 0x737   : > { %19032 = vmatprep.subr.mxu1 %v4377_v29  ;;  %v5407_v13 = vsub.f32 %v5405_v10, %v5406_v14 }
 0x738   : > { %v5417_v39 = vsub.f32 %v5415_v50, %v5416_v22 }
 0x739   : > { %v5408_v40 = vand.u32 4294901760, %v5407_v13 }
 0x73a   : > { %v5418_v47 = vand.u32 4294901760, %v5417_v39 }
 0x73d   : > { %19030 = vmatmul.mubr.f32.vlgmr.msra.gmra.mrb[4].mxu1 %v22063_v52 }
 0x73e   : > { %19033 = vmatpush3.msra.mxu1 %v4377_v29  ;;  %19034 = vmatprep.mubr.f32.mxu1 %v4356_v36  ;;  %v5429_v29 = vand.u32 4294901760, %v5428_v32 }
 0x73f   : > { %19037 = vmatprep.subr.mxu1 %v22047_v28 }
 0x745   : > { %19035 = vmatmul.mubr.f32.vlgmr.msra.gmra.mrb[4].mxu1 %v4366_v26 }
 0x746   : > { %19038 = vmatpush3.msra.mxu1 %v22047_v28  ;;  %19039 = vmatprep.mubr.f32.mxu1 %v4357_v38 }
 0x747   : > { %19042 = vmatprep.subr.mxu1 %v4378_v30 }
 0x74d   : > { %19040 = vmatmul.mubr.f32.vlgmr.msra.gmra.mrb[4].mxu1 %v4367_v41 }
 0x74e   : > { %19043 = vmatpush3.msra.mxu1 %v4378_v30  ;;  %19044 = vmatprep.mubr.f32.mxu1 %v4355_v23 }
 0x74f   : > { %19047 = vmatprep.subr.mxu1 %v22047_v28 }
 0x755   : > { %19045 = vmatmul.mubr.f32.vlgmr.msra.gmra.mrb[4].mxu1 %v22063_v52 }
 0x756   : > { %19048 = vmatpush3.msra.mxu1 %v22047_v28  ;;  %19049 = vmatprep.mubr.f32.mxu1 %v4355_v23  ;;  %v20448_v28 = vpack.c.bf16 %v5436_v33, %v5429_v29 }
 0x757   : > { %20445 = vmatprep.subr.bf16.mxu1 %v20444_v16  ;;  %v6863_v21 = vpop.xlane.xlu0 %6862 }
 0x758   : > { %v6865_v24 = vsub.f32 %v22053_v51, %v6863_v21  ;;  %v6860_v25 = vpop.xlane.xlu1 %6859 }
 0x759   : > { %v6864_v27 = vsub.f32 %v22056_v53, %v6860_v25 }
 0x75a   : > { %v6868_v30 = vmul.f32 1.442695, %v6865_v24 }
 0x75b   : > { %v6866_v31 = vmul.f32 1.442695, %v6864_v27 }
 0x75c   : > { %21488 = vpow2.f32 %v6868_v30 }
 0x75d   : > { %21490 = vpow2.f32 %v6866_v31  ;;  %19050 = vmatmul.mubr.f32.vlgmr.msra.gmra.mrb[4].mxu1 %v22063_v52 }
 0x75e   : > { %20447 = vmatpush3.bf16.msra.mxu1 %v20444_v16  ;;  %19098 = vmatprep.mubr.f32.mxu1 %v5408_v40 }
 0x75f   : > { %20449 = vmatprep.subr.bf16.mxu1 %v20448_v28 }
 0x761   : > { %19099 = vmatmul.mubr.f32.vlgmr.msra.gmra.mrb[8].mxu1 %v5418_v47 }
 0x762   : > { %20451 = vmatpush3.bf16.msra.mxu1 %v20448_v28  ;;  %19105 = vmatprep.mubr.f32.mxu1 %v22073_v6 }
 0x763   : > { %20453 = vmatprep.subr.bf16.mxu1 %v20452_v15 }
 0x766   : > { %v22084_v51 = vpop.eup %21488 }
 0x767   : > { %v22086_v53 = vpop.eup %21490  ;;  %v6873_v54 = vsel %vm2191_vm9, %v22084_v51, 0.0 }
 0x768   : > { %6874 = vadd.xlane.f32.xlu0 %v6873_v54  ;;  %v6870_v55 = vsel %vm2187_vm10, %v22086_v53, 0.0 }
 0x769   : > { %6871 = vadd.xlane.f32.xlu1 %v6870_v55  ;;  %19106 = vmatmul.mubr.f32.vlgmr.msra.gmra.mrb[8].mxu1 %v5414_v9 }
 0x76a   : > { %20455 = vmatpush3.bf16.msra.mxu1 %v20452_v15  ;;  %19112 = vmatprep.mubr.f32.mxu1 %v5405_v10 }
 0x76b   : > { %20457 = vmatprep.subr.bf16.mxu1 %v20444_v16 }
 0x771   : > { %19113 = vmatmul.mubr.f32.vlgmr.msra.gmra.mrb[8].mxu1 %v5415_v50 }
 0x772   : > { %20459 = vmatpush3.bf16.msra.mxu1 %v20444_v16  ;;  %19119 = vmatprep.mubr.f32.mxu1 %v5406_v14 }
 0x773   : > { %20461 = vmatprep.subr.bf16.mxu1 %v20460_v56 }
 0x779   : > { %19120 = vmatmul.mubr.f32.vlgmr.msra.gmra.mrb[8].mxu1 %v5416_v22 }
 0x77a   : > { %20463 = vmatpush3.bf16.msra.mxu1 %v20460_v56  ;;  %6882 = vrot.lane.b32.xlu1 %v21743_v35, %s22861_s20  ;;  %v5933_v35 = vsub.f32 %v1656_v57, %v22101_v19 }
 0x77b   : > { %19126 = vmatprep.mubr.f32.mxu1 %v22073_v6  ;;  %20465 = vmatprep.subr.bf16.mxu1 %v20444_v16 }
 0x77c   : > { %v5934_v52 = vand.u32 4294901760, %v5933_v35 }
 0x77e   : > { %6880 = vrot.lane.b32.xlu0 %v21745_v37, %s22861_s20  ;;  %v5935_v58 = vsub.f32 %v5933_v35, %v5934_v52 }
 0x780   : > { %v5936_v37 = vand.u32 4294901760, %v5935_v58 }
 0x781   : > { %19127 = vmatmul.mubr.f32.vlgmr.msra.gmra.mrb[8].mxu1 %v5414_v9 }
 0x782   : > { %20467 = vmatpush3.bf16.msra.mxu1 %v20444_v16  ;;  %19133 = vmatprep.mubr.f32.mxu1 %v22073_v6 }
 0x783   : > { %19136 = vmatprep.subr.mxu1 %v22101_v19 }
 0x789   : > { %19134 = vmatmul.mubr.f32.vlgmr.msra.gmra.mrb[8].mxu1 %v5414_v9 }
 0x78a   : > { %19137 = vmatpush3.msra.mxu1 %v22101_v19 }
 0x78b   : > { %19141 = vmatprep.subr.mxu1 %v5936_v37 }
 0x7f5   : > { %v6875_v62 = vpop.xlane.xlu0 %6874 }
 0x7f6   : > { %v6872_v3 = vpop.xlane.xlu1 %6871 }
 0x7f7   : > { %21492 = vrcp.f32 %v6872_v3 }
 0x7f8   : > { %21494 = vrcp.f32 %v6875_v62 }
 0x7f9   : > { %v6881_v7 = vpop.permute.xlu0 %6880 }
 0x7fa   : > { %v6883_v0 = vpop.permute.xlu1 %6882  ;;  %v6894_v9 = vand.u32 4294901760, %v6881_v7 }
 0x7fb   : > { %v6891_v42 = vsel %vm2222_vm11, %v6883_v0, 0 }
 0x7fc   : > { %v6897_v8 = vand.u32 4294901760, %v6891_v42  ;;  %v6982_v50 = vsub.f32 %v6881_v7, %v6894_v9 }
 0x7fe   : > { %v6989_v60 = vsub.f32 %v6891_v42, %v6897_v8  ;;  %v6983_v17 = vand.u32 4294901760, %v6982_v50  ;;  %v20492_v24 = vpack.c.bf16 %v6897_v8, %v6894_v9 }
 0x800   : > { %v6990_v32 = vand.u32 4294901760, %v6989_v60  ;;  %v6984_v13 = vsub.f32 %v6982_v50, %v6983_v17  ;;  %v20500_v47 = vpack.c.bf16 %v6989_v60, %v6982_v50 }
 0x801   : > { %v21493_v4 = vpop.eup %21492 }
 0x802   : > { %v21495_v5 = vpop.eup %21494  ;;  %v6877_v59 = vmul.f32 %v21493_v4, %v22086_v53  ;;  %v6991_v25 = vsub.f32 %v6989_v60, %v6990_v32  ;;  %v6985_v31 = vand.u32 4294901760, %v6984_v13  ;;  %v20508_v15 = vpack.c.bf16 %v6990_v32, %v6983_v17  ;;  %v7942_v60 = vld [vmem:[%s22848_s9 + $0x10] sm:$0xff] }
 0x803   : > { %v6879_v6 = vmul.f32 %v21495_v5, %v22084_v51  ;;  %v1657_v51 = vld [vmem:[%s22844_s5 + $0x18] sm:$0xff]  ;;  %v7964_v32 = vand.u32 4294901760, %v7942_v60 }
 0x804   : > { %v6886_v44 = vsel %vm2187_vm10, %v6877_v59, 0  ;;  %v6992_v30 = vand.u32 4294901760, %v6991_v25  ;;  %v7402_v53 = vand.u32 4294901760, %v1657_v51 }
 0x805   : > { %v6960_v10 = vand.u32 4294901760, %v6886_v44  ;;  %v6889_v11 = vsel %vm2187_vm10, %v6879_v6, 0 }
 0x806   : > { %v6970_v14 = vand.u32 4294901760, %v6889_v11  ;;  %v20496_v40 = vpack.c.bf16 %v6992_v30, %v6985_v31  ;;  %v7489_v54 = vsub.f32 %v1657_v51, %v7402_v53  ;;  %v8062_v31 = vsub.f32 %v7942_v60, %v7964_v32 }
 0x807   : > { %v6961_v16 = vsub.f32 %v6886_v44, %v6960_v10 }
 0x808   : > { %v6971_v21 = vsub.f32 %v6889_v11, %v6970_v14  ;;  %v7490_v55 = vand.u32 4294901760, %v7489_v54  ;;  %v7941_v11 = vld [vmem:[%s22848_s9 + $0x8] sm:$0xff] }
 0x809   : > { %v6962_v22 = vand.u32 4294901760, %v6961_v16 }
 0x80a   : > { %v6972_v27 = vand.u32 4294901760, %v6971_v21  ;;  %v7491_v56 = vsub.f32 %v7489_v54, %v7490_v55 }
 0x80b   : > { %v6963_v29 = vsub.f32 %v6961_v16, %v6962_v22 }
 0x80c   : > { %v6973_v33 = vsub.f32 %v6971_v21, %v6972_v27  ;;  %v7492_v57 = vand.u32 4294901760, %v7491_v56 }
 0x80d   : > { %v6964_v39 = vand.u32 4294901760, %v6963_v29 }
 0x80e   : > { %v6974_v28 = vand.u32 4294901760, %v6973_v33 }
 0x85c   : > { %v19135_v23 = vpop.f32.mrb[8].mxu1 }
 0x85d   : > { %v5843_v26 = vsel %vm1672_vm3, %v19135_v23, 0  ;;  %v5829_v36 = vpop.f32.mrb[9].mxu1 }
 0x85e   : > { %v22107_v41 = vand.u32 4294901760, %v5843_v26  ;;  %v5840_v38 = vsel %vm1672_vm3, %v5829_v36, 0 }
 0x85f   : > { %v5911_v43 = vand.u32 4294901760, %v5840_v38 }
 0x860   : > { %v5922_v45 = vsub.f32 %v5843_v26, %v22107_v41 }
 0x861   : > { %v5912_v12 = vsub.f32 %v5840_v38, %v5911_v43 }
 0x862   : > { %v5923_v34 = vand.u32 4294901760, %v5922_v45 }
 0x863   : > { %v5913_v48 = vand.u32 4294901760, %v5912_v12 }
 0x864   : > { %v5924_v61 = vsub.f32 %v5922_v45, %v5923_v34 }
 0x865   : > { %v5914_v63 = vsub.f32 %v5912_v12, %v5913_v48 }
 0x866   : > { %v5925_v2 = vand.u32 4294901760, %v5924_v61 }
 0x867   : > { %v5915_v1 = vand.u32 4294901760, %v5914_v63 }
 0x869   : > { %19138 = vmatprep.mubr.f32.mxu1 %v5915_v1 }
 0x86a   : > { %19139 = vmatmul.mubr.f32.vlgmr.msra.gmra.mrb[4].mxu1 %v5925_v2 }
 0x86b   : > { %19142 = vmatpush3.msra.mxu1 %v5936_v37  ;;  %19143 = vmatprep.mubr.f32.mxu1 %v5911_v43 }
 0x86c   : > { %19146 = vmatprep.subr.mxu1 %v5933_v35 }
 0x872   : > { %19144 = vmatmul.mubr.f32.vlgmr.msra.gmra.mrb[4].mxu1 %v22107_v41 }
 0x873   : > { %19147 = vmatpush3.msra.mxu1 %v5933_v35  ;;  %19148 = vmatprep.mubr.f32.mxu1 %v5912_v12 }
 0x874   : > { %19151 = vmatprep.subr.mxu1 %v22101_v19 }
 0x87a   : > { %19149 = vmatmul.mubr.f32.vlgmr.msra.gmra.mrb[4].mxu1 %v5922_v45 }
 0x87b   : > { %19152 = vmatpush3.msra.mxu1 %v22101_v19  ;;  %19153 = vmatprep.mubr.f32.mxu1 %v5913_v48  ;;  %v17780_v48 = vld [vmem:[%s22845_s6] ss:$0 sm:$0xff] }
 0x87c   : > { %19156 = vmatprep.subr.mxu1 %v5934_v52 }
 0x882   : > { %19154 = vmatmul.mubr.f32.vlgmr.msra.gmra.mrb[4].mxu1 %v5923_v34 }
 0x883   : > { %19157 = vmatpush3.msra.mxu1 %v5934_v52  ;;  %19158 = vmatprep.mubr.f32.mxu1 %v5911_v43 }
 0x884   : > { %19161 = vmatprep.subr.mxu1 %v22101_v19 }
 0x88a   : > { %19159 = vmatmul.mubr.f32.vlgmr.msra.gmra.mrb[4].mxu1 %v22107_v41 }
 0x88b   : > { %19162 = vmatpush3.msra.mxu1 %v22101_v19  ;;  %19163 = vmatprep.mubr.f32.mxu1 %v5911_v43 }
 0x88c   : > { %20493 = vmatprep.subr.bf16.mxu1 %v20492_v24 }
 0x892   : > { %19164 = vmatmul.mubr.f32.vlgmr.msra.gmra.mrb[4].mxu1 %v22107_v41 }
 0x893   : > { %20495 = vmatpush3.bf16.msra.mxu1 %v20492_v24  ;;  %19212 = vmatprep.mubr.f32.mxu1 %v6964_v39 }
 0x894   : > { %20497 = vmatprep.subr.bf16.mxu1 %v20496_v40 }
 0x896   : > { %19213 = vmatmul.mubr.f32.vlgmr.msra.gmra.mrb[10].mxu1 %v6974_v28  ;;  %v8063_v28 = vand.u32 4294901760, %v8062_v31 }
 0x897   : > { %20499 = vmatpush3.bf16.msra.mxu1 %v20496_v40  ;;  %19219 = vmatprep.mubr.f32.mxu1 %v6960_v10 }
 0x898   : > { %20501 = vmatprep.subr.bf16.mxu1 %v20500_v47  ;;  %v8064_v51 = vsub.f32 %v8062_v31, %v8063_v28 }
 0x89e   : > { %19220 = vmatmul.mubr.f32.vlgmr.msra.gmra.mrb[10].mxu1 %v6970_v14 }
 0x89f   : > { %20503 = vmatpush3.bf16.msra.mxu1 %v20500_v47  ;;  %19226 = vmatprep.mubr.f32.mxu1 %v6961_v16  ;;  %v7943_v16 = vld [vmem:[%s22848_s9 + $0x18] sm:$0xff] }
 0x8a0   : > { %20505 = vmatprep.subr.bf16.mxu1 %v20492_v24  ;;  %v7967_v17 = vand.u32 4294901760, %v7943_v16 }
 0x8a2   : > { %v8069_v33 = vsub.f32 %v7943_v16, %v7967_v17 }
 0x8a4   : > { %v8070_v47 = vand.u32 4294901760, %v8069_v33 }
 0x8a6   : > { %19227 = vmatmul.mubr.f32.vlgmr.msra.gmra.mrb[10].mxu1 %v6971_v21 }
 0x8a7   : > { %20507 = vmatpush3.bf16.msra.mxu1 %v20492_v24  ;;  %19233 = vmatprep.mubr.f32.mxu1 %v6962_v22  ;;  %v22151_v22 = vpack.c.bf16 %v7967_v17, %v7964_v32 }
 0x8a8   : > { %20509 = vmatprep.subr.bf16.mxu1 %v20508_v15 }
 0x8ae   : > { %19234 = vmatmul.mubr.f32.vlgmr.msra.gmra.mrb[10].mxu1 %v6972_v27 }
 0x8af   : > { %20511 = vmatpush3.bf16.msra.mxu1 %v20508_v15  ;;  %19240 = vmatprep.mubr.f32.mxu1 %v6960_v10 }
 0x8b0   : > { %20513 = vmatprep.subr.bf16.mxu1 %v20492_v24 }
 0x8b6   : > { %19241 = vmatmul.mubr.f32.vlgmr.msra.gmra.mrb[10].mxu1 %v6970_v14 }
 0x8b7   : > { %20515 = vmatpush3.bf16.msra.mxu1 %v20492_v24  ;;  %19247 = vmatprep.mubr.f32.mxu1 %v6960_v10 }
 0x8b8   : > { %19250 = vmatprep.subr.mxu1 %v7402_v53 }
 0x8be   : > { %19248 = vmatmul.mubr.f32.vlgmr.msra.gmra.mrb[10].mxu1 %v6970_v14  ;;  %v7961_v14 = vand.u32 4294901760, %v7941_v11 }
 0x8bf   : > { %19251 = vmatpush3.msra.mxu1 %v7402_v53 }
 0x8c0   : > { %19255 = vmatprep.subr.mxu1 %v7492_v57  ;;  %v8055_v25 = vsub.f32 %v7941_v11, %v7961_v14 }
 0x8c2   : > { %v8056_v27 = vand.u32 4294901760, %v8055_v25 }
 0x8c4   : > { %v8057_v30 = vsub.f32 %v8055_v25, %v8056_v27 }
 0x8c6   : > { %v8058_v40 = vand.u32 4294901760, %v8057_v30  ;;  %v8493_v30 = vld [vmem:[%s22850_s11 + $0x30] sm:$0xff] }
 0x991   : > { %v19249_v19 = vpop.f32.mrb[10].mxu1 }
 0x992   : > { %v7399_v35 = vsel %vm1672_vm3, %v19249_v19, 0  ;;  %v7385_v52 = vpop.f32.mrb[11].mxu1  ;;  %v20536_v19 = vpack.c.bf16 %v8069_v33, %v8062_v31  ;;  %v8494_v31 = vld [vmem:[%s22850_s11 + $0x38] sm:$0xff] }
 0x993   : > { %v7477_v58 = vand.u32 4294901760, %v7399_v35  ;;  %v7396_v37 = vsel %vm1672_vm3, %v7385_v52, 0  ;;  %v20552_v52 = vpack.c.bf16 %v8070_v47, %v8063_v28 }
 0x994   : > { %v7467_v23 = vand.u32 4294901760, %v7396_v37 }
 0x995   : > { %v7478_v26 = vsub.f32 %v7399_v35, %v7477_v58 }
 0x996   : > { %v7468_v36 = vsub.f32 %v7396_v37, %v7467_v23 }
 0x997   : > { %v7479_v41 = vand.u32 4294901760, %v7478_v26 }
 0x998   : > { %v7469_v38 = vand.u32 4294901760, %v7468_v36 }
 0x999   : > { %v7480_v43 = vsub.f32 %v7478_v26, %v7479_v41 }
 0x99a   : > { %v7470_v45 = vsub.f32 %v7468_v36, %v7469_v38 }
 0x99b   : > { %v7481_v34 = vand.u32 4294901760, %v7480_v43  ;;  %v17781_v43 = vld [vmem:[%s22846_s7] ss:$0 sm:$0xff] }
 0x99c   : > { %v7471_v12 = vand.u32 4294901760, %v7470_v45 }
 0x99e   : > { %19252 = vmatprep.mubr.f32.mxu1 %v7471_v12 }
 0x99f   : > { %19253 = vmatmul.mubr.f32.vlgmr.msra.gmra.mrb[4].mxu1 %v7481_v34 }
 0x9a0   : > { %19256 = vmatpush3.msra.mxu1 %v7492_v57  ;;  %19257 = vmatprep.mubr.f32.mxu1 %v7467_v23 }
 0x9a1   : > { %19260 = vmatprep.subr.mxu1 %v7489_v54 }
 0x9a7   : > { %19258 = vmatmul.mubr.f32.vlgmr.msra.gmra.mrb[4].mxu1 %v7477_v58 }
 0x9a8   : > { %19261 = vmatpush3.msra.mxu1 %v7489_v54  ;;  %19262 = vmatprep.mubr.f32.mxu1 %v7468_v36  ;;  %v8065_v54 = vand.u32 4294901760, %v8064_v51 }
 0x9a9   : > { %19265 = vmatprep.subr.mxu1 %v7402_v53 }
 0x9af   : > { %19263 = vmatmul.mubr.f32.vlgmr.msra.gmra.mrb[4].mxu1 %v7478_v26 }
 0x9b0   : > { %19266 = vmatpush3.msra.mxu1 %v7402_v53  ;;  %19267 = vmatprep.mubr.f32.mxu1 %v7469_v38 }
 0x9b1   : > { %19270 = vmatprep.subr.mxu1 %v7490_v55 }
 0x9b7   : > { %19268 = vmatmul.mubr.f32.vlgmr.msra.gmra.mrb[4].mxu1 %v7479_v41 }
 0x9b8   : > { %19271 = vmatpush3.msra.mxu1 %v7490_v55  ;;  %19272 = vmatprep.mubr.f32.mxu1 %v7467_v23 }
 0x9b9   : > { %19275 = vmatprep.subr.mxu1 %v7402_v53 }
 0x9bf   : > { %19273 = vmatmul.mubr.f32.vlgmr.msra.gmra.mrb[4].mxu1 %v7477_v58 }
 0x9c0   : > { %19276 = vmatpush3.msra.mxu1 %v7402_v53  ;;  %19277 = vmatprep.mubr.f32.mxu1 %v7467_v23  ;;  %v8071_v53 = vsub.f32 %v8069_v33, %v8070_v47  ;;  %v8528_v33 = vand.u32 4294901760, %v8493_v30 }
 0x9c2   : > { %v8072_v55 = vand.u32 4294901760, %v8071_v53 }
 0x9c4   : > { %v20528_v56 = vpack.c.bf16 %v8072_v55, %v8065_v54 }
 0x9c7   : > { %19278 = vmatmul.mubr.f32.vlgmr.msra.gmra.mrb[4].mxu1 %v7477_v58 }
 0xa9a   : > { %v19279_v61 = vpop.f32.mrb[4].mxu1 }
 0xa9b   : > { %v21096_v63 = vadd.f32 %v19279_v61, %v17780_v48  ;;  %v7880_v1 = vpop.f32.mrb[5].mxu1 }
 0xa9c   : > { %v21097_v2 = vadd.f32 %v17780_v48, %v7880_v1  ;;  %v17782_v48 = vld [vmem:[%s22847_s8] ss:$0 sm:$0xff] }
 0xa9d   : > { %v7893_v3 = vadd.f32 %v21096_v63, %v21724_v18 }
 0xa9e   : > { %v7892_v62 = vadd.f32 %v21097_v2, %v21726_v20  ;;  %v7940_v20 = vld [vmem:[%s22848_s9] sm:$0xff] }
 0xa9f   : > { %v7898_v4 = vsel %vm7897_vm12, %v7893_v3, 0.0  ;;  %v7958_v50 = vand.u32 4294901760, %v7940_v20 }
 0xaa0   : > { %7899 = vadd.xlane.f32.xlu0 %v7898_v4  ;;  %v7894_v0 = vsel %vm1119_vm2, %v7892_v62, 0.0 }
 0xaa1   : > { %7895 = vadd.xlane.f32.xlu1 %v7894_v0  ;;  %v22149_v21 = vpack.c.bf16 %v7961_v14, %v7958_v50  ;;  %v8048_v24 = vsub.f32 %v7940_v20, %v7958_v50  ;;  %v8489_v50 = vld [vmem:[%s22850_s11 + $0x10] sm:$0xff]  ;;  %v8490_v14 = vld [vmem:[%s22850_s11 + $0x18] sm:$0xff] }
 0xaa2   : > { %v8516_v16 = vand.u32 4294901760, %v8489_v50  ;;  %v8519_v32 = vand.u32 4294901760, %v8490_v14 }
 0xaa3   : > { %20517 = vmatprep.subr.bf16.mxu0 %v22149_v21  ;;  %v8049_v13 = vand.u32 4294901760, %v8048_v24  ;;  %v20532_v57 = vpack.c.bf16 %v8055_v25, %v8048_v24 }
 0xaa4   : > { %20519 = vmatpush3.bf16.msra.mxu0 %v22149_v21  ;;  %v22195_v17 = vpack.c.bf16 %v8519_v32, %v8516_v16  ;;  %v8618_v53 = vsub.f32 %v8489_v50, %v8516_v16  ;;  %v8625_v54 = vsub.f32 %v8490_v14, %v8519_v32  ;;  %v17783_v50 = vld [vmem:[%s22849_s10] ss:$0 sm:$0xff] }
 0xaa5   : > { %20521 = vmatprep.subr.bf16.mxu0 %v22151_v22  ;;  %v8050_v29 = vsub.f32 %v8048_v24, %v8049_v13  ;;  %v20548_v35 = vpack.c.bf16 %v8056_v27, %v8049_v13 }
 0xaa7   : > { %v8051_v39 = vand.u32 4294901760, %v8050_v29 }
 0xaa8   : > { %20523 = vmatpush3.bf16.msra.mxu0 %v22151_v22 }
 0xaa9   : > { %v20524_v15 = vpack.c.bf16 %v8058_v40, %v8051_v39  ;;  %v8531_v39 = vand.u32 4294901760, %v8494_v31 }
 0xaab   : > { %20525 = vmatprep.subr.bf16.mxu0 %v20524_v15  ;;  %v22215_v47 = vpack.c.bf16 %v8531_v39, %v8528_v33 }
 0xb2d   : > { %v7900_v5 = vpop.xlane.xlu0 %7899 }
 0xb2e   : > { %v7903_v59 = vmul.f32 0.03125, %v7900_v5  ;;  %v7896_v42 = vpop.xlane.xlu1 %7895 }
 0xb2f   : > { %v7902_v6 = vmul.f32 0.03125, %v7896_v42 }
 0xb30   : > { %v7905_v7 = vsub.f32 %v7893_v3, %v7903_v59 }
 0xb31   : > { %v7904_v8 = vsub.f32 %v7892_v62, %v7902_v6 }
 0xb32   : > { %v7907_v44 = vmul.f32 %v7905_v7, %v7905_v7 }
 0xb33   : > { %v7906_v9 = vmul.f32 %v7904_v8, %v7904_v8 }
 0xb34   : > { %v7911_v10 = vsel %vm7897_vm12, %v7907_v44, 0.0 }
 0xb35   : > { %7912 = vadd.xlane.f32.xlu0 %v7911_v10  ;;  %v7908_v18 = vsel %vm1119_vm2, %v7906_v9, 0.0  ;;  %v8487_v10 = vld [vmem:[%s22850_s11] sm:$0xff] }
 0xb36   : > { %7909 = vadd.xlane.f32.xlu1 %v7908_v18  ;;  %v8488_v18 = vld [vmem:[%s22850_s11 + $0x8] sm:$0xff]  ;;  %v8510_v20 = vand.u32 4294901760, %v8487_v10 }
 0xb37   : > { %v8513_v11 = vand.u32 4294901760, %v8488_v18 }
 0xb38   : > { %v8604_v27 = vsub.f32 %v8487_v10, %v8510_v20 }
 0xb39   : > { %v22185_v60 = vpack.c.bf16 %v8513_v11, %v8510_v20  ;;  %v8611_v29 = vsub.f32 %v8488_v18, %v8513_v11 }
 0xb3a   : > { %v8605_v40 = vand.u32 4294901760, %v8604_v27 }
 0xb3b   : > { %20565 = vmatprep.subr.bf16.mxu1 %v22185_v60  ;;  %v8612_v28 = vand.u32 4294901760, %v8611_v29 }
 0xb3c   : > { %20567 = vmatpush3.bf16.msra.mxu1 %v22185_v60 }
 0xb3d   : > { %20569 = vmatprep.subr.bf16.mxu1 %v22195_v17  ;;  %v8613_v51 = vsub.f32 %v8611_v29, %v8612_v28  ;;  %v20628_v10 = vpack.c.bf16 %v8612_v28, %v8605_v40 }
 0xb40   : > { %20571 = vmatpush3.bf16.msra.mxu1 %v22195_v17 }
 0xbc2   : > { %v7913_v58 = vpop.xlane.xlu0 %7912 }
 0xbc3   : > { %v7915_v37 = vmul.f32 0.03125, %v7913_v58  ;;  %v7910_v23 = vpop.xlane.xlu1 %7909 }
 0xbc4   : > { %v7914_v26 = vmul.f32 0.03125, %v7910_v23 }
 0xbc5   : > { %v7917_v36 = vadd.f32 1e-05, %v7915_v37 }
 0xbc6   : > { %v7916_v41 = vadd.f32 1e-05, %v7914_v26 }
 0xbc7   : > { %21496 = vrsqrt.f32 %v7917_v36 }
 0xbc8   : > { %21498 = vrsqrt.f32 %v7916_v41 }
 0xbd1   : > { %v21497_v38 = vpop.eup %21496 }
 0xbd2   : > { %v21499_v45 = vpop.eup %21498  ;;  %v7921_v12 = vmul.f32 %v21497_v38, %v7905_v7 }
 0xbd3   : > { %v7920_v34 = vmul.f32 %v21499_v45, %v7904_v8 }
 0xbd4   : > { %v7930_v61 = vmul.f32 %v17781_v43, %v7921_v12  ;;  %v8646_v12 = vsub.f32 %v8493_v30, %v8528_v33 }
 0xbd5   : > { %v7929_v63 = vmul.f32 %v17781_v43, %v7920_v34  ;;  %v8653_v34 = vsub.f32 %v8494_v31, %v8531_v39 }
 0xbd6   : > { %v22163_v1 = vadd.f32 %v17782_v48, %v7930_v61 }
 0xbd7   : > { %v22165_v2 = vadd.f32 %v17782_v48, %v7929_v63 }
 0xbd8   : > { %v7955_v3 = vsel %vm1119_vm2, %v22163_v1, 0 }
 0xbd9   : > { %v7952_v62 = vsel %vm1119_vm2, %v22165_v2, 0  ;;  %v8036_v4 = vand.u32 4294901760, %v7955_v3 }
 0xbda   : > { %v8026_v0 = vand.u32 4294901760, %v7952_v62 }
 0xbdb   : > { %v8037_v5 = vsub.f32 %v7955_v3, %v8036_v4  ;;  %v8647_v3 = vand.u32 4294901760, %v8646_v12 }
 0xbdc   : > { %v8027_v59 = vsub.f32 %v7952_v62, %v8026_v0  ;;  %v8654_v62 = vand.u32 4294901760, %v8653_v34 }
 0xbdd   : > { %v8038_v42 = vand.u32 4294901760, %v8037_v5 }
 0xbde   : > { %v8028_v6 = vand.u32 4294901760, %v8027_v59  ;;  %v20640_v11 = vpack.c.bf16 %v8654_v62, %v8647_v3 }
 0xbdf   : > { %v8039_v7 = vsub.f32 %v8037_v5, %v8038_v42 }
 0xbe0   : > { %v8029_v8 = vsub.f32 %v8027_v59, %v8028_v6 }
 0xbe1   : > { %v8040_v9 = vand.u32 4294901760, %v8039_v7  ;;  %v20596_v7 = vpack.c.bf16 %v8611_v29, %v8604_v27 }
 0xbe2   : > { %v8030_v44 = vand.u32 4294901760, %v8029_v8  ;;  %v20600_v8 = vpack.c.bf16 %v8625_v54, %v8618_v53 }
 0xbe4   : > { %19288 = vmatprep.mubr.f32.mxu0 %v8030_v44 }
 0xbe5   : > { %19289 = vmatmul.mubr.f32.vlgmr.msra.gmra.mrb[10].mxu0 %v8040_v9  ;;  %v20608_v9 = vpack.c.bf16 %v8653_v34, %v8646_v12 }
 0xbe6   : > { %20527 = vmatpush3.bf16.msra.mxu0 %v20524_v15  ;;  %19299 = vmatprep.mubr.f32.mxu0 %v8026_v0  ;;  %v8606_v15 = vsub.f32 %v8604_v27, %v8605_v40 }
 0xbe7   : > { %20529 = vmatprep.subr.bf16.mxu0 %v20528_v56 }
 0xbe8   : > { %v8607_v55 = vand.u32 4294901760, %v8606_v15 }
 0xbea   : > { %20531 = vmatpush3.bf16.msra.mxu0 %v20528_v56  ;;  %v8614_v56 = vand.u32 4294901760, %v8613_v51 }
 0xbeb   : > { %20533 = vmatprep.subr.bf16.mxu0 %v20532_v57 }
 0xbed   : > { %19300 = vmatmul.mubr.f32.vlgmr.msra.gmra.mrb[10].mxu0 %v8036_v4 }
 0xbee   : > { %20535 = vmatpush3.bf16.msra.mxu0 %v20532_v57  ;;  %19310 = vmatprep.mubr.f32.mxu0 %v8027_v59  ;;  %v8619_v57 = vand.u32 4294901760, %v8618_v53 }
 0xbef   : > { %20537 = vmatprep.subr.bf16.mxu0 %v20536_v19 }
 0xbf2   : > { %20539 = vmatpush3.bf16.msra.mxu0 %v20536_v19  ;;  %v8626_v19 = vand.u32 4294901760, %v8625_v54 }
 0xbf3   : > { %20541 = vmatprep.subr.bf16.mxu0 %v22149_v21 }
 0xbf4   : > { %v8627_v23 = vsub.f32 %v8625_v54, %v8626_v19  ;;  %v20632_v18 = vpack.c.bf16 %v8626_v19, %v8619_v57  ;;  %v17784_v54 = vld [vmem:[%s22851_s12] ss:$0 sm:$0xff] }
 0xbf5   : > { %19311 = vmatmul.mubr.f32.vlgmr.msra.gmra.mrb[10].mxu0 %v8037_v5  ;;  %v8655_v5 = vsub.f32 %v8653_v34, %v8654_v62 }
 0xbf6   : > { %20543 = vmatpush3.bf16.msra.mxu0 %v22149_v21  ;;  %19321 = vmatprep.mubr.f32.mxu0 %v8028_v6  ;;  %v8628_v38 = vand.u32 4294901760, %v8627_v23 }
 0xbf7   : > { %20545 = vmatprep.subr.bf16.mxu0 %v22151_v22 }
 0xbfa   : > { %20547 = vmatpush3.bf16.msra.mxu0 %v22151_v22 }
 0xbfb   : > { %20549 = vmatprep.subr.bf16.mxu0 %v20548_v35 }
 0xbfd   : > { %19322 = vmatmul.mubr.f32.vlgmr.msra.gmra.mrb[10].mxu0 %v8038_v42  ;;  %v8656_v42 = vand.u32 4294901760, %v8655_v5 }
 0xbfe   : > { %20551 = vmatpush3.bf16.msra.mxu0 %v20548_v35  ;;  %19332 = vmatprep.mubr.f32.mxu0 %v8026_v0  ;;  %v20580_v35 = vpack.c.bf16 %v8614_v56, %v8607_v55 }
 0xbff   : > { %20553 = vmatprep.subr.bf16.mxu0 %v20552_v52 }
 0xc02   : > { %20555 = vmatpush3.bf16.msra.mxu0 %v20552_v52  ;;  %v8620_v52 = vsub.f32 %v8618_v53, %v8619_v57 }
 0xc03   : > { %20557 = vmatprep.subr.bf16.mxu0 %v22149_v21 }
 0xc04   : > { %v8621_v26 = vand.u32 4294901760, %v8620_v52 }
 0xc05   : > { %19333 = vmatmul.mubr.f32.vlgmr.msra.gmra.mrb[10].mxu0 %v8036_v4 }
 0xc06   : > { %20559 = vmatpush3.bf16.msra.mxu0 %v22149_v21  ;;  %19343 = vmatprep.mubr.f32.mxu0 %v8026_v0  ;;  %v8491_v21 = vld [vmem:[%s22850_s11 + $0x20] sm:$0xff]  ;;  %v20584_v48 = vpack.c.bf16 %v8628_v38, %v8621_v26  ;;  %v8648_v0 = vsub.f32 %v8646_v12, %v8647_v3 }
 0xc07   : > { %20561 = vmatprep.subr.bf16.mxu0 %v22151_v22  ;;  %v8522_v24 = vand.u32 4294901760, %v8491_v21 }
 0xc08   : > { %v8649_v59 = vand.u32 4294901760, %v8648_v0 }
 0xc09   : > { %v8632_v58 = vsub.f32 %v8491_v21, %v8522_v24 }
 0xc0a   : > { %20563 = vmatpush3.bf16.msra.mxu0 %v22151_v22  ;;  %v8492_v22 = vld [vmem:[%s22850_s11 + $0x28] sm:$0xff]  ;;  %v20592_v6 = vpack.c.bf16 %v8656_v42, %v8649_v59 }
 0xc0b   : > { %v8525_v25 = vand.u32 4294901760, %v8492_v22  ;;  %v8633_v36 = vand.u32 4294901760, %v8632_v58 }
 0xc0d   : > { %19344 = vmatmul.mubr.f32.vlgmr.msra.gmra.mrb[10].mxu0 %v8036_v4  ;;  %v22205_v13 = vpack.c.bf16 %v8525_v25, %v8522_v24  ;;  %v8639_v37 = vsub.f32 %v8492_v22, %v8525_v25  ;;  %v8634_v43 = vsub.f32 %v8632_v58, %v8633_v36 }
 0xc0f   : > { %20573 = vmatprep.subr.bf16.mxu1 %v22205_v13  ;;  %v8640_v41 = vand.u32 4294901760, %v8639_v37  ;;  %v8635_v61 = vand.u32 4294901760, %v8634_v43  ;;  %v20604_v44 = vpack.c.bf16 %v8639_v37, %v8632_v58  ;;  %v17788_v43 = vld [vmem:[%s22842_s3 + $0x28] sm:$0xff] }
 0xc10   : > { %20575 = vmatpush3.bf16.msra.mxu1 %v22205_v13  ;;  %v9158_v34 = vand.u32 4294901760, %v17788_v43 }
 0xc11   : > { %20577 = vmatprep.subr.bf16.mxu1 %v22215_v47  ;;  %v8641_v45 = vsub.f32 %v8639_v37, %v8640_v41  ;;  %v20636_v20 = vpack.c.bf16 %v8640_v41, %v8633_v36 }
 0xc12   : > { %v9252_v0 = vsub.f32 %v17788_v43, %v9158_v34 }
 0xc13   : > { %v8642_v63 = vand.u32 4294901760, %v8641_v45  ;;  %v17789_v45 = vld [vmem:[%s22842_s3 + $0x30] sm:$0xff] }
 0xc14   : > { %20579 = vmatpush3.bf16.msra.mxu1 %v22215_v47  ;;  %v9253_v59 = vand.u32 4294901760, %v9252_v0 }
 0xc15   : > { %20581 = vmatprep.subr.bf16.mxu1 %v20580_v35  ;;  %v20588_v4 = vpack.c.bf16 %v8642_v63, %v8635_v61  ;;  %v9161_v61 = vand.u32 4294901760, %v17789_v45 }
 0xce0   : > { %v19345_v14 = vpop.f32.mrb[10].mxu0 }
 0xce1   : > { %v21098_v16 = vadd.f32 %v19345_v14, %v17783_v50  ;;  %v8475_v32 = vpop.f32.mrb[11].mxu0 }
 0xce2   : > { %v21099_v21 = vadd.f32 %v17783_v50, %v8475_v32 }
 0xce3   : > { %v8486_v22 = vmax.f32 %v21098_v16, 0.0 }
 0xce4   : > { %v8485_v24 = vmax.f32 %v21099_v21, 0.0 }
 0xce5   : > { %v8507_v25 = vsel %vm8502_vm13, %v8486_v22, 0 }
 0xce6   : > { %v8592_v27 = vand.u32 4294901760, %v8507_v25  ;;  %v8504_v29 = vsel %vm8502_vm13, %v8485_v24, 0 }
 0xce7   : > { %v8582_v30 = vand.u32 4294901760, %v8504_v29 }
 0xce8   : > { %v8593_v31 = vsub.f32 %v8507_v25, %v8592_v27 }
 0xce9   : > { %v8583_v33 = vsub.f32 %v8504_v29, %v8582_v30 }
 0xcea   : > { %v8594_v39 = vand.u32 4294901760, %v8593_v31 }
 0xceb   : > { %v8584_v40 = vand.u32 4294901760, %v8583_v33 }
 0xcec   : > { %v8595_v28 = vsub.f32 %v8593_v31, %v8594_v39 }
 0xced   : > { %v8585_v15 = vsub.f32 %v8583_v33, %v8584_v40 }
 0xcee   : > { %v8596_v53 = vand.u32 4294901760, %v8595_v28  ;;  %v17785_v28 = vld [vmem:[%s22852_s13] ss:$0 sm:$0xff] }
 0xcef   : > { %v8586_v51 = vand.u32 4294901760, %v8585_v15 }
 0xcf1   : > { %19362 = vmatprep.mubr.f32.mxu1 %v8586_v51 }
 0xcf2   : > { %19363 = vmatmul.mubr.f32.vlgmr.msra.gmra.mrb[12].mxu1 %v8596_v53 }
 0xcf3   : > { %20583 = vmatpush3.bf16.msra.mxu1 %v20580_v35  ;;  %19381 = vmatprep.mubr.f32.mxu1 %v8582_v30 }
 0xcf4   : > { %20585 = vmatprep.subr.bf16.mxu1 %v20584_v48 }
 0xcf7   : > { %20587 = vmatpush3.bf16.msra.mxu1 %v20584_v48  ;;  %v17790_v48 = vld [vmem:[%s22842_s3 + $0x38] sm:$0xff] }
 0xcf8   : > { %20589 = vmatprep.subr.bf16.mxu1 %v20588_v4  ;;  %v9164_v63 = vand.u32 4294901760, %v17790_v48 }
 0xcfa   : > { %v22263_v62 = vpack.c.bf16 %v9164_v63, %v9161_v61 }
 0xcfb   : > { %20591 = vmatpush3.bf16.msra.mxu1 %v20588_v4 }
 0xcfc   : > { %20593 = vmatprep.subr.bf16.mxu1 %v20592_v6 }
 0xcff   : > { %20595 = vmatpush3.bf16.msra.mxu1 %v20592_v6  ;;  %v9254_v6 = vsub.f32 %v9252_v0, %v9253_v59 }
 0xd00   : > { %20597 = vmatprep.subr.bf16.mxu1 %v20596_v7 }
 0xd02   : > { %19382 = vmatmul.mubr.f32.vlgmr.msra.gmra.mrb[12].mxu1 %v8592_v27 }
 0xd03   : > { %20599 = vmatpush3.bf16.msra.mxu1 %v20596_v7  ;;  %19400 = vmatprep.mubr.f32.mxu1 %v8583_v33  ;;  %v9259_v7 = vsub.f32 %v17789_v45, %v9161_v61 }
 0xd04   : > { %20601 = vmatprep.subr.bf16.mxu1 %v20600_v8 }
 0xd07   : > { %20603 = vmatpush3.bf16.msra.mxu1 %v20600_v8  ;;  %v9266_v8 = vsub.f32 %v17790_v48, %v9164_v63 }
 0xd08   : > { %20605 = vmatprep.subr.bf16.mxu1 %v20604_v44 }
 0xd09   : > { %v20680_v22 = vpack.c.bf16 %v9266_v8, %v9259_v7 }
 0xd0b   : > { %20607 = vmatpush3.bf16.msra.mxu1 %v20604_v44 }
 0xd0c   : > { %20609 = vmatprep.subr.bf16.mxu1 %v20608_v9 }
 0xd0f   : > { %20611 = vmatpush3.bf16.msra.mxu1 %v20608_v9  ;;  %v9255_v9 = vand.u32 4294901760, %v9254_v6 }
 0xd10   : > { %20613 = vmatprep.subr.bf16.mxu1 %v22185_v60 }
 0xd12   : > { %19401 = vmatmul.mubr.f32.vlgmr.msra.gmra.mrb[12].mxu1 %v8593_v31 }
 0xd13   : > { %20615 = vmatpush3.bf16.msra.mxu1 %v22185_v60  ;;  %19419 = vmatprep.mubr.f32.mxu1 %v8584_v40 }
 0xd14   : > { %20617 = vmatprep.subr.bf16.mxu1 %v22195_v17 }
 0xd17   : > { %20619 = vmatpush3.bf16.msra.mxu1 %v22195_v17 }
 0xd18   : > { %20621 = vmatprep.subr.bf16.mxu1 %v22205_v13 }
 0xd1b   : > { %20623 = vmatpush3.bf16.msra.mxu1 %v22205_v13 }
 0xd1c   : > { %20625 = vmatprep.subr.bf16.mxu1 %v22215_v47 }
 0xd1f   : > { %20627 = vmatpush3.bf16.msra.mxu1 %v22215_v47 }
 0xd20   : > { %20629 = vmatprep.subr.bf16.mxu1 %v20628_v10 }
 0xd22   : > { %19420 = vmatmul.mubr.f32.vlgmr.msra.gmra.mrb[12].mxu1 %v8594_v39 }
 0xd23   : > { %20631 = vmatpush3.bf16.msra.mxu1 %v20628_v10  ;;  %19438 = vmatprep.mubr.f32.mxu1 %v8582_v30  ;;  %v9260_v10 = vand.u32 4294901760, %v9259_v7 }
 0xd24   : > { %20633 = vmatprep.subr.bf16.mxu1 %v20632_v18 }
 0xd27   : > { %20635 = vmatpush3.bf16.msra.mxu1 %v20632_v18  ;;  %v9267_v18 = vand.u32 4294901760, %v9266_v8 }
 0xd28   : > { %20637 = vmatprep.subr.bf16.mxu1 %v20636_v20 }
 0xd29   : > { %v9268_v50 = vsub.f32 %v9266_v8, %v9267_v18  ;;  %v20696_v25 = vpack.c.bf16 %v9267_v18, %v9260_v10 }
 0xd2b   : > { %20639 = vmatpush3.bf16.msra.mxu1 %v20636_v20  ;;  %v9269_v16 = vand.u32 4294901760, %v9268_v50 }
 0xd2c   : > { %20641 = vmatprep.subr.bf16.mxu1 %v20640_v11 }
 0xd2f   : > { %20643 = vmatpush3.bf16.msra.mxu1 %v20640_v11  ;;  %v9261_v11 = vsub.f32 %v9259_v7, %v9260_v10 }
 0xd30   : > { %20645 = vmatprep.subr.bf16.mxu1 %v22185_v60 }
 0xd31   : > { %v9262_v14 = vand.u32 4294901760, %v9261_v11 }
 0xd32   : > { %19439 = vmatmul.mubr.f32.vlgmr.msra.gmra.mrb[12].mxu1 %v8592_v27 }
 0xd33   : > { %20647 = vmatpush3.bf16.msra.mxu1 %v22185_v60  ;;  %19457 = vmatprep.mubr.f32.mxu1 %v8582_v30  ;;  %v20672_v32 = vpack.c.bf16 %v9269_v16, %v9262_v14 }
 0xd34   : > { %20649 = vmatprep.subr.bf16.mxu1 %v22195_v17 }
 0xd37   : > { %20651 = vmatpush3.bf16.msra.mxu1 %v22195_v17 }
 0xd38   : > { %20653 = vmatprep.subr.bf16.mxu1 %v22205_v13 }
 0xd3b   : > { %20655 = vmatpush3.bf16.msra.mxu1 %v22205_v13 }
 0xd3c   : > { %20657 = vmatprep.subr.bf16.mxu1 %v22215_v47 }
 0xd3f   : > { %20659 = vmatpush3.bf16.msra.mxu1 %v22215_v47 }
 0xd42   : > { %19458 = vmatmul.mubr.f32.vlgmr.msra.gmra.mrb[12].mxu1 %v8592_v27 }
 0xe15   : > { %v19459_v55 = vpop.f32.mrb[12].mxu1 }
 0xe16   : > { %v21100_v60 = vadd.f32 %v19459_v55, %v17784_v54  ;;  %v9079_v56 = vpop.f32.mrb[13].mxu1 }
 0xe17   : > { %v21101_v57 = vadd.f32 %v17784_v54, %v9079_v56  ;;  %v17786_v54 = vld [vmem:[%s22853_s14] ss:$0 sm:$0xff] }
 0xe18   : > { %v9090_v19 = vadd.f32 %v21100_v60, %v22163_v1 }
 0xe19   : > { %v9089_v17 = vadd.f32 %v21101_v57, %v22165_v2  ;;  %v17787_v2 = vld [vmem:[%s22842_s3 + $0x20] sm:$0xff] }
 0xe1a   : > { %v9094_v35 = vsel %vm7897_vm12, %v9090_v19, 0.0  ;;  %v9155_v12 = vand.u32 4294901760, %v17787_v2 }
 0xe1b   : > { %9095 = vadd.xlane.f32.xlu0 %v9094_v35  ;;  %v9091_v13 = vsel %vm1119_vm2, %v9089_v17, 0.0 }
 0xe1c   : > { %9092 = vadd.xlane.f32.xlu1 %v9091_v13  ;;  %v22261_v3 = vpack.c.bf16 %v9158_v34, %v9155_v12  ;;  %v9245_v4 = vsub.f32 %v17787_v2, %v9155_v12 }
 0xe1e   : > { %20661 = vmatprep.subr.bf16.mxu0 %v22261_v3  ;;  %v9246_v5 = vand.u32 4294901760, %v9245_v4  ;;  %v20676_v21 = vpack.c.bf16 %v9252_v0, %v9245_v4 }
 0xe1f   : > { %20663 = vmatpush3.bf16.msra.mxu0 %v22261_v3 }
 0xe20   : > { %20665 = vmatprep.subr.bf16.mxu0 %v22263_v62  ;;  %v9247_v42 = vsub.f32 %v9245_v4, %v9246_v5  ;;  %v20692_v24 = vpack.c.bf16 %v9253_v59, %v9246_v5 }
 0xe22   : > { %v9248_v44 = vand.u32 4294901760, %v9247_v42 }
 0xe23   : > { %20667 = vmatpush3.bf16.msra.mxu0 %v22263_v62 }
 0xe24   : > { %v20668_v20 = vpack.c.bf16 %v9255_v9, %v9248_v44 }
 0xe26   : > { %20669 = vmatprep.subr.bf16.mxu0 %v20668_v20 }
 0xea8   : > { %v9096_v47 = vpop.xlane.xlu0 %9095 }
 0xea9   : > { %v9098_v52 = vmul.f32 0.03125, %v9096_v47  ;;  %v9093_v58 = vpop.xlane.xlu1 %9092 }
 0xeaa   : > { %v9097_v37 = vmul.f32 0.03125, %v9093_v58 }
 0xeab   : > { %v9100_v23 = vsub.f32 %v9090_v19, %v9098_v52 }
 0xeac   : > { %v9099_v26 = vsub.f32 %v9089_v17, %v9097_v37 }
 0xead   : > { %v9102_v36 = vmul.f32 %v9100_v23, %v9100_v23 }
 0xeae   : > { %v9101_v41 = vmul.f32 %v9099_v26, %v9099_v26 }
 0xeaf   : > { %v9106_v38 = vsel %vm7897_vm12, %v9102_v36, 0.0 }
 0xeb0   : > { %9107 = vadd.xlane.f32.xlu0 %v9106_v38  ;;  %v9103_v1 = vsel %vm1119_vm2, %v9101_v41, 0.0  ;;  %v17792_v38 = vld [vmem:[%s22843_s4 + $0x1] ss:$0 sm:$0xff] }
 0xeb1   : > { %9104 = vadd.xlane.f32.xlu1 %v9103_v1 }
 0xf3d   : > { %v9108_v27 = vpop.xlane.xlu0 %9107 }
 0xf3e   : > { %v9110_v29 = vmul.f32 0.03125, %v9108_v27  ;;  %v9105_v30 = vpop.xlane.xlu1 %9104 }
 0xf3f   : > { %v9109_v31 = vmul.f32 0.03125, %v9105_v30 }
 0xf40   : > { %v9112_v33 = vadd.f32 1e-05, %v9110_v29 }
 0xf41   : > { %v9111_v39 = vadd.f32 1e-05, %v9109_v31 }
 0xf42   : > { %21500 = vrsqrt.f32 %v9112_v33 }
 0xf43   : > { %21502 = vrsqrt.f32 %v9111_v39 }
 0xf4c   : > { %v21501_v40 = vpop.eup %21500 }
 0xf4d   : > { %v21503_v15 = vpop.eup %21502  ;;  %v9116_v51 = vmul.f32 %v21501_v40, %v9100_v23 }
 0xf4e   : > { %v9115_v53 = vmul.f32 %v21503_v15, %v9099_v26 }
 0xf4f   : > { %v9125_v55 = vmul.f32 %v17785_v28, %v9116_v51 }
 0xf50   : > { %v9124_v60 = vmul.f32 %v17785_v28, %v9115_v53 }
 0xf51   : > { %v22275_v56 = vadd.f32 %v17786_v54, %v9125_v55 }
 0xf52   : > { %v22277_v57 = vadd.f32 %v17786_v54, %v9124_v60 }
 0xf53   : > { %v9152_v19 = vsel %vm1119_vm2, %v22275_v56, 0 }
 0xf54   : > { %v9149_v17 = vsel %vm1119_vm2, %v22277_v57, 0  ;;  %v9233_v35 = vand.u32 4294901760, %v9152_v19 }
 0xf55   : > { %v9223_v13 = vand.u32 4294901760, %v9149_v17 }
 0xf56   : > { %v9234_v47 = vsub.f32 %v9152_v19, %v9233_v35 }
 0xf57   : > { %v9224_v52 = vsub.f32 %v9149_v17, %v9223_v13 }
 0xf58   : > { %v9235_v58 = vand.u32 4294901760, %v9234_v47 }
 0xf59   : > { %v9225_v37 = vand.u32 4294901760, %v9224_v52 }
 0xf5a   : > { %v9236_v23 = vsub.f32 %v9234_v47, %v9235_v58 }
 0xf5b   : > { %v9226_v26 = vsub.f32 %v9224_v52, %v9225_v37 }
 0xf5c   : > { %v9237_v41 = vand.u32 4294901760, %v9236_v23 }
 0xf5d   : > { %v9227_v36 = vand.u32 4294901760, %v9226_v26 }
 0xf5f   : > { %19468 = vmatprep.mubr.f32.mxu0 %v9227_v36 }
 0xf60   : > { %19469 = vmatmul.mubr.f32.vlgmr.msra.gmra.mrb[12].mxu0 %v9237_v41 }
 0xf61   : > { %20671 = vmatpush3.bf16.msra.mxu0 %v20668_v20  ;;  %19479 = vmatprep.mubr.f32.mxu0 %v9223_v13 }
 0xf62   : > { %20673 = vmatprep.subr.bf16.mxu0 %v20672_v32 }
 0xf65   : > { %20675 = vmatpush3.bf16.msra.mxu0 %v20672_v32 }
 0xf66   : > { %20677 = vmatprep.subr.bf16.mxu0 %v20676_v21 }
 0xf68   : > { %19480 = vmatmul.mubr.f32.vlgmr.msra.gmra.mrb[12].mxu0 %v9233_v35 }
 0xf69   : > { %20679 = vmatpush3.bf16.msra.mxu0 %v20676_v21  ;;  %19490 = vmatprep.mubr.f32.mxu0 %v9224_v52 }
 0xf6a   : > { %20681 = vmatprep.subr.bf16.mxu0 %v20680_v22 }
 0xf6d   : > { %20683 = vmatpush3.bf16.msra.mxu0 %v20680_v22 }
 0xf6e   : > { %20685 = vmatprep.subr.bf16.mxu0 %v22261_v3 }
 0xf70   : > { %19491 = vmatmul.mubr.f32.vlgmr.msra.gmra.mrb[12].mxu0 %v9234_v47 }
 0xf71   : > { %20687 = vmatpush3.bf16.msra.mxu0 %v22261_v3  ;;  %19501 = vmatprep.mubr.f32.mxu0 %v9225_v37 }
 0xf72   : > { %20689 = vmatprep.subr.bf16.mxu0 %v22263_v62 }
 0xf75   : > { %20691 = vmatpush3.bf16.msra.mxu0 %v22263_v62 }
 0xf76   : > { %20693 = vmatprep.subr.bf16.mxu0 %v20692_v24 }
 0xf78   : > { %19502 = vmatmul.mubr.f32.vlgmr.msra.gmra.mrb[12].mxu0 %v9235_v58 }
 0xf79   : > { %20695 = vmatpush3.bf16.msra.mxu0 %v20692_v24  ;;  %19512 = vmatprep.mubr.f32.mxu0 %v9223_v13 }
 0xf7a   : > { %20697 = vmatprep.subr.bf16.mxu0 %v20696_v25 }
 0xf7d   : > { %20699 = vmatpush3.bf16.msra.mxu0 %v20696_v25 }
 0xf7e   : > { %20701 = vmatprep.subr.bf16.mxu0 %v22261_v3 }
 0xf80   : > { %19513 = vmatmul.mubr.f32.vlgmr.msra.gmra.mrb[12].mxu0 %v9233_v35 }
 0xf81   : > { %20703 = vmatpush3.bf16.msra.mxu0 %v22261_v3  ;;  %19523 = vmatprep.mubr.f32.mxu0 %v9223_v13 }
 0xf82   : > { %20705 = vmatprep.subr.bf16.mxu0 %v22263_v62 }
 0xf85   : > { %20707 = vmatpush3.bf16.msra.mxu0 %v22263_v62 }
 0xf88   : > { %19524 = vmatmul.mubr.f32.vlgmr.msra.gmra.mrb[12].mxu0 %v9233_v35 }
0x105b   : > { %v19525_v1 = vpop.f32.mrb[12].mxu0 }
0x105c   : > { %v22294_v2 = vadd.f32 %v19525_v1, %v17792_v38  ;;  %v9672_v43 = vpop.f32.mrb[13].mxu0 }
0x105d   : > { %v22296_v45 = vadd.f32 %v17792_v38, %v9672_v43 }
0x105e   : > { %9700 = vrot.lane.b32.xlu0 %v22294_v2, %s21553_s18  ;;  %v9704_v62 = vsel %vm1672_vm3, %v22294_v2, 0 }
0x105f   : > { %9698 = vrot.lane.b32.xlu1 %v22296_v45, %s21553_s18  ;;  %v9702_v12 = vsel %vm1672_vm3, %v22296_v45, 0  ;;  %v22317_v4 = vand.u32 4294901760, %v9704_v62  ;;  %s22878_s18 = smov 112  }
0x1060   : > { %v22304_v34 = vand.u32 4294901760, %v9702_v12 }
0x1061   : > { %v9788_v42 = vsub.f32 %v9704_v62, %v22317_v4 }
0x1062   : > { %11250 = vrot.lane.b32.xlu0 %v22296_v45, %s21554_s19  ;;  %v9778_v48 = vsub.f32 %v9702_v12, %v22304_v34 }
0x1063   : > { %11256 = vrot.lane.b32.xlu1 %v22294_v2, %s21552_s30  ;;  %v9789_v18 = vand.u32 4294901760, %v9788_v42 }
0x1064   : > { %v9779_v61 = vand.u32 4294901760, %v9778_v48 }
0x1065   : > { %v9790_v16 = vsub.f32 %v9788_v42, %v9789_v18 }
0x1066   : > { %v9780_v63 = vsub.f32 %v9778_v48, %v9779_v61 }
0x1067   : > { %11254 = vrot.lane.b32.xlu1 %v22296_v45, %s21552_s30  ;;  %v9791_v22 = vand.u32 4294901760, %v9790_v16  ;;  %s22877_s30 = smov 80  }
0x1068   : > { %v9781_v3 = vand.u32 4294901760, %v9780_v63 }
0x106a   : > { %19530 = vmatprep.mubr.f32.mxu0 %v9781_v3 }
0x106b   : > { %11252 = vrot.lane.b32.xlu1 %v22294_v2, %s21554_s19  ;;  %s22879_s19 = smov 56  }
0x10d0   : > { %v9701_v0 = vpop.permute.xlu0 %9700 }
0x10d1   : > { %v9708_v5 = vsel %vm1672_vm3, %v9701_v0, 0  ;;  %v9699_v59 = vpop.permute.xlu1 %9698 }
0x10d2   : > { %v9714_v6 = vand.u32 4294901760, %v9708_v5  ;;  %v9706_v7 = vsel %vm1672_vm3, %v9699_v59, 0 }
0x10d3   : > { %v9711_v8 = vand.u32 4294901760, %v9706_v7 }
0x10d4   : > { %v9806_v44 = vsub.f32 %v9708_v5, %v9714_v6  ;;  %v11251_v31 = vpop.permute.xlu0 %11250 }
0x10d5   : > { %v20708_v9 = vpack.c.bf16 %v9714_v6, %v9711_v8  ;;  %v9799_v10 = vsub.f32 %v9706_v7, %v9711_v8  ;;  %v11257_v27 = vpop.permute.xlu1 %11256  ;;  %v11258_v40 = vsel %vm1672_vm3, %v11251_v31, 0 }
0x10d6   : > { %v9807_v20 = vand.u32 4294901760, %v9806_v44  ;;  %v11264_v39 = vsel %vm1672_vm3, %v11257_v27, 0  ;;  %v11333_v51 = vand.u32 4294901760, %v11258_v40 }
0x10d7   : > { %v9800_v11 = vand.u32 4294901760, %v9799_v10  ;;  %20709 = vmatprep.subr.bf16.mxu0 %v20708_v9  ;;  %v20716_v25 = vpack.c.bf16 %v9806_v44, %v9799_v10  ;;  %v11270_v15 = vand.u32 4294901760, %v11264_v39 }
0x10d8   : > { %v9808_v50 = vsub.f32 %v9806_v44, %v9807_v20  ;;  %20711 = vmatpush3.bf16.xpose.msra.mxu0 %v20708_v9  ;;  %v11334_v60 = vsub.f32 %v11258_v40, %v11333_v51 }
0x10d9   : > { %v9801_v14 = vsub.f32 %v9799_v10, %v9800_v11  ;;  %v11255_v29 = vpop.permute.xlu1 %11254  ;;  %v20724_v30 = vpack.c.bf16 %v9807_v20, %v9800_v11  ;;  %v11362_v55 = vsub.f32 %v11264_v39, %v11270_v15 }
0x10da   : > { %v9809_v32 = vand.u32 4294901760, %v9808_v50  ;;  %v11262_v33 = vsel %vm1672_vm3, %v11255_v29, 0  ;;  %v11335_v47 = vand.u32 4294901760, %v11334_v60 }
0x10db   : > { %v9802_v21 = vand.u32 4294901760, %v9801_v14  ;;  %v11267_v28 = vand.u32 4294901760, %v11262_v33  ;;  %v11363_v35 = vand.u32 4294901760, %v11362_v55 }
0x10dc   : > { %v11336_v26 = vsub.f32 %v11334_v60, %v11335_v47 }
0x10dd   : > { %v20712_v24 = vpack.c.bf16 %v9809_v32, %v9802_v21  ;;  %v11355_v53 = vsub.f32 %v11262_v33, %v11267_v28  ;;  %v11253_v54 = vpop.permute.xlu1 %11252  ;;  %v20756_v52 = vpack.c.bf16 %v11270_v15, %v11267_v28  ;;  %v11364_v37 = vsub.f32 %v11362_v55, %v11363_v35 }
0x10de   : > { %v11260_v19 = vsel %vm1672_vm3, %v11253_v54, 0  ;;  %v11337_v1 = vand.u32 4294901760, %v11336_v26 }
0x10df   : > { %19531 = vmatmul.mubr.f32.vlgmr.msra.gmra.mrb[14].mxu0 %v9791_v22  ;;  %20713 = vmatprep.subr.bf16.mxu0 %v20712_v24  ;;  %v11356_v17 = vand.u32 4294901760, %v11355_v53  ;;  %v11343_v13 = vand.u32 4294901760, %v11260_v19  ;;  %v11365_v38 = vand.u32 4294901760, %v11364_v37 }
0x10e0   : > { %20715 = vmatpush3.bf16.xpose.msra.mxu0 %v20712_v24  ;;  %19537 = vmatprep.mubr.f32.mxu0 %v22304_v34 }
0x10e1   : > { %20717 = vmatprep.subr.bf16.mxu0 %v20716_v25  ;;  %v11357_v58 = vsub.f32 %v11355_v53, %v11356_v17  ;;  %v11344_v23 = vsub.f32 %v11260_v19, %v11343_v13 }
0x10e3   : > { %v11358_v36 = vand.u32 4294901760, %v11357_v58  ;;  %v11345_v41 = vand.u32 4294901760, %v11344_v23 }
0x10e5   : > { %v20760_v43 = vpack.c.bf16 %v11365_v38, %v11358_v36  ;;  %v11346_v12 = vsub.f32 %v11344_v23, %v11345_v41 }
0x10e7   : > { %19538 = vmatmul.mubr.f32.vlgmr.msra.gmra.mrb[14].mxu0 %v22317_v4 }
0x10e8   : > { %20719 = vmatpush3.bf16.xpose.msra.mxu0 %v20716_v25  ;;  %19544 = vmatprep.mubr.f32.mxu0 %v9778_v48  ;;  %v11347_v48 = vand.u32 4294901760, %v11346_v12 }
0x10e9   : > { %20721 = vmatprep.subr.bf16.mxu0 %v20708_v9 }
0x10ef   : > { %19545 = vmatmul.mubr.f32.vlgmr.msra.gmra.mrb[14].mxu0 %v9788_v42 }
0x10f0   : > { %20723 = vmatpush3.bf16.xpose.msra.mxu0 %v20708_v9  ;;  %19551 = vmatprep.mubr.f32.mxu0 %v9779_v61  ;;  %v20764_v61 = vpack.c.bf16 %v11362_v55, %v11355_v53 }
0x10f1   : > { %20725 = vmatprep.subr.bf16.mxu0 %v20724_v30 }
0x10f7   : > { %19552 = vmatmul.mubr.f32.vlgmr.msra.gmra.mrb[14].mxu0 %v9789_v18 }
0x10f8   : > { %20727 = vmatpush3.bf16.xpose.msra.mxu0 %v20724_v30  ;;  %19558 = vmatprep.mubr.f32.mxu0 %v22304_v34 }
0x10f9   : > { %20729 = vmatprep.subr.bf16.mxu0 %v20708_v9 }
0x10ff   : > { %19559 = vmatmul.mubr.f32.vlgmr.msra.gmra.mrb[14].mxu0 %v22317_v4 }
0x1100   : > { %20731 = vmatpush3.bf16.xpose.msra.mxu0 %v20708_v9  ;;  %19565 = vmatprep.mubr.f32.mxu0 %v22304_v34  ;;  %v20772_v34 = vpack.c.bf16 %v11363_v35, %v11356_v17 }
0x1101   : > { %20757 = vmatprep.subr.bf16.mxu0 %v20756_v52 }
0x1107   : > { %19566 = vmatmul.mubr.f32.vlgmr.msra.gmra.mrb[14].mxu0 %v22317_v4 }
0x1108   : > { %20759 = vmatpush3.bf16.xpose.msra.mxu0 %v20756_v52  ;;  %19644 = vmatprep.mubr.f32.mxu0 %v11337_v1 }
0x1109   : > { %20761 = vmatprep.subr.bf16.mxu0 %v20760_v43 }
0x110f   : > { %19645 = vmatmul.mubr.f32.vlgmr.msra.gmra.mrb[16].mxu0 %v11347_v48 }
0x1110   : > { %20763 = vmatpush3.bf16.xpose.msra.mxu0 %v20760_v43  ;;  %19651 = vmatprep.mubr.f32.mxu0 %v11333_v51 }
0x1111   : > { %20765 = vmatprep.subr.bf16.mxu0 %v20764_v61 }
0x1117   : > { %19652 = vmatmul.mubr.f32.vlgmr.msra.gmra.mrb[16].mxu0 %v11343_v13 }
0x1118   : > { %20767 = vmatpush3.bf16.xpose.msra.mxu0 %v20764_v61  ;;  %19658 = vmatprep.mubr.f32.mxu0 %v11334_v60 }
0x1119   : > { %20769 = vmatprep.subr.bf16.mxu0 %v20756_v52 }
0x111f   : > { %19659 = vmatmul.mubr.f32.vlgmr.msra.gmra.mrb[16].mxu0 %v11344_v23 }
0x1120   : > { %20771 = vmatpush3.bf16.xpose.msra.mxu0 %v20756_v52  ;;  %19665 = vmatprep.mubr.f32.mxu0 %v11335_v47 }
0x1121   : > { %20773 = vmatprep.subr.bf16.mxu0 %v20772_v34 }
0x1127   : > { %19666 = vmatmul.mubr.f32.vlgmr.msra.gmra.mrb[16].mxu0 %v11345_v41 }
0x1128   : > { %20775 = vmatpush3.bf16.xpose.msra.mxu0 %v20772_v34  ;;  %19672 = vmatprep.mubr.f32.mxu0 %v11333_v51 }
0x1129   : > { %20777 = vmatprep.subr.bf16.mxu0 %v20756_v52 }
0x112f   : > { %19673 = vmatmul.mubr.f32.vlgmr.msra.gmra.mrb[16].mxu0 %v11343_v13 }
0x1130   : > { %20779 = vmatpush3.bf16.xpose.msra.mxu0 %v20756_v52  ;;  %19679 = vmatprep.mubr.f32.mxu0 %v11333_v51 }
0x1137   : > { %19680 = vmatmul.mubr.f32.vlgmr.msra.gmra.mrb[16].mxu0 %v11343_v13 }
0x11da   : > { %v19567_v63 = vpop.f32.mrb[14].mxu0 }
0x11db   : > { %v10213_v3 = vmul.f32 0.35355338, %v19567_v63  ;;  %v10202_v62 = vpop.f32.mrb[15].mxu0 }
0x11dc   : > { %v10212_v4 = vmul.f32 0.35355338, %v10202_v62 }
0x11dd   : > { %v10215_v0 = vadd.f32 %v10213_v3, %v21781_v46 }
0x11de   : > { %v10214_v5 = vadd.f32 %v10212_v4, %v21783_v49 }
0x11df   : > { %v10219_v59 = vsel %vm2191_vm9, %v10215_v0, -inf }
0x11e0   : > { %10220 = vmax.xlane.f32.xlu1 %v10219_v59  ;;  %v10216_v42 = vsel %vm2187_vm10, %v10214_v5, -inf }
0x11e1   : > { %10217 = vmax.xlane.f32.xlu0 %v10216_v42 }
0x11f1   : > { %10240 = vrot.lane.b32.xlu1 %v22294_v2, %s21556_s1 }
0x11f5   : > { %12810 = vrot.lane.b32.xlu1 %v22296_v45, %s22877_s30 }
0x11f9   : > { %12812 = vrot.lane.b32.xlu1 %v22294_v2, %s22877_s30 }
0x11fd   : > { %12808 = vrot.lane.b32.xlu1 %v22294_v2, %s22878_s18 }
0x120a   : > { %v19681_v6 = vpop.f32.mrb[16].mxu0 }
0x120b   : > { %v11758_v7 = vpop.f32.mrb[17].mxu0  ;;  %v11769_v8 = vmul.f32 0.35355338, %v19681_v6 }
0x120c   : > { %v11768_v37 = vmul.f32 0.35355338, %v11758_v7 }
0x120d   : > { %v11771_v44 = vadd.f32 %v11769_v8, %v21781_v46 }
0x120e   : > { %v22379_v36 = vadd.f32 %v11768_v37, %v21783_v49 }
0x120f   : > { %v11775_v9 = vsel %vm2191_vm9, %v11771_v44, -inf }
0x1210   : > { %v11772_v43 = vsel %vm2187_vm10, %v22379_v36, -inf }
0x1221   : > { %11776 = vmax.xlane.f32.xlu1 %v11775_v9 }
0x1232   : > { %11796 = vrot.lane.b32.xlu1 %v22294_v2, %s22879_s19 }
0x1236   : > { %14366 = vrot.lane.b32.xlu1 %v22296_v45, %s22880_s29 }
0x123a   : > { %14368 = vrot.lane.b32.xlu1 %v22294_v2, %s22880_s29  ;;  %s22884_s29 = sshll.u32 %s22886_s25, 4 }
0x123b   : > { %s548_s21 = scalar_lea.vmem %s22856_s17, %s22884_s29 }
0x123e   : > { %14364 = vrot.lane.b32.xlu1 %v22294_v2, %s22881_s0 }
0x126d   : > { %v10221_v10 = vpop.xlane.xlu1 %10220 }
0x126e   : > { %v10223_v18 = vsub.f32 %v10215_v0, %v10221_v10  ;;  %v10218_v20 = vpop.xlane.xlu0 %10217 }
0x126f   : > { %v10222_v11 = vsub.f32 %v10214_v5, %v10218_v20 }
0x1270   : > { %v10226_v50 = vmul.f32 1.442695, %v10223_v18 }
0x1271   : > { %v10224_v14 = vmul.f32 1.442695, %v10222_v11  ;;  %v10241_v16 = vpop.permute.xlu1 %10240 }
0x1272   : > { %21504 = vpow2.f32 %v10226_v50  ;;  %v10249_v59 = vsel %vm2222_vm11, %v10241_v16, 0 }
0x1273   : > { %21506 = vpow2.f32 %v10224_v14  ;;  %v10255_v6 = vand.u32 4294901760, %v10249_v59 }
0x1275   : > { %v12811_v32 = vpop.permute.xlu1 %12810 }
0x1276   : > { %v12818_v21 = vsel %vm1672_vm3, %v12811_v32, 0 }
0x1277   : > { %v12823_v22 = vand.u32 4294901760, %v12818_v21 }
0x1279   : > { %v12911_v24 = vsub.f32 %v12818_v21, %v12823_v22  ;;  %v12813_v25 = vpop.permute.xlu1 %12812 }
0x127a   : > { %v12820_v27 = vsel %vm1672_vm3, %v12813_v25, 0 }
0x127b   : > { %v12912_v29 = vand.u32 4294901760, %v12911_v24  ;;  %v12826_v30 = vand.u32 4294901760, %v12820_v27 }
0x127c   : > { %v21505_v31 = vpop.eup %21504 }
0x127d   : > { %v22356_v33 = vpack.c.bf16 %v12826_v30, %v12823_v22  ;;  %v12918_v39 = vsub.f32 %v12820_v27, %v12826_v30  ;;  %v10231_v40 = vsel %vm2191_vm9, %v21505_v31, 0.0  ;;  %v22359_v28 = vpop.eup %21506  ;;  %v12913_v15 = vsub.f32 %v12911_v24, %v12912_v29  ;;  %v12809_v13 = vpop.permute.xlu1 %12808 }
0x127e   : > { %10232 = vadd.xlane.f32.xlu0 %v10231_v40  ;;  %v10228_v55 = vsel %vm2187_vm10, %v22359_v28, 0.0  ;;  %v12816_v7 = vsel %vm1672_vm3, %v12809_v13, 0 }
0x127f   : > { %v12919_v51 = vand.u32 4294901760, %v12918_v39  ;;  %20805 = vmatprep.subr.bf16.mxu0 %v22356_v33  ;;  %v22362_v53 = vpack.c.bf16 %v12918_v39, %v12911_v24  ;;  %v12914_v19 = vand.u32 4294901760, %v12913_v15  ;;  %v22421_v9 = vand.u32 4294901760, %v12816_v7 }
0x1280   : > { %20807 = vmatpush3.bf16.xpose.msra.mxu0 %v22356_v33 }
0x1281   : > { %v12920_v54 = vsub.f32 %v12918_v39, %v12919_v51  ;;  %v22367_v60 = vpack.c.bf16 %v12919_v51, %v12912_v29  ;;  %v22425_v50 = vsub.f32 %v12816_v7, %v22421_v9 }
0x1282   : > { %10229 = vadd.xlane.f32.xlu0 %v10228_v55 }
0x1283   : > { %v12921_v17 = vand.u32 4294901760, %v12920_v54  ;;  %v12901_v39 = vand.u32 4294901760, %v22425_v50 }
0x1285   : > { %v22369_v35 = vpack.c.bf16 %v12921_v17, %v12914_v19 }
0x1287   : > { %20809 = vmatprep.subr.bf16.mxu0 %v22369_v35 }
0x1298   : > { %10238 = vrot.lane.b32.xlu0 %v22296_v45, %s21556_s1 }
0x129c   : > { %12806 = vrot.lane.b32.xlu0 %v22296_v45, %s22878_s18 }
0x12ae   : > { %v11777_v47 = vpop.xlane.xlu1 %11776 }
0x12af   : > { %v11779_v52 = vsub.f32 %v11771_v44, %v11777_v47  ;;  %v22419_v44 = vsub.f32 %v10249_v59, %v10255_v6  ;;  %v12902_v47 = vsub.f32 %v22425_v50, %v12901_v39 }
0x12b1   : > { %v11782_v58 = vmul.f32 1.442695, %v11779_v52  ;;  %v10348_v18 = vand.u32 4294901760, %v22419_v44 }
0x12b2   : > { %v22376_v23 = vpop.permute.xlu1 %11796 }
0x12b3   : > { %21508 = vpow2.f32 %v11782_v58  ;;  %v10349_v22 = vsub.f32 %v22419_v44, %v10348_v18 }
0x12b5   : > { %v10350_v55 = vand.u32 4294901760, %v10349_v22 }
0x12b6   : > { %v14367_v26 = vpop.permute.xlu1 %14366 }
0x12b7   : > { %v22382_v41 = vsel %vm1672_vm3, %v14367_v26, 0 }
0x12b8   : > { %v14379_v38 = vand.u32 4294901760, %v22382_v41 }
0x12ba   : > { %v14369_v1 = vpop.permute.xlu1 %14368  ;;  %v22393_v48 = vsub.f32 %v22382_v41, %v14379_v38 }
0x12bb   : > { %v22388_v12 = vsel %vm1672_vm3, %v14369_v1, 0  ;;  %11773 = vmax.xlane.f32.xlu0 %v11772_v43 }
0x12bc   : > { %v14382_v61 = vand.u32 4294901760, %v22388_v12  ;;  %v14468_v62 = vand.u32 4294901760, %v22393_v48 }
0x12bd   : > { %v22396_v34 = vpop.eup %21508 }
0x12be   : > { %v22401_v63 = vsub.f32 %v22388_v12, %v14382_v61  ;;  %v11787_v3 = vsel %vm2191_vm9, %v22396_v34, 0.0 }
0x12bf   : > { %11788 = vadd.xlane.f32.xlu0 %v11787_v3  ;;  %v12903_v3 = vand.u32 4294901760, %v12902_v47 }
0x12c0   : > { %v14475_v4 = vand.u32 4294901760, %v22401_v63  ;;  %v22409_v0 = vpack.c.bf16 %v22401_v63, %v22393_v48 }
0x12c2   : > { %v22415_v5 = vpack.c.bf16 %v14475_v4, %v14468_v62 }
0x130b   : > { %v10233_v42 = vpop.xlane.xlu0 %10232 }
0x130c   : > { %21510 = vrcp.f32 %v10233_v42 }
0x130f   : > { %v10230_v8 = vpop.xlane.xlu0 %10229 }
0x1310   : > { %21512 = vrcp.f32 %v10230_v8 }
0x1313   : > { %v10239_v10 = vpop.permute.xlu0 %10238 }
0x1314   : > { %v10252_v20 = vand.u32 4294901760, %v10239_v10 }
0x1316   : > { %v21511_v11 = vpop.eup %21510  ;;  %v22427_v14 = vpack.c.bf16 %v10255_v6, %v10252_v20  ;;  %v10340_v16 = vsub.f32 %v10239_v10, %v10252_v20 }
0x1317   : > { %v10237_v32 = vmul.f32 %v21511_v11, %v21505_v31  ;;  %v12807_v21 = vpop.permute.xlu0 %12806  ;;  %v11805_v11 = vsel %vm2222_vm11, %v22376_v23, 0 }
0x1318   : > { %v10341_v24 = vand.u32 4294901760, %v10340_v16  ;;  %v12814_v25 = vsel %vm1672_vm3, %v12807_v21, 0  ;;  %20733 = vmatprep.subr.bf16.mxu1 %v22427_v14  ;;  %v20740_v8 = vpack.c.bf16 %v22419_v44, %v10340_v16  ;;  %v14476_v44 = vsub.f32 %v22401_v63, %v14475_v4 }
0x1319   : > { %v22434_v27 = vand.u32 4294901760, %v12814_v25  ;;  %20735 = vmatpush3.bf16.msra.mxu1 %v22427_v14  ;;  %v10247_v29 = vsel %vm2187_vm10, %v10237_v32, 0 }
0x131a   : > { %v21513_v30 = vpop.eup %21512  ;;  %v10342_v31 = vsub.f32 %v10340_v16, %v10341_v24  ;;  %v22439_v40 = vand.u32 4294901760, %v10247_v29  ;;  %v14477_v12 = vand.u32 4294901760, %v14476_v44  ;;  %v14365_v16 = vpop.permute.xlu1 %14364 }
0x131b   : > { %v10235_v15 = vmul.f32 %v21513_v30, %v22359_v28  ;;  %v12890_v51 = vsub.f32 %v12814_v25, %v22434_v27  ;;  %v14372_v32 = vsel %vm1672_vm3, %v14365_v16, 0 }
0x131c   : > { %v10343_v54 = vand.u32 4294901760, %v10342_v31  ;;  %v10329_v19 = vsub.f32 %v10247_v29, %v22439_v40 }
0x131d   : > { %v12891_v17 = vand.u32 4294901760, %v12890_v51  ;;  %v10244_v13 = vsel %vm2187_vm10, %v10235_v15, 0 }
0x131e   : > { %v20736_v52 = vpack.c.bf16 %v10350_v55, %v10343_v54  ;;  %v10318_v58 = vand.u32 4294901760, %v10244_v13  ;;  %v10330_v26 = vand.u32 4294901760, %v10329_v19 }
0x131f   : > { %v12892_v37 = vsub.f32 %v12890_v51, %v12891_v17 }
0x1320   : > { %20737 = vmatprep.subr.bf16.mxu1 %v20736_v52  ;;  %v10319_v1 = vsub.f32 %v10244_v13, %v10318_v58  ;;  %v10331_v59 = vsub.f32 %v10329_v19, %v10330_v26 }
0x1321   : > { %v12893_v43 = vand.u32 4294901760, %v12892_v37 }
0x1322   : > { %v10320_v28 = vand.u32 4294901760, %v10319_v1  ;;  %v10332_v7 = vand.u32 4294901760, %v10331_v59 }
0x1323   : > { %19758 = vmatprep.mubr.f32.mxu0 %v12893_v43 }
0x1324   : > { %19759 = vmatmul.mubr.f32.vlgmr.msra.gmra.mrb[18].mxu0 %v12903_v3  ;;  %v10321_v42 = vsub.f32 %v10319_v1, %v10320_v28 }
0x1325   : > { %20811 = vmatpush3.bf16.xpose.msra.mxu0 %v22369_v35  ;;  %19765 = vmatprep.mubr.f32.mxu0 %v22434_v27  ;;  %v22469_v35 = vpack.c.bf16 %v14382_v61, %v14379_v38 }
0x1326   : > { %20813 = vmatprep.subr.bf16.mxu0 %v22362_v53  ;;  %v10322_v6 = vand.u32 4294901760, %v10321_v42 }
0x1328   : > { %19572 = vmatprep.mubr.f32.mxu1 %v10322_v6 }
0x1329   : > { %19573 = vmatmul.mubr.f32.vlgmr.msra.gmra.mrb[14].mxu1 %v10332_v7 }
0x132a   : > { %20739 = vmatpush3.bf16.msra.mxu1 %v20736_v52  ;;  %19579 = vmatprep.mubr.f32.mxu1 %v10318_v58 }
0x132b   : > { %20741 = vmatprep.subr.bf16.mxu1 %v20740_v8 }
0x132c   : > { %19766 = vmatmul.mubr.f32.vlgmr.msra.gmra.mrb[18].mxu0 %v22421_v9 }
0x132d   : > { %20815 = vmatpush3.bf16.xpose.msra.mxu0 %v22362_v53  ;;  %19772 = vmatprep.mubr.f32.mxu0 %v12890_v51  ;;  %v20748_v53 = vpack.c.bf16 %v10348_v18, %v10341_v24  ;;  %v14455_v24 = vand.u32 4294901760, %v14372_v32 }
0x132e   : > { %20817 = vmatprep.subr.bf16.mxu0 %v22356_v33 }
0x132f   : > { %v14456_v30 = vsub.f32 %v14372_v32, %v14455_v24 }
0x1331   : > { %19580 = vmatmul.mubr.f32.vlgmr.msra.gmra.mrb[14].mxu1 %v22439_v40 }
0x1332   : > { %20743 = vmatpush3.bf16.msra.mxu1 %v20740_v8  ;;  %19586 = vmatprep.mubr.f32.mxu1 %v10319_v1 }
0x1333   : > { %20745 = vmatprep.subr.bf16.mxu1 %v22427_v14 }
0x1334   : > { %19773 = vmatmul.mubr.f32.vlgmr.msra.gmra.mrb[18].mxu0 %v22425_v50 }
0x1335   : > { %20819 = vmatpush3.bf16.xpose.msra.mxu0 %v22356_v33  ;;  %19779 = vmatprep.mubr.f32.mxu0 %v12891_v17 }
0x1336   : > { %20821 = vmatprep.subr.bf16.mxu0 %v22367_v60 }
0x1339   : > { %19587 = vmatmul.mubr.f32.vlgmr.msra.gmra.mrb[14].mxu1 %v10329_v19  ;;  %v14457_v19 = vand.u32 4294901760, %v14456_v30 }
0x133a   : > { %20747 = vmatpush3.bf16.msra.mxu1 %v22427_v14  ;;  %19593 = vmatprep.mubr.f32.mxu1 %v10320_v28 }
0x133b   : > { %20749 = vmatprep.subr.bf16.mxu1 %v20748_v53 }
0x133c   : > { %19780 = vmatmul.mubr.f32.vlgmr.msra.gmra.mrb[18].mxu0 %v12901_v39 }
0x133d   : > { %20823 = vmatpush3.bf16.xpose.msra.mxu0 %v22367_v60  ;;  %19786 = vmatprep.mubr.f32.mxu0 %v22434_v27  ;;  %v14469_v60 = vsub.f32 %v22393_v48, %v14468_v62  ;;  %v17793_v62 = vld [vmem:[%s22844_s5 + $0x20] sm:$0xff] }
0x133e   : > { %20825 = vmatprep.subr.bf16.mxu0 %v22356_v33  ;;  %v22498_v4 = vand.u32 4294901760, %v17793_v62 }
0x133f   : > { %v14470_v61 = vand.u32 4294901760, %v14469_v60 }
0x1341   : > { %19594 = vmatmul.mubr.f32.vlgmr.msra.gmra.mrb[14].mxu1 %v10330_v26  ;;  %v14458_v26 = vsub.f32 %v14456_v30, %v14457_v19 }
0x1342   : > { %20751 = vmatpush3.bf16.msra.mxu1 %v20748_v53  ;;  %19600 = vmatprep.mubr.f32.mxu1 %v10318_v58 }
0x1343   : > { %20753 = vmatprep.subr.bf16.mxu1 %v22427_v14  ;;  %v14459_v28 = vand.u32 4294901760, %v14458_v26 }
0x1344   : > { %19787 = vmatmul.mubr.f32.vlgmr.msra.gmra.mrb[18].mxu0 %v22421_v9 }
0x1345   : > { %20827 = vmatpush3.bf16.xpose.msra.mxu0 %v22356_v33  ;;  %19793 = vmatprep.mubr.f32.mxu0 %v22434_v27  ;;  %v20856_v33 = vpack.c.bf16 %v14477_v12, %v14470_v61 }
0x1346   : > { %20853 = vmatprep.subr.bf16.mxu0 %v22469_v35 }
0x1348   : > { %v11774_v41 = vpop.xlane.xlu0 %11773 }
0x1349   : > { %v11778_v38 = vsub.f32 %v22379_v36, %v11774_v41  ;;  %19601 = vmatmul.mubr.f32.vlgmr.msra.gmra.mrb[14].mxu1 %v22439_v40 }
0x134a   : > { %20755 = vmatpush3.bf16.msra.mxu1 %v22427_v14  ;;  %19607 = vmatprep.mubr.f32.mxu1 %v10318_v58  ;;  %v11811_v14 = vand.u32 4294901760, %v11805_v11 }
0x134b   : > { %v11780_v63 = vmul.f32 1.442695, %v11778_v38  ;;  %19610 = vmatprep.subr.mxu1 %v22498_v4 }
0x134c   : > { %19794 = vmatmul.mubr.f32.vlgmr.msra.gmra.mrb[18].mxu0 %v22421_v9  ;;  %v22502_v9 = vsub.f32 %v17793_v62, %v22498_v4  ;;  %v22515_v50 = vpop.xlane.xlu0 %11788  ;;  %v11903_v22 = vsub.f32 %v11805_v11, %v11811_v14 }
0x134d   : > { %21514 = vpow2.f32 %v11780_v63  ;;  %20855 = vmatpush3.bf16.xpose.msra.mxu0 %v22469_v35 }
0x134e   : > { %20857 = vmatprep.subr.bf16.mxu0 %v20856_v33  ;;  %v22506_v10 = vand.u32 4294901760, %v22502_v9  ;;  %v11904_v27 = vand.u32 4294901760, %v11903_v22 }
0x1350   : > { %v10849_v18 = vsub.f32 %v22502_v9, %v22506_v10  ;;  %v11905_v15 = vsub.f32 %v11903_v22, %v11904_v27 }
0x1351   : > { %19608 = vmatmul.mubr.f32.vlgmr.msra.gmra.mrb[14].mxu1 %v22439_v40 }
0x1352   : > { %19611 = vmatpush3.msra.mxu1 %v22498_v4  ;;  %v22510_v20 = vand.u32 4294901760, %v10849_v18  ;;  %v11906_v58 = vand.u32 4294901760, %v11905_v15 }
0x1354   : > { %19615 = vmatprep.subr.mxu1 %v22510_v20 }
0x1357   : > { %v22487_v48 = vpop.eup %21514 }
0x1358   : > { %v11784_v36 = vsel %vm2187_vm10, %v22487_v48, 0.0 }
0x1359   : > { %11785 = vadd.xlane.f32.xlu0 %v11784_v36 }
0x136f   : > { %11794 = vrot.lane.b32.xlu0 %v22296_v45, %s22879_s19 }
0x1373   : > { %14362 = vrot.lane.b32.xlu0 %v22296_v45, %s22881_s0 }
0x13e6   : > { %v22518_v21 = vpop.xlane.xlu0 %11785 }
0x13e7   : > { %21516 = vrcp.f32 %v22518_v21 }
0x13e8   : > { %21518 = vrcp.f32 %v22515_v50 }
0x13ea   : > { %v11795_v25 = vpop.permute.xlu0 %11794 }
0x13eb   : > { %v11808_v29 = vand.u32 4294901760, %v11795_v25 }
0x13ed   : > { %v22520_v39 = vpack.c.bf16 %v11811_v14, %v11808_v29  ;;  %v11896_v31 = vsub.f32 %v11795_v25, %v11808_v29 }
0x13ee   : > { %v14363_v40 = vpop.permute.xlu0 %14362 }
0x13ef   : > { %v11897_v23 = vand.u32 4294901760, %v11896_v31  ;;  %v14370_v51 = vsel %vm1672_vm3, %v14363_v40, 0  ;;  %v22523_v54 = vpack.c.bf16 %v11903_v22, %v11896_v31 }
0x13f0   : > { %v14445_v55 = vand.u32 4294901760, %v14370_v51 }
0x13f1   : > { %v11898_v17 = vsub.f32 %v11896_v31, %v11897_v23  ;;  %v22525_v13 = vpack.c.bf16 %v11904_v27, %v11897_v23  ;;  %v21517_v16 = vpop.eup %21516 }
0x13f2   : > { %v14446_v47 = vsub.f32 %v14370_v51, %v14445_v55  ;;  %v21519_v32 = vpop.eup %21518 }
0x13f3   : > { %v11899_v52 = vand.u32 4294901760, %v11898_v17  ;;  %v11793_v21 = vmul.f32 %v21519_v32, %v22396_v34 }
0x13f4   : > { %v14447_v37 = vand.u32 4294901760, %v14446_v47 }
0x13f5   : > { %v22527_v1 = vpack.c.bf16 %v11906_v58, %v11899_v52 }
0x13f6   : > { %v14448_v43 = vsub.f32 %v14446_v47, %v14447_v37 }
0x13f8   : > { %v14449_v3 = vand.u32 4294901760, %v14448_v43 }
0x13fa   : > { %19872 = vmatprep.mubr.f32.mxu0 %v14449_v3 }
0x13fb   : > { %19873 = vmatmul.mubr.f32.vlgmr.msra.gmra.mrb[20].mxu0 %v14459_v28 }
0x13fc   : > { %20859 = vmatpush3.bf16.xpose.msra.mxu0 %v20856_v33  ;;  %19879 = vmatprep.mubr.f32.mxu0 %v14445_v55 }
0x13fd   : > { %20861 = vmatprep.subr.bf16.mxu0 %v22409_v0 }
0x1403   : > { %19880 = vmatmul.mubr.f32.vlgmr.msra.gmra.mrb[20].mxu0 %v14455_v24 }
0x1404   : > { %20863 = vmatpush3.bf16.xpose.msra.mxu0 %v22409_v0  ;;  %19886 = vmatprep.mubr.f32.mxu0 %v14446_v47 }
0x1405   : > { %20865 = vmatprep.subr.bf16.mxu0 %v22469_v35 }
0x140b   : > { %19887 = vmatmul.mubr.f32.vlgmr.msra.gmra.mrb[20].mxu0 %v14456_v30 }
0x140c   : > { %20867 = vmatpush3.bf16.xpose.msra.mxu0 %v22469_v35  ;;  %19893 = vmatprep.mubr.f32.mxu0 %v14447_v37 }
0x140d   : > { %20869 = vmatprep.subr.bf16.mxu0 %v22415_v5 }
0x1413   : > { %19894 = vmatmul.mubr.f32.vlgmr.msra.gmra.mrb[20].mxu0 %v14457_v19 }
0x1414   : > { %20871 = vmatpush3.bf16.xpose.msra.mxu0 %v22415_v5  ;;  %19900 = vmatprep.mubr.f32.mxu0 %v14445_v55 }
0x1415   : > { %20873 = vmatprep.subr.bf16.mxu0 %v22469_v35 }
0x141b   : > { %19901 = vmatmul.mubr.f32.vlgmr.msra.gmra.mrb[20].mxu0 %v14455_v24 }
0x141c   : > { %20875 = vmatpush3.bf16.xpose.msra.mxu0 %v22469_v35  ;;  %19907 = vmatprep.mubr.f32.mxu0 %v14445_v55 }
0x141f   : > { %v19795_v0 = vpop.f32.mrb[18].mxu0 }
0x1420   : > { %v13325_v59 = vmul.f32 0.35355338, %v19795_v0  ;;  %v13314_v42 = vpop.f32.mrb[19].mxu0 }
0x1421   : > { %v13324_v6 = vmul.f32 0.35355338, %v13314_v42 }
0x1422   : > { %v22538_v7 = vadd.f32 %v13325_v59, %v21781_v46 }
0x1423   : > { %19908 = vmatmul.mubr.f32.vlgmr.msra.gmra.mrb[20].mxu0 %v14455_v24  ;;  %v22541_v8 = vadd.f32 %v13324_v6, %v21783_v49 }
0x1424   : > { %v19609_v53 = vpop.f32.mrb[14].mxu1  ;;  %v13331_v5 = vsel %vm2191_vm9, %v22538_v7, -inf }
0x1425   : > { %v10757_v44 = vsel %vm1672_vm3, %v19609_v53, 0  ;;  %v10743_v60 = vpop.f32.mrb[15].mxu1  ;;  %13332 = vmax.xlane.f32.xlu1 %v13331_v5  ;;  %v13328_v35 = vsel %vm2187_vm10, %v22541_v8, -inf }
0x1426   : > { %v10835_v41 = vand.u32 4294901760, %v10757_v44  ;;  %v10754_v12 = vsel %vm1672_vm3, %v10743_v60, 0  ;;  %13329 = vmax.xlane.f32.xlu0 %v13328_v35 }
0x1427   : > { %v10825_v38 = vand.u32 4294901760, %v10754_v12 }
0x1428   : > { %v10836_v61 = vsub.f32 %v10757_v44, %v10835_v41 }
0x1429   : > { %v10826_v63 = vsub.f32 %v10754_v12, %v10825_v38 }
0x142a   : > { %v10837_v33 = vand.u32 4294901760, %v10836_v61 }
0x142b   : > { %v10827_v36 = vand.u32 4294901760, %v10826_v63 }
0x142c   : > { %v10838_v62 = vsub.f32 %v10836_v61, %v10837_v33 }
0x142d   : > { %v10828_v18 = vsub.f32 %v10826_v63, %v10827_v36 }
0x142e   : > { %v10839_v14 = vand.u32 4294901760, %v10838_v62 }
0x142f   : > { %v10829_v11 = vand.u32 4294901760, %v10828_v18 }
0x1431   : > { %19612 = vmatprep.mubr.f32.mxu1 %v10829_v11 }
0x1432   : > { %19613 = vmatmul.mubr.f32.vlgmr.msra.gmra.mrb[16].mxu1 %v10839_v14 }
0x1433   : > { %19616 = vmatpush3.msra.mxu1 %v22510_v20  ;;  %19617 = vmatprep.mubr.f32.mxu1 %v10825_v38  ;;  %v11791_v20 = vmul.f32 %v21517_v16, %v22487_v48 }
0x1434   : > { %19620 = vmatprep.subr.mxu1 %v22502_v9 }
0x1435   : > { %v11800_v50 = vsel %vm2187_vm10, %v11791_v20, 0 }
0x1436   : > { %13352 = vrot.lane.b32.xlu1 %v22294_v2, %s22882_s22  ;;  %v11874_v22 = vand.u32 4294901760, %v11800_v50 }
0x1438   : > { %v11875_v24 = vsub.f32 %v11800_v50, %v11874_v22 }
0x143a   : > { %19618 = vmatmul.mubr.f32.vlgmr.msra.gmra.mrb[16].mxu1 %v10835_v41  ;;  %v11876_v27 = vand.u32 4294901760, %v11875_v24 }
0x143b   : > { %19621 = vmatpush3.msra.mxu1 %v22502_v9  ;;  %19622 = vmatprep.mubr.f32.mxu1 %v10826_v63  ;;  %v11803_v9 = vsel %vm2187_vm10, %v11793_v21, 0 }
0x143c   : > { %19625 = vmatprep.subr.mxu1 %v22498_v4  ;;  %v11884_v48 = vand.u32 4294901760, %v11803_v9  ;;  %v11877_v29 = vsub.f32 %v11875_v24, %v11876_v27 }
0x143e   : > { %v11885_v25 = vsub.f32 %v11803_v9, %v11884_v48  ;;  %v11878_v31 = vand.u32 4294901760, %v11877_v29 }
0x1440   : > { %v11886_v34 = vand.u32 4294901760, %v11885_v25 }
0x1442   : > { %19623 = vmatmul.mubr.f32.vlgmr.msra.gmra.mrb[16].mxu1 %v10836_v61  ;;  %v11887_v30 = vsub.f32 %v11885_v25, %v11886_v34 }
0x1443   : > { %19626 = vmatpush3.msra.mxu1 %v22498_v4  ;;  %19627 = vmatprep.mubr.f32.mxu1 %v10827_v36 }
0x1444   : > { %19630 = vmatprep.subr.mxu1 %v22506_v10 }
0x144a   : > { %19628 = vmatmul.mubr.f32.vlgmr.msra.gmra.mrb[16].mxu1 %v10837_v33 }
0x144b   : > { %19631 = vmatpush3.msra.mxu1 %v22506_v10  ;;  %19632 = vmatprep.mubr.f32.mxu1 %v10825_v38  ;;  %v11888_v10 = vand.u32 4294901760, %v11887_v30 }
0x144c   : > { %19635 = vmatprep.subr.mxu1 %v22498_v4 }
0x1452   : > { %19633 = vmatmul.mubr.f32.vlgmr.msra.gmra.mrb[16].mxu1 %v10835_v41 }
0x1453   : > { %19636 = vmatpush3.msra.mxu1 %v22498_v4  ;;  %19637 = vmatprep.mubr.f32.mxu1 %v10825_v38 }
0x1454   : > { %20781 = vmatprep.subr.bf16.mxu1 %v22520_v39 }
0x145a   : > { %19638 = vmatmul.mubr.f32.vlgmr.msra.gmra.mrb[16].mxu1 %v10835_v41 }
0x145b   : > { %20783 = vmatpush3.bf16.msra.mxu1 %v22520_v39  ;;  %19686 = vmatprep.mubr.f32.mxu1 %v11878_v31 }
0x145c   : > { %20785 = vmatprep.subr.bf16.mxu1 %v22527_v1 }
0x145e   : > { %19687 = vmatmul.mubr.f32.vlgmr.msra.gmra.mrb[18].mxu1 %v11888_v10 }
0x145f   : > { %20787 = vmatpush3.bf16.msra.mxu1 %v22527_v1  ;;  %19693 = vmatprep.mubr.f32.mxu1 %v11874_v22 }
0x1460   : > { %20789 = vmatprep.subr.bf16.mxu1 %v22523_v54 }
0x1466   : > { %19694 = vmatmul.mubr.f32.vlgmr.msra.gmra.mrb[18].mxu1 %v11884_v48 }
0x1467   : > { %20791 = vmatpush3.bf16.msra.mxu1 %v22523_v54  ;;  %19700 = vmatprep.mubr.f32.mxu1 %v11875_v24 }
0x1468   : > { %20793 = vmatprep.subr.bf16.mxu1 %v22520_v39 }
0x146e   : > { %19701 = vmatmul.mubr.f32.vlgmr.msra.gmra.mrb[18].mxu1 %v11885_v25 }
0x146f   : > { %20795 = vmatpush3.bf16.msra.mxu1 %v22520_v39  ;;  %19707 = vmatprep.mubr.f32.mxu1 %v11876_v27 }
0x1470   : > { %20797 = vmatprep.subr.bf16.mxu1 %v22525_v13 }
0x1476   : > { %19708 = vmatmul.mubr.f32.vlgmr.msra.gmra.mrb[18].mxu1 %v11886_v34 }
0x1477   : > { %20799 = vmatpush3.bf16.msra.mxu1 %v22525_v13  ;;  %19714 = vmatprep.mubr.f32.mxu1 %v11874_v22  ;;  %v17794_v13 = vld [vmem:[%s22844_s5 + $0x28] sm:$0xff] }
0x1478   : > { %20801 = vmatprep.subr.bf16.mxu1 %v22520_v39  ;;  %v22590_v47 = vand.u32 4294901760, %v17794_v13 }
0x147a   : > { %v12403_v52 = vsub.f32 %v17794_v13, %v22590_v47 }
0x147c   : > { %v12404_v58 = vand.u32 4294901760, %v12403_v52 }
0x147e   : > { %19715 = vmatmul.mubr.f32.vlgmr.msra.gmra.mrb[18].mxu1 %v11884_v48  ;;  %v12405_v37 = vsub.f32 %v12403_v52, %v12404_v58 }
0x147f   : > { %20803 = vmatpush3.bf16.msra.mxu1 %v22520_v39  ;;  %19721 = vmatprep.mubr.f32.mxu1 %v11874_v22 }
0x1480   : > { %19724 = vmatprep.subr.mxu1 %v22590_v47  ;;  %v12406_v26 = vand.u32 4294901760, %v12405_v37 }
0x1486   : > { %19722 = vmatmul.mubr.f32.vlgmr.msra.gmra.mrb[18].mxu1 %v11884_v48 }
0x1487   : > { %19725 = vmatpush3.msra.mxu1 %v22590_v47 }
0x1488   : > { %19729 = vmatprep.subr.mxu1 %v12406_v26 }
0x14b2   : > { %v13333_v4 = vpop.xlane.xlu1 %13332 }
0x14b3   : > { %v13335_v40 = vsub.f32 %v22538_v7, %v13333_v4  ;;  %v13330_v15 = vpop.xlane.xlu0 %13329 }
0x14b4   : > { %v13334_v23 = vsub.f32 %v22541_v8, %v13330_v15 }
0x14b5   : > { %v13338_v51 = vmul.f32 1.442695, %v13335_v40 }
0x14b6   : > { %v13336_v54 = vmul.f32 1.442695, %v13334_v23  ;;  %v13353_v11 = vpop.permute.xlu1 %13352 }
0x14b7   : > { %21520 = vpow2.f32 %v13338_v51  ;;  %v13361_v32 = vsel %vm2222_vm11, %v13353_v11, 0 }
0x14b8   : > { %21522 = vpow2.f32 %v13336_v54  ;;  %v13367_v22 = vand.u32 4294901760, %v13361_v32 }
0x14ba   : > { %v13459_v25 = vsub.f32 %v13361_v32, %v13367_v22 }
0x14bc   : > { %v13460_v30 = vand.u32 4294901760, %v13459_v25 }
0x14be   : > { %v13461_v15 = vsub.f32 %v13459_v25, %v13460_v30 }
0x14c1   : > { %v22580_v55 = vpop.eup %21520 }
0x14c2   : > { %v13343_v19 = vsel %vm2191_vm9, %v22580_v55, 0.0  ;;  %v21523_v17 = vpop.eup %21522 }
0x14c3   : > { %13344 = vadd.xlane.f32.xlu0 %v13343_v19  ;;  %v13340_v39 = vsel %vm2187_vm10, %v21523_v17, 0.0 }
0x14c7   : > { %13341 = vadd.xlane.f32.xlu0 %v13340_v39 }
0x14dd   : > { %13350 = vrot.lane.b32.xlu0 %v22296_v45, %s22882_s22 }
0x14f6   : > { %v19909_v1 = vpop.f32.mrb[20].mxu0 }
0x14f7   : > { %v14881_v43 = vmul.f32 0.35355338, %v19909_v1  ;;  %v14870_v3 = vpop.f32.mrb[21].mxu0 }
0x14f8   : > { %v14880_v28 = vmul.f32 0.35355338, %v14870_v3 }
0x14f9   : > { %v22596_v0 = vadd.f32 %v14881_v43, %v21781_v46 }
0x14fa   : > { %v22599_v59 = vadd.f32 %v14880_v28, %v21783_v49 }
0x14fb   : > { %v14887_v42 = vsel %vm2191_vm9, %v22596_v0, -inf }
0x14fc   : > { %14888 = vmax.xlane.f32.xlu0 %v14887_v42  ;;  %v14884_v6 = vsel %vm2187_vm10, %v22599_v59, -inf }
0x14fd   : > { %14885 = vmax.xlane.f32.xlu1 %v14884_v6  ;;  %v17795_v6 = vld [vmem:[%s22844_s5 + $0x30] sm:$0xff] }
0x1550   : > { %v13345_v12 = vpop.xlane.xlu0 %13344 }
0x1554   : > { %v13342_v36 = vpop.xlane.xlu0 %13341 }
0x1555   : > { %21524 = vrcp.f32 %v13342_v36 }
0x1556   : > { %21526 = vrcp.f32 %v13345_v12 }
0x1558   : > { %v13351_v16 = vpop.permute.xlu0 %13350 }
0x1559   : > { %v19723_v7 = vpop.f32.mrb[18].mxu1  ;;  %v13364_v21 = vand.u32 4294901760, %v13351_v16 }
0x155a   : > { %v12313_v8 = vsel %vm1672_vm3, %v19723_v7, 0  ;;  %v12299_v53 = vpop.f32.mrb[19].mxu1  ;;  %v22644_v7 = vand.u32 4294901760, %v17795_v6 }
0x155b   : > { %v22606_v5 = vand.u32 4294901760, %v12313_v8  ;;  %v12310_v46 = vsel %vm1672_vm3, %v12299_v53, 0  ;;  %v13452_v24 = vsub.f32 %v13351_v16, %v13364_v21  ;;  %v20828_v4 = vpack.c.bf16 %v13367_v22, %v13364_v21 }
0x155c   : > { %v12381_v44 = vand.u32 4294901760, %v12310_v46 }
0x155d   : > { %v12392_v49 = vsub.f32 %v12313_v8, %v22606_v5  ;;  %v13453_v29 = vand.u32 4294901760, %v13452_v24  ;;  %v20836_v43 = vpack.c.bf16 %v13459_v25, %v13452_v24 }
0x155e   : > { %v12382_v60 = vsub.f32 %v12310_v46, %v12381_v44 }
0x155f   : > { %v12393_v35 = vand.u32 4294901760, %v12392_v49  ;;  %v21525_v62 = vpop.eup %21524  ;;  %v13454_v40 = vsub.f32 %v13452_v24, %v13453_v29  ;;  %v20844_v42 = vpack.c.bf16 %v13460_v30, %v13453_v29 }
0x1560   : > { %v12383_v41 = vand.u32 4294901760, %v12382_v60  ;;  %v21527_v18 = vpop.eup %21526  ;;  %v13347_v14 = vmul.f32 %v21525_v62, %v21523_v17 }
0x1561   : > { %v12394_v38 = vsub.f32 %v12392_v49, %v12393_v35  ;;  %v13349_v20 = vmul.f32 %v21527_v18, %v22580_v55  ;;  %v13455_v39 = vand.u32 4294901760, %v13454_v40 }
0x1562   : > { %v12384_v61 = vsub.f32 %v12382_v60, %v12383_v41  ;;  %v13356_v50 = vsel %vm2187_vm10, %v13347_v14, 0 }
0x1563   : > { %v12395_v33 = vand.u32 4294901760, %v12394_v38  ;;  %v22616_v9 = vand.u32 4294901760, %v13356_v50  ;;  %v13359_v48 = vsel %vm2187_vm10, %v13349_v20, 0 }
0x1564   : > { %v12385_v63 = vand.u32 4294901760, %v12384_v61  ;;  %v13440_v27 = vand.u32 4294901760, %v13359_v48 }
0x1565   : > { %v13431_v34 = vsub.f32 %v13356_v50, %v22616_v9 }
0x1566   : > { %19726 = vmatprep.mubr.f32.mxu1 %v12385_v63  ;;  %v13441_v31 = vsub.f32 %v13359_v48, %v13440_v27 }
0x1567   : > { %19727 = vmatmul.mubr.f32.vlgmr.msra.gmra.mrb[16].mxu1 %v12395_v33  ;;  %v13432_v10 = vand.u32 4294901760, %v13431_v34 }
0x1568   : > { %19730 = vmatpush3.msra.mxu1 %v12406_v26  ;;  %19731 = vmatprep.mubr.f32.mxu1 %v12381_v44  ;;  %v13442_v51 = vand.u32 4294901760, %v13441_v31 }
0x1569   : > { %19734 = vmatprep.subr.mxu1 %v12403_v52  ;;  %v13433_v19 = vsub.f32 %v13431_v34, %v13432_v10 }
0x156a   : > { %v13443_v37 = vsub.f32 %v13441_v31, %v13442_v51 }
0x156b   : > { %v13434_v26 = vand.u32 4294901760, %v13433_v19 }
0x156c   : > { %v13444_v1 = vand.u32 4294901760, %v13443_v37 }
0x156f   : > { %19732 = vmatmul.mubr.f32.vlgmr.msra.gmra.mrb[16].mxu1 %v22606_v5 }
0x1570   : > { %19735 = vmatpush3.msra.mxu1 %v12403_v52  ;;  %19736 = vmatprep.mubr.f32.mxu1 %v12382_v60 }
0x1571   : > { %19739 = vmatprep.subr.mxu1 %v22590_v47 }
0x1577   : > { %19737 = vmatmul.mubr.f32.vlgmr.msra.gmra.mrb[16].mxu1 %v12392_v49 }
0x1578   : > { %19740 = vmatpush3.msra.mxu1 %v22590_v47  ;;  %19741 = vmatprep.mubr.f32.mxu1 %v12383_v41 }
0x1579   : > { %19744 = vmatprep.subr.mxu1 %v12404_v58 }
0x157f   : > { %19742 = vmatmul.mubr.f32.vlgmr.msra.gmra.mrb[16].mxu1 %v12393_v35 }
0x1580   : > { %19745 = vmatpush3.msra.mxu1 %v12404_v58  ;;  %19746 = vmatprep.mubr.f32.mxu1 %v12381_v44  ;;  %v13462_v58 = vand.u32 4294901760, %v13461_v15 }
0x1581   : > { %19749 = vmatprep.subr.mxu1 %v22590_v47 }
0x1587   : > { %19747 = vmatmul.mubr.f32.vlgmr.msra.gmra.mrb[16].mxu1 %v22606_v5 }
0x1588   : > { %19750 = vmatpush3.msra.mxu1 %v22590_v47  ;;  %19751 = vmatprep.mubr.f32.mxu1 %v12381_v44  ;;  %v20832_v47 = vpack.c.bf16 %v13462_v58, %v13455_v39 }
0x1589   : > { %20829 = vmatprep.subr.bf16.mxu1 %v20828_v4  ;;  %v14889_v23 = vpop.xlane.xlu0 %14888 }
0x158a   : > { %v14891_v54 = vsub.f32 %v22596_v0, %v14889_v23  ;;  %v14886_v55 = vpop.xlane.xlu1 %14885 }
0x158b   : > { %v14890_v17 = vsub.f32 %v22599_v59, %v14886_v55 }
0x158c   : > { %v14894_v13 = vmul.f32 1.442695, %v14891_v54 }
0x158d   : > { %v14892_v52 = vmul.f32 1.442695, %v14890_v17 }
0x158e   : > { %21528 = vpow2.f32 %v14894_v13 }
0x158f   : > { %21530 = vpow2.f32 %v14892_v52  ;;  %19752 = vmatmul.mubr.f32.vlgmr.msra.gmra.mrb[16].mxu1 %v22606_v5 }
0x1590   : > { %20831 = vmatpush3.bf16.msra.mxu1 %v20828_v4  ;;  %19800 = vmatprep.mubr.f32.mxu1 %v13434_v26 }
0x1591   : > { %20833 = vmatprep.subr.bf16.mxu1 %v20832_v47 }
0x1593   : > { %19801 = vmatmul.mubr.f32.vlgmr.msra.gmra.mrb[20].mxu1 %v13444_v1  ;;  %v17796_v1 = vld [vmem:[%s22844_s5 + $0x38] sm:$0xff] }
0x1594   : > { %20835 = vmatpush3.bf16.msra.mxu1 %v20832_v47  ;;  %19807 = vmatprep.mubr.f32.mxu1 %v22616_v9 }
0x1595   : > { %20837 = vmatprep.subr.bf16.mxu1 %v20836_v43 }
0x1598   : > { %v22627_v3 = vpop.eup %21528 }
0x1599   : > { %v22629_v28 = vpop.eup %21530  ;;  %v14899_v0 = vsel %vm2191_vm9, %v22627_v3, 0.0 }
0x159a   : > { %14900 = vadd.xlane.f32.xlu0 %v14899_v0  ;;  %v14896_v59 = vsel %vm2187_vm10, %v22629_v28, 0.0 }
0x159b   : > { %14897 = vadd.xlane.f32.xlu1 %v14896_v59  ;;  %19808 = vmatmul.mubr.f32.vlgmr.msra.gmra.mrb[20].mxu1 %v13440_v27 }
0x159c   : > { %20839 = vmatpush3.bf16.msra.mxu1 %v20836_v43  ;;  %19814 = vmatprep.mubr.f32.mxu1 %v13431_v34  ;;  %v15428_v43 = vand.u32 4294901760, %v17796_v1 }
0x159d   : > { %20841 = vmatprep.subr.bf16.mxu1 %v20828_v4 }
0x15a3   : > { %19815 = vmatmul.mubr.f32.vlgmr.msra.gmra.mrb[20].mxu1 %v13441_v31 }
0x15a4   : > { %20843 = vmatpush3.bf16.msra.mxu1 %v20828_v4  ;;  %19821 = vmatprep.mubr.f32.mxu1 %v13432_v10 }
0x15a5   : > { %20845 = vmatprep.subr.bf16.mxu1 %v20844_v42 }
0x15ab   : > { %19822 = vmatmul.mubr.f32.vlgmr.msra.gmra.mrb[20].mxu1 %v13442_v51 }
0x15ac   : > { %20847 = vmatpush3.bf16.msra.mxu1 %v20844_v42  ;;  %14908 = vrot.lane.b32.xlu1 %v22294_v2, %s22883_s27  ;;  %v13959_v2 = vsub.f32 %v17795_v6, %v22644_v7 }
0x15ad   : > { %19828 = vmatprep.mubr.f32.mxu1 %v22616_v9  ;;  %20849 = vmatprep.subr.bf16.mxu1 %v20828_v4 }
0x15ae   : > { %v13960_v8 = vand.u32 4294901760, %v13959_v2 }
0x15b0   : > { %14906 = vrot.lane.b32.xlu0 %v22296_v45, %s22883_s27  ;;  %v13961_v53 = vsub.f32 %v13959_v2, %v13960_v8 }
0x15b2   : > { %v13962_v45 = vand.u32 4294901760, %v13961_v53 }
0x15b3   : > { %19829 = vmatmul.mubr.f32.vlgmr.msra.gmra.mrb[20].mxu1 %v13440_v27 }
0x15b4   : > { %20851 = vmatpush3.bf16.msra.mxu1 %v20828_v4  ;;  %19835 = vmatprep.mubr.f32.mxu1 %v22616_v9 }
0x15b5   : > { %19838 = vmatprep.subr.mxu1 %v22644_v7 }
0x15bb   : > { %19836 = vmatmul.mubr.f32.vlgmr.msra.gmra.mrb[20].mxu1 %v13440_v27 }
0x15bc   : > { %19839 = vmatpush3.msra.mxu1 %v22644_v7 }
0x15bd   : > { %19843 = vmatprep.subr.mxu1 %v13962_v45 }
0x1627   : > { %v14901_v11 = vpop.xlane.xlu0 %14900 }
0x1628   : > { %v14898_v18 = vpop.xlane.xlu1 %14897 }
0x1629   : > { %21532 = vrcp.f32 %v14898_v18 }
0x162a   : > { %21534 = vrcp.f32 %v14901_v11 }
0x162b   : > { %v14907_v22 = vpop.permute.xlu0 %14906 }
0x162c   : > { %v14909_v16 = vpop.permute.xlu1 %14908  ;;  %v14920_v24 = vand.u32 4294901760, %v14907_v22 }
0x162d   : > { %v14917_v21 = vsel %vm2222_vm11, %v14909_v16, 0 }
0x162e   : > { %v14923_v9 = vand.u32 4294901760, %v14917_v21  ;;  %v15008_v29 = vsub.f32 %v14907_v22, %v14920_v24 }
0x1630   : > { %v15015_v34 = vsub.f32 %v14917_v21, %v14923_v9  ;;  %v15009_v4 = vand.u32 4294901760, %v15008_v29  ;;  %v20876_v23 = vpack.c.bf16 %v14923_v9, %v14920_v24  ;;  %v17804_v24 = vld [vmem:[%s22848_s9 + $0x28] sm:$0xff] }
0x1632   : > { %v15016_v10 = vand.u32 4294901760, %v15015_v34  ;;  %v15010_v54 = vsub.f32 %v15008_v29, %v15009_v4  ;;  %v20884_v26 = vpack.c.bf16 %v15015_v34, %v15008_v29  ;;  %v17806_v29 = vld [vmem:[%s22848_s9 + $0x38] sm:$0xff] }
0x1633   : > { %v21533_v14 = vpop.eup %21532 }
0x1634   : > { %v21535_v32 = vpop.eup %21534  ;;  %v14903_v20 = vmul.f32 %v21533_v14, %v22629_v28  ;;  %v15017_v51 = vsub.f32 %v15015_v34, %v15016_v10  ;;  %v15011_v39 = vand.u32 4294901760, %v15010_v54  ;;  %v20892_v47 = vpack.c.bf16 %v15016_v10, %v15009_v4 }
0x1635   : > { %v14905_v50 = vmul.f32 %v21535_v32, %v22627_v3  ;;  %v15515_v3 = vsub.f32 %v17796_v1, %v15428_v43  ;;  %v15989_v34 = vand.u32 4294901760, %v17804_v24 }
0x1636   : > { %v14912_v48 = vsel %vm2187_vm10, %v14903_v20, 0  ;;  %v15018_v17 = vand.u32 4294901760, %v15017_v51 }
0x1637   : > { %v14986_v25 = vand.u32 4294901760, %v14912_v48  ;;  %v14915_v27 = vsel %vm2187_vm10, %v14905_v50, 0  ;;  %v15516_v28 = vand.u32 4294901760, %v15515_v3 }
0x1638   : > { %v14996_v30 = vand.u32 4294901760, %v14915_v27  ;;  %v20880_v58 = vpack.c.bf16 %v15018_v17, %v15011_v39 }
0x1639   : > { %v14987_v31 = vsub.f32 %v14912_v48, %v14986_v25  ;;  %v15517_v0 = vsub.f32 %v15515_v3, %v15516_v28 }
0x163a   : > { %v14997_v40 = vsub.f32 %v14915_v27, %v14996_v30 }
0x163b   : > { %v14988_v15 = vand.u32 4294901760, %v14987_v31  ;;  %v15518_v59 = vand.u32 4294901760, %v15517_v0 }
0x163c   : > { %v14998_v55 = vand.u32 4294901760, %v14997_v40 }
0x163d   : > { %v14989_v19 = vsub.f32 %v14987_v31, %v14988_v15 }
0x163e   : > { %v14999_v13 = vsub.f32 %v14997_v40, %v14998_v55 }
0x163f   : > { %v14990_v52 = vand.u32 4294901760, %v14989_v19 }
0x1640   : > { %v15000_v37 = vand.u32 4294901760, %v14999_v13 }
0x168e   : > { %v19837_v5 = vpop.f32.mrb[20].mxu1 }
0x168f   : > { %v13869_v46 = vsel %vm1672_vm3, %v19837_v5, 0  ;;  %v13855_v44 = vpop.f32.mrb[21].mxu1 }
0x1690   : > { %v22650_v49 = vand.u32 4294901760, %v13869_v46  ;;  %v13866_v60 = vsel %vm1672_vm3, %v13855_v44, 0 }
0x1691   : > { %v13937_v35 = vand.u32 4294901760, %v13866_v60 }
0x1692   : > { %v13948_v41 = vsub.f32 %v13869_v46, %v22650_v49 }
0x1693   : > { %v13938_v12 = vsub.f32 %v13866_v60, %v13937_v35 }
0x1694   : > { %v13949_v38 = vand.u32 4294901760, %v13948_v41 }
0x1695   : > { %v13939_v61 = vand.u32 4294901760, %v13938_v12 }
0x1696   : > { %v13950_v63 = vsub.f32 %v13948_v41, %v13949_v38 }
0x1697   : > { %v13940_v33 = vsub.f32 %v13938_v12, %v13939_v61 }
0x1698   : > { %v13951_v62 = vand.u32 4294901760, %v13950_v63 }
0x1699   : > { %v13941_v36 = vand.u32 4294901760, %v13940_v33 }
0x169b   : > { %19840 = vmatprep.mubr.f32.mxu1 %v13941_v36 }
0x169c   : > { %19841 = vmatmul.mubr.f32.vlgmr.msra.gmra.mrb[16].mxu1 %v13951_v62 }
0x169d   : > { %19844 = vmatpush3.msra.mxu1 %v13962_v45  ;;  %19845 = vmatprep.mubr.f32.mxu1 %v13937_v35 }
0x169e   : > { %19848 = vmatprep.subr.mxu1 %v13959_v2 }
0x16a4   : > { %19846 = vmatmul.mubr.f32.vlgmr.msra.gmra.mrb[16].mxu1 %v22650_v49 }
0x16a5   : > { %19849 = vmatpush3.msra.mxu1 %v13959_v2  ;;  %19850 = vmatprep.mubr.f32.mxu1 %v13938_v12  ;;  %v17798_v12 = vld [vmem:[%s22845_s6 + $0x1] ss:$0 sm:$0xff] }
0x16a6   : > { %19853 = vmatprep.subr.mxu1 %v22644_v7 }
0x16ac   : > { %19851 = vmatmul.mubr.f32.vlgmr.msra.gmra.mrb[16].mxu1 %v13948_v41 }
0x16ad   : > { %19854 = vmatpush3.msra.mxu1 %v22644_v7  ;;  %19855 = vmatprep.mubr.f32.mxu1 %v13939_v61 }
0x16ae   : > { %19858 = vmatprep.subr.mxu1 %v13960_v8 }
0x16b4   : > { %19856 = vmatmul.mubr.f32.vlgmr.msra.gmra.mrb[16].mxu1 %v13949_v38 }
0x16b5   : > { %19859 = vmatpush3.msra.mxu1 %v13960_v8  ;;  %19860 = vmatprep.mubr.f32.mxu1 %v13937_v35 }
0x16b6   : > { %19863 = vmatprep.subr.mxu1 %v22644_v7 }
0x16bc   : > { %19861 = vmatmul.mubr.f32.vlgmr.msra.gmra.mrb[16].mxu1 %v22650_v49 }
0x16bd   : > { %19864 = vmatpush3.msra.mxu1 %v22644_v7  ;;  %19865 = vmatprep.mubr.f32.mxu1 %v13937_v35 }
0x16be   : > { %20877 = vmatprep.subr.bf16.mxu1 %v20876_v23 }
0x16c4   : > { %19866 = vmatmul.mubr.f32.vlgmr.msra.gmra.mrb[16].mxu1 %v22650_v49 }
0x16c5   : > { %20879 = vmatpush3.bf16.msra.mxu1 %v20876_v23  ;;  %19914 = vmatprep.mubr.f32.mxu1 %v14990_v52 }
0x16c6   : > { %20881 = vmatprep.subr.bf16.mxu1 %v20880_v58 }
0x16c8   : > { %19915 = vmatmul.mubr.f32.vlgmr.msra.gmra.mrb[22].mxu1 %v15000_v37 }
0x16c9   : > { %20883 = vmatpush3.bf16.msra.mxu1 %v20880_v58  ;;  %19921 = vmatprep.mubr.f32.mxu1 %v14986_v25 }
0x16ca   : > { %20885 = vmatprep.subr.bf16.mxu1 %v20884_v26 }
0x16d0   : > { %19922 = vmatmul.mubr.f32.vlgmr.msra.gmra.mrb[22].mxu1 %v14996_v30 }
0x16d1   : > { %20887 = vmatpush3.bf16.msra.mxu1 %v20884_v26  ;;  %19928 = vmatprep.mubr.f32.mxu1 %v14987_v31  ;;  %v15995_v31 = vand.u32 4294901760, %v17806_v29 }
0x16d2   : > { %20889 = vmatprep.subr.bf16.mxu1 %v20876_v23 }
0x16d3   : > { %v16097_v17 = vsub.f32 %v17806_v29, %v15995_v31 }
0x16d5   : > { %v16098_v58 = vand.u32 4294901760, %v16097_v17 }
0x16d8   : > { %19929 = vmatmul.mubr.f32.vlgmr.msra.gmra.mrb[22].mxu1 %v14997_v40 }
0x16d9   : > { %20891 = vmatpush3.bf16.msra.mxu1 %v20876_v23  ;;  %19935 = vmatprep.mubr.f32.mxu1 %v14988_v15  ;;  %v16083_v15 = vsub.f32 %v17804_v24, %v15989_v34  ;;  %v17811_v24 = vld [vmem:[%s22850_s11 + $0x50] sm:$0xff] }
0x16da   : > { %20893 = vmatprep.subr.bf16.mxu1 %v20892_v47 }
0x16db   : > { %v16084_v51 = vand.u32 4294901760, %v16083_v15 }
0x16e0   : > { %19936 = vmatmul.mubr.f32.vlgmr.msra.gmra.mrb[22].mxu1 %v14998_v55  ;;  %v16085_v55 = vsub.f32 %v16083_v15, %v16084_v51 }
0x16e1   : > { %20895 = vmatpush3.bf16.msra.mxu1 %v20892_v47  ;;  %19942 = vmatprep.mubr.f32.mxu1 %v14986_v25  ;;  %v16099_v47 = vsub.f32 %v16097_v17, %v16098_v58 }
0x16e2   : > { %20897 = vmatprep.subr.bf16.mxu1 %v20876_v23  ;;  %v16086_v13 = vand.u32 4294901760, %v16085_v55 }
0x16e8   : > { %19943 = vmatmul.mubr.f32.vlgmr.msra.gmra.mrb[22].mxu1 %v14996_v30 }
0x16e9   : > { %20899 = vmatpush3.bf16.msra.mxu1 %v20876_v23  ;;  %19949 = vmatprep.mubr.f32.mxu1 %v14986_v25  ;;  %v17805_v25 = vld [vmem:[%s22848_s9 + $0x30] sm:$0xff] }
0x16ea   : > { %19952 = vmatprep.subr.mxu1 %v15428_v43 }
0x16f0   : > { %19950 = vmatmul.mubr.f32.vlgmr.msra.gmra.mrb[22].mxu1 %v14996_v30  ;;  %v15992_v30 = vand.u32 4294901760, %v17805_v25 }
0x16f1   : > { %19953 = vmatpush3.msra.mxu1 %v15428_v43 }
0x16f2   : > { %19957 = vmatprep.subr.mxu1 %v15518_v59  ;;  %v22694_v4 = vpack.c.bf16 %v15995_v31, %v15992_v30  ;;  %v16090_v19 = vsub.f32 %v17805_v25, %v15992_v30  ;;  %v17812_v25 = vld [vmem:[%s22850_s11 + $0x58] sm:$0xff]  ;;  %v17813_v30 = vld [vmem:[%s22850_s11 + $0x60] sm:$0xff]  ;;  %v17814_v31 = vld [vmem:[%s22850_s11 + $0x68] sm:$0xff] }
0x16f4   : > { %v16091_v52 = vand.u32 4294901760, %v16090_v19  ;;  %v20920_v0 = vpack.c.bf16 %v16097_v17, %v16090_v19 }
0x16f6   : > { %v16092_v26 = vsub.f32 %v16090_v19, %v16091_v52 }
0x16f8   : > { %v16093_v1 = vand.u32 4294901760, %v16092_v26 }
0x17c3   : > { %v19951_v42 = vpop.f32.mrb[22].mxu1 }
0x17c4   : > { %v15425_v6 = vsel %vm1672_vm3, %v19951_v42, 0  ;;  %v15411_v7 = vpop.f32.mrb[23].mxu1  ;;  %v20936_v42 = vpack.c.bf16 %v16098_v58, %v16091_v52 }
0x17c5   : > { %v15503_v2 = vand.u32 4294901760, %v15425_v6  ;;  %v15422_v8 = vsel %vm1672_vm3, %v15411_v7, 0 }
0x17c6   : > { %v15493_v53 = vand.u32 4294901760, %v15422_v8 }
0x17c7   : > { %v15504_v45 = vsub.f32 %v15425_v6, %v15503_v2 }
0x17c8   : > { %v15494_v5 = vsub.f32 %v15422_v8, %v15493_v53 }
0x17c9   : > { %v15505_v46 = vand.u32 4294901760, %v15504_v45 }
0x17ca   : > { %v15495_v44 = vand.u32 4294901760, %v15494_v5 }
0x17cb   : > { %v15506_v49 = vsub.f32 %v15504_v45, %v15505_v46 }
0x17cc   : > { %v15496_v60 = vsub.f32 %v15494_v5, %v15495_v44 }
0x17cd   : > { %v15507_v41 = vand.u32 4294901760, %v15506_v49 }
0x17ce   : > { %v15497_v35 = vand.u32 4294901760, %v15496_v60 }
0x17d0   : > { %19954 = vmatprep.mubr.f32.mxu1 %v15497_v35  ;;  %v17802_v35 = vld [vmem:[%s22847_s8 + $0x1] ss:$0 sm:$0xff] }
0x17d1   : > { %19955 = vmatmul.mubr.f32.vlgmr.msra.gmra.mrb[16].mxu1 %v15507_v41 }
0x17d2   : > { %19958 = vmatpush3.msra.mxu1 %v15518_v59  ;;  %19959 = vmatprep.mubr.f32.mxu1 %v15493_v53 }
0x17d3   : > { %19962 = vmatprep.subr.mxu1 %v15515_v3 }
0x17d9   : > { %19960 = vmatmul.mubr.f32.vlgmr.msra.gmra.mrb[16].mxu1 %v15503_v2 }
0x17da   : > { %19963 = vmatpush3.msra.mxu1 %v15515_v3  ;;  %19964 = vmatprep.mubr.f32.mxu1 %v15494_v5 }
0x17db   : > { %19967 = vmatprep.subr.mxu1 %v15428_v43 }
0x17e1   : > { %19965 = vmatmul.mubr.f32.vlgmr.msra.gmra.mrb[16].mxu1 %v15504_v45 }
0x17e2   : > { %19968 = vmatpush3.msra.mxu1 %v15428_v43  ;;  %19969 = vmatprep.mubr.f32.mxu1 %v15495_v44 }
0x17e3   : > { %19972 = vmatprep.subr.mxu1 %v15516_v28 }
0x17e9   : > { %19970 = vmatmul.mubr.f32.vlgmr.msra.gmra.mrb[16].mxu1 %v15505_v46  ;;  %v17800_v46 = vld [vmem:[%s22846_s7 + $0x1] ss:$0 sm:$0xff] }
0x17ea   : > { %19973 = vmatpush3.msra.mxu1 %v15516_v28  ;;  %19974 = vmatprep.mubr.f32.mxu1 %v15493_v53 }
0x17eb   : > { %19977 = vmatprep.subr.mxu1 %v15428_v43 }
0x17f1   : > { %19975 = vmatmul.mubr.f32.vlgmr.msra.gmra.mrb[16].mxu1 %v15503_v2 }
0x17f2   : > { %19978 = vmatpush3.msra.mxu1 %v15428_v43  ;;  %19979 = vmatprep.mubr.f32.mxu1 %v15493_v53  ;;  %v16100_v43 = vand.u32 4294901760, %v16099_v47 }
0x17f4   : > { %v20912_v3 = vpack.c.bf16 %v16100_v43, %v16093_v1 }
0x17f9   : > { %19980 = vmatmul.mubr.f32.vlgmr.msra.gmra.mrb[16].mxu1 %v15503_v2 }
0x18cc   : > { %v19981_v38 = vpop.f32.mrb[16].mxu1 }
0x18cd   : > { %v21104_v61 = vadd.f32 %v19981_v38, %v17798_v12  ;;  %v15906_v63 = vpop.f32.mrb[17].mxu1 }
0x18ce   : > { %v21105_v33 = vadd.f32 %v17798_v12, %v15906_v63 }
0x18cf   : > { %v15919_v36 = vadd.f32 %v21104_v61, %v22275_v56 }
0x18d0   : > { %v15918_v62 = vadd.f32 %v21105_v33, %v22277_v57  ;;  %v17803_v57 = vld [vmem:[%s22848_s9 + $0x20] sm:$0xff] }
0x18d1   : > { %v15923_v18 = vsel %vm7897_vm12, %v15919_v36, 0.0  ;;  %v15986_v27 = vand.u32 4294901760, %v17803_v57 }
0x18d2   : > { %15924 = vadd.xlane.f32.xlu0 %v15923_v18  ;;  %v15920_v11 = vsel %vm1119_vm2, %v15918_v62, 0.0 }
0x18d3   : > { %15921 = vadd.xlane.f32.xlu1 %v15920_v11  ;;  %v22692_v10 = vpack.c.bf16 %v15989_v34, %v15986_v27  ;;  %v16076_v40 = vsub.f32 %v17803_v57, %v15986_v27  ;;  %v16545_v27 = vand.u32 4294901760, %v17811_v24  ;;  %v16548_v34 = vand.u32 4294901760, %v17812_v25 }
0x18d5   : > { %20901 = vmatprep.subr.bf16.mxu0 %v22692_v10  ;;  %v16077_v23 = vand.u32 4294901760, %v16076_v40  ;;  %v20916_v28 = vpack.c.bf16 %v16083_v15, %v16076_v40  ;;  %v22738_v29 = vpack.c.bf16 %v16548_v34, %v16545_v27  ;;  %v16654_v26 = vsub.f32 %v17812_v25, %v16548_v34 }
0x18d6   : > { %20903 = vmatpush3.bf16.msra.mxu0 %v22692_v10 }
0x18d7   : > { %20905 = vmatprep.subr.bf16.mxu0 %v22694_v4  ;;  %v16078_v54 = vsub.f32 %v16076_v40, %v16077_v23  ;;  %v20932_v59 = vpack.c.bf16 %v16084_v51, %v16077_v23  ;;  %v17815_v51 = vld [vmem:[%s22850_s11 + $0x70] sm:$0xff] }
0x18d8   : > { %v16557_v55 = vand.u32 4294901760, %v17815_v51 }
0x18d9   : > { %v16079_v39 = vand.u32 4294901760, %v16078_v54  ;;  %v17816_v54 = vld [vmem:[%s22850_s11 + $0x78] sm:$0xff] }
0x18da   : > { %20907 = vmatpush3.bf16.msra.mxu0 %v22694_v4  ;;  %v16560_v19 = vand.u32 4294901760, %v17816_v54 }
0x18db   : > { %v20908_v37 = vpack.c.bf16 %v16086_v13, %v16079_v39 }
0x18dc   : > { %v22758_v13 = vpack.c.bf16 %v16560_v19, %v16557_v55 }
0x18dd   : > { %20909 = vmatprep.subr.bf16.mxu0 %v20908_v37 }
0x195f   : > { %v15925_v14 = vpop.xlane.xlu0 %15924 }
0x1960   : > { %v15927_v16 = vmul.f32 0.03125, %v15925_v14  ;;  %v15922_v32 = vpop.xlane.xlu1 %15921 }
0x1961   : > { %v15926_v20 = vmul.f32 0.03125, %v15922_v32 }
0x1962   : > { %v15929_v21 = vsub.f32 %v15919_v36, %v15927_v16 }
0x1963   : > { %v15928_v50 = vsub.f32 %v15918_v62, %v15926_v20 }
0x1964   : > { %v15931_v22 = vmul.f32 %v15929_v21, %v15929_v21 }
0x1965   : > { %v15930_v9 = vmul.f32 %v15928_v50, %v15928_v50 }
0x1966   : > { %v15935_v48 = vsel %vm7897_vm12, %v15931_v22, 0.0  ;;  %v17809_v22 = vld [vmem:[%s22850_s11 + $0x40] sm:$0xff] }
0x1967   : > { %15936 = vadd.xlane.f32.xlu0 %v15935_v48  ;;  %v15932_v56 = vsel %vm1119_vm2, %v15930_v9, 0.0  ;;  %v17810_v9 = vld [vmem:[%s22850_s11 + $0x48] sm:$0xff]  ;;  %v16539_v48 = vand.u32 4294901760, %v17809_v22 }
0x1968   : > { %15933 = vadd.xlane.f32.xlu1 %v15932_v56  ;;  %v16542_v56 = vand.u32 4294901760, %v17810_v9 }
0x1969   : > { %v16633_v15 = vsub.f32 %v17809_v22, %v16539_v48 }
0x196a   : > { %v22728_v57 = vpack.c.bf16 %v16542_v56, %v16539_v48  ;;  %v16640_v23 = vsub.f32 %v17810_v9, %v16542_v56  ;;  %v17808_v48 = vld [vmem:[%s22849_s10 + $0x1] ss:$0 sm:$0xff] }
0x196b   : > { %v16634_v17 = vand.u32 4294901760, %v16633_v15 }
0x196c   : > { %20949 = vmatprep.subr.bf16.mxu1 %v22728_v57  ;;  %v16641_v39 = vand.u32 4294901760, %v16640_v23 }
0x196d   : > { %20951 = vmatpush3.bf16.msra.mxu1 %v22728_v57  ;;  %v16635_v52 = vsub.f32 %v16633_v15, %v16634_v17 }
0x196e   : > { %20953 = vmatprep.subr.bf16.mxu1 %v22738_v29  ;;  %v16642_v58 = vsub.f32 %v16640_v23, %v16641_v39 }
0x196f   : > { %v16636_v47 = vand.u32 4294901760, %v16635_v52 }
0x1970   : > { %v16643_v1 = vand.u32 4294901760, %v16642_v58  ;;  %v17818_v58 = vld [vmem:[%s22851_s12 + $0x1] ss:$0 sm:$0xff] }
0x1971   : > { %20955 = vmatpush3.bf16.msra.mxu1 %v22738_v29 }
0x19f4   : > { %v15937_v6 = vpop.xlane.xlu0 %15936 }
0x19f5   : > { %v15939_v7 = vmul.f32 0.03125, %v15937_v6  ;;  %v15934_v2 = vpop.xlane.xlu1 %15933 }
0x19f6   : > { %v15938_v8 = vmul.f32 0.03125, %v15934_v2 }
0x19f7   : > { %v15941_v53 = vadd.f32 1e-05, %v15939_v7 }
0x19f8   : > { %v15940_v45 = vadd.f32 1e-05, %v15938_v8 }
0x19f9   : > { %21536 = vrsqrt.f32 %v15941_v53 }
0x19fa   : > { %21538 = vrsqrt.f32 %v15940_v45 }
0x1a03   : > { %v21537_v5 = vpop.eup %21536 }
0x1a04   : > { %v21539_v44 = vpop.eup %21538  ;;  %v15945_v49 = vmul.f32 %v21537_v5, %v15929_v21 }
0x1a05   : > { %v15944_v60 = vmul.f32 %v21539_v44, %v15928_v50  ;;  %v16682_v44 = vsub.f32 %v17816_v54, %v16560_v19 }
0x1a06   : > { %v15955_v41 = vmul.f32 %v17800_v46, %v15945_v49 }
0x1a07   : > { %v15954_v12 = vmul.f32 %v17800_v46, %v15944_v60  ;;  %v16675_v46 = vsub.f32 %v17815_v51, %v16557_v55 }
0x1a08   : > { %v22706_v38 = vadd.f32 %v17802_v35, %v15955_v41 }
0x1a09   : > { %v22708_v61 = vadd.f32 %v17802_v35, %v15954_v12  ;;  %v16676_v41 = vand.u32 4294901760, %v16675_v46  ;;  %v16683_v12 = vand.u32 4294901760, %v16682_v44 }
0x1a0a   : > { %v15983_v63 = vsel %vm1119_vm2, %v22706_v38, 0 }
0x1a0b   : > { %v15980_v33 = vsel %vm1119_vm2, %v22708_v61, 0  ;;  %v16064_v36 = vand.u32 4294901760, %v15983_v63  ;;  %v21024_v9 = vpack.c.bf16 %v16683_v12, %v16676_v41 }
0x1a0c   : > { %v16054_v62 = vand.u32 4294901760, %v15980_v33 }
0x1a0d   : > { %v16065_v18 = vsub.f32 %v15983_v63, %v16064_v36 }
0x1a0e   : > { %v16055_v11 = vsub.f32 %v15980_v33, %v16054_v62  ;;  %v16677_v33 = vsub.f32 %v16675_v46, %v16676_v41 }
0x1a0f   : > { %v16066_v14 = vand.u32 4294901760, %v16065_v18 }
0x1a10   : > { %v16056_v16 = vand.u32 4294901760, %v16055_v11 }
0x1a11   : > { %v16067_v32 = vsub.f32 %v16065_v18, %v16066_v14 }
0x1a12   : > { %v16057_v20 = vsub.f32 %v16055_v11, %v16056_v16 }
0x1a13   : > { %v16068_v50 = vand.u32 4294901760, %v16067_v32 }
0x1a14   : > { %v16058_v21 = vand.u32 4294901760, %v16057_v20  ;;  %v20992_v20 = vpack.c.bf16 %v16682_v44, %v16675_v46  ;;  %v17169_v46 = vld [vmem:[%s22854_s15 + $0x18] sm:$0xff] }
0x1a16   : > { %19990 = vmatprep.mubr.f32.mxu0 %v16058_v21  ;;  %v21012_v21 = vpack.c.bf16 %v16641_v39, %v16634_v17 }
0x1a17   : > { %19991 = vmatmul.mubr.f32.vlgmr.msra.gmra.mrb[22].mxu0 %v16068_v50 }
0x1a18   : > { %20911 = vmatpush3.bf16.msra.mxu0 %v20908_v37  ;;  %20001 = vmatprep.mubr.f32.mxu0 %v16054_v62  ;;  %v16647_v37 = vsub.f32 %v17811_v24, %v16545_v27 }
0x1a19   : > { %20913 = vmatprep.subr.bf16.mxu0 %v20912_v3 }
0x1a1a   : > { %v16648_v43 = vand.u32 4294901760, %v16647_v37 }
0x1a1c   : > { %20915 = vmatpush3.bf16.msra.mxu0 %v20912_v3  ;;  %v16655_v3 = vand.u32 4294901760, %v16654_v26 }
0x1a1d   : > { %20917 = vmatprep.subr.bf16.mxu0 %v20916_v28 }
0x1a1e   : > { %v16656_v6 = vsub.f32 %v16654_v26, %v16655_v3  ;;  %v21016_v50 = vpack.c.bf16 %v16655_v3, %v16648_v43 }
0x1a1f   : > { %20002 = vmatmul.mubr.f32.vlgmr.msra.gmra.mrb[22].mxu0 %v16064_v36 }
0x1a20   : > { %20919 = vmatpush3.bf16.msra.mxu0 %v20916_v28  ;;  %20012 = vmatprep.mubr.f32.mxu0 %v16055_v11  ;;  %v20964_v28 = vpack.c.bf16 %v16643_v1, %v16636_v47  ;;  %v16657_v53 = vand.u32 4294901760, %v16656_v6 }
0x1a21   : > { %20921 = vmatprep.subr.bf16.mxu0 %v20920_v0 }
0x1a24   : > { %20923 = vmatpush3.bf16.msra.mxu0 %v20920_v0  ;;  %v16649_v0 = vsub.f32 %v16647_v37, %v16648_v43 }
0x1a25   : > { %20925 = vmatprep.subr.bf16.mxu0 %v22692_v10 }
0x1a26   : > { %v16650_v7 = vand.u32 4294901760, %v16649_v0 }
0x1a27   : > { %20013 = vmatmul.mubr.f32.vlgmr.msra.gmra.mrb[22].mxu0 %v16065_v18 }
0x1a28   : > { %20927 = vmatpush3.bf16.msra.mxu0 %v22692_v10  ;;  %20023 = vmatprep.mubr.f32.mxu0 %v16056_v16  ;;  %v20968_v49 = vpack.c.bf16 %v16657_v53, %v16650_v7  ;;  %v20984_v16 = vpack.c.bf16 %v16654_v26, %v16647_v37  ;;  %v17168_v53 = vld [vmem:[%s22854_s15 + $0x10] sm:$0xff] }
0x1a29   : > { %20929 = vmatprep.subr.bf16.mxu0 %v22694_v4 }
0x1a2c   : > { %20931 = vmatpush3.bf16.msra.mxu0 %v22694_v4 }
0x1a2d   : > { %20933 = vmatprep.subr.bf16.mxu0 %v20932_v59 }
0x1a2f   : > { %20024 = vmatmul.mubr.f32.vlgmr.msra.gmra.mrb[22].mxu0 %v16066_v14  ;;  %v20980_v14 = vpack.c.bf16 %v16640_v23, %v16633_v15 }
0x1a30   : > { %20935 = vmatpush3.bf16.msra.mxu0 %v20932_v59  ;;  %20034 = vmatprep.mubr.f32.mxu0 %v16054_v62 }
0x1a31   : > { %20937 = vmatprep.subr.bf16.mxu0 %v20936_v42 }
0x1a34   : > { %20939 = vmatpush3.bf16.msra.mxu0 %v20936_v42 }
0x1a35   : > { %20941 = vmatprep.subr.bf16.mxu0 %v22692_v10 }
0x1a37   : > { %20035 = vmatmul.mubr.f32.vlgmr.msra.gmra.mrb[22].mxu0 %v16064_v36 }
0x1a38   : > { %20943 = vmatpush3.bf16.msra.mxu0 %v22692_v10  ;;  %20045 = vmatprep.mubr.f32.mxu0 %v16054_v62  ;;  %v16551_v10 = vand.u32 4294901760, %v17813_v30  ;;  %v16678_v62 = vand.u32 4294901760, %v16677_v33 }
0x1a39   : > { %20945 = vmatprep.subr.bf16.mxu0 %v22694_v4 }
0x1a3a   : > { %v16661_v59 = vsub.f32 %v17813_v30, %v16551_v10 }
0x1a3c   : > { %20947 = vmatpush3.bf16.msra.mxu0 %v22694_v4  ;;  %v16554_v4 = vand.u32 4294901760, %v17814_v31  ;;  %v16662_v2 = vand.u32 4294901760, %v16661_v59 }
0x1a3e   : > { %v22748_v40 = vpack.c.bf16 %v16554_v4, %v16551_v10  ;;  %v16668_v42 = vsub.f32 %v17814_v31, %v16554_v4  ;;  %v16663_v45 = vsub.f32 %v16661_v59, %v16662_v2 }
0x1a3f   : > { %20046 = vmatmul.mubr.f32.vlgmr.msra.gmra.mrb[22].mxu0 %v16064_v36  ;;  %v16684_v36 = vsub.f32 %v16682_v44, %v16683_v12  ;;  %v17190_v44 = vand.u32 4294901760, %v17168_v53 }
0x1a40   : > { %20957 = vmatprep.subr.bf16.mxu1 %v22748_v40  ;;  %v16669_v8 = vand.u32 4294901760, %v16668_v42  ;;  %v16664_v60 = vand.u32 4294901760, %v16663_v45  ;;  %v20988_v32 = vpack.c.bf16 %v16668_v42, %v16661_v59 }
0x1a41   : > { %20959 = vmatpush3.bf16.msra.mxu1 %v22748_v40  ;;  %v16685_v18 = vand.u32 4294901760, %v16684_v36 }
0x1a42   : > { %20961 = vmatprep.subr.bf16.mxu1 %v22758_v13  ;;  %v16670_v5 = vsub.f32 %v16668_v42, %v16669_v8  ;;  %v21020_v22 = vpack.c.bf16 %v16669_v8, %v16662_v2  ;;  %v17167_v8 = vld [vmem:[%s22854_s15 + $0x8] sm:$0xff] }
0x1a43   : > { %v20976_v11 = vpack.c.bf16 %v16685_v18, %v16678_v62  ;;  %v17288_v18 = vsub.f32 %v17168_v53, %v17190_v44 }
0x1a44   : > { %v16671_v35 = vand.u32 4294901760, %v16670_v5  ;;  %v17187_v5 = vand.u32 4294901760, %v17167_v8 }
0x1a45   : > { %20963 = vmatpush3.bf16.msra.mxu1 %v22758_v13 }
0x1a46   : > { %20965 = vmatprep.subr.bf16.mxu1 %v20964_v28  ;;  %v20972_v63 = vpack.c.bf16 %v16671_v35, %v16664_v60  ;;  %v17281_v12 = vsub.f32 %v17167_v8, %v17187_v5 }
0x1a48   : > { %v17282_v33 = vand.u32 4294901760, %v17281_v12 }
0x1a4a   : > { %v17283_v62 = vsub.f32 %v17281_v12, %v17282_v33 }
0x1b12   : > { %v20047_v56 = vpop.f32.mrb[22].mxu0 }
0x1b13   : > { %v21106_v24 = vadd.f32 %v20047_v56, %v17808_v48  ;;  %v16503_v25 = vpop.f32.mrb[23].mxu0 }
0x1b14   : > { %v21107_v27 = vadd.f32 %v17808_v48, %v16503_v25 }
0x1b15   : > { %v16514_v34 = vmax.f32 %v21106_v24, 0.0 }
0x1b16   : > { %v16513_v30 = vmax.f32 %v21107_v27, 0.0 }
0x1b17   : > { %v16536_v31 = vsel %vm8502_vm13, %v16514_v34, 0 }
0x1b18   : > { %v16621_v10 = vand.u32 4294901760, %v16536_v31  ;;  %v16533_v4 = vsel %vm8502_vm13, %v16513_v30, 0 }
0x1b19   : > { %v16611_v15 = vand.u32 4294901760, %v16533_v4 }
0x1b1a   : > { %v16622_v23 = vsub.f32 %v16536_v31, %v16621_v10 }
0x1b1b   : > { %v16612_v51 = vsub.f32 %v16533_v4, %v16611_v15 }
0x1b1c   : > { %v16623_v54 = vand.u32 4294901760, %v16622_v23 }
0x1b1d   : > { %v16613_v55 = vand.u32 4294901760, %v16612_v51 }
0x1b1e   : > { %v16624_v19 = vsub.f32 %v16622_v23, %v16623_v54 }
0x1b1f   : > { %v16614_v17 = vsub.f32 %v16612_v51, %v16613_v55 }
0x1b20   : > { %v16625_v52 = vand.u32 4294901760, %v16624_v19 }
0x1b21   : > { %v16615_v39 = vand.u32 4294901760, %v16614_v17 }
0x1b23   : > { %20064 = vmatprep.mubr.f32.mxu1 %v16615_v39  ;;  %v17822_v39 = vld [vmem:[%s22853_s14 + $0x1] ss:$0 sm:$0xff] }
0x1b24   : > { %20065 = vmatmul.mubr.f32.vlgmr.msra.gmra.mrb[24].mxu1 %v16625_v52 }
0x1b25   : > { %20967 = vmatpush3.bf16.msra.mxu1 %v20964_v28  ;;  %20083 = vmatprep.mubr.f32.mxu1 %v16611_v15 }
0x1b26   : > { %20969 = vmatprep.subr.bf16.mxu1 %v20968_v49 }
0x1b29   : > { %20971 = vmatpush3.bf16.msra.mxu1 %v20968_v49  ;;  %v17193_v49 = vand.u32 4294901760, %v17169_v46 }
0x1b2a   : > { %20973 = vmatprep.subr.bf16.mxu1 %v20972_v63 }
0x1b2b   : > { %v22806_v35 = vpack.c.bf16 %v17193_v49, %v17190_v44 }
0x1b2d   : > { %20975 = vmatpush3.bf16.msra.mxu1 %v20972_v63 }
0x1b2e   : > { %20977 = vmatprep.subr.bf16.mxu1 %v20976_v11 }
0x1b31   : > { %20979 = vmatpush3.bf16.msra.mxu1 %v20976_v11  ;;  %v17295_v11 = vsub.f32 %v17169_v46, %v17193_v49 }
0x1b32   : > { %20981 = vmatprep.subr.bf16.mxu1 %v20980_v14 }
0x1b33   : > { %v21064_v25 = vpack.c.bf16 %v17295_v11, %v17288_v18 }
0x1b34   : > { %20084 = vmatmul.mubr.f32.vlgmr.msra.gmra.mrb[24].mxu1 %v16621_v10 }
0x1b35   : > { %20983 = vmatpush3.bf16.msra.mxu1 %v20980_v14  ;;  %20102 = vmatprep.mubr.f32.mxu1 %v16612_v51 }
0x1b36   : > { %20985 = vmatprep.subr.bf16.mxu1 %v20984_v16 }
0x1b39   : > { %20987 = vmatpush3.bf16.msra.mxu1 %v20984_v16  ;;  %v17284_v16 = vand.u32 4294901760, %v17283_v62 }
0x1b3a   : > { %20989 = vmatprep.subr.bf16.mxu1 %v20988_v32 }
0x1b3d   : > { %20991 = vmatpush3.bf16.msra.mxu1 %v20988_v32  ;;  %v17289_v32 = vand.u32 4294901760, %v17288_v18 }
0x1b3e   : > { %20993 = vmatprep.subr.bf16.mxu1 %v20992_v20 }
0x1b41   : > { %20995 = vmatpush3.bf16.msra.mxu1 %v20992_v20  ;;  %v17296_v20 = vand.u32 4294901760, %v17295_v11 }
0x1b42   : > { %20997 = vmatprep.subr.bf16.mxu1 %v22728_v57 }
0x1b43   : > { %v21080_v34 = vpack.c.bf16 %v17296_v20, %v17289_v32 }
0x1b44   : > { %20103 = vmatmul.mubr.f32.vlgmr.msra.gmra.mrb[24].mxu1 %v16622_v23 }
0x1b45   : > { %20999 = vmatpush3.bf16.msra.mxu1 %v22728_v57  ;;  %20121 = vmatprep.mubr.f32.mxu1 %v16613_v55 }
0x1b46   : > { %21001 = vmatprep.subr.bf16.mxu1 %v22738_v29 }
0x1b49   : > { %21003 = vmatpush3.bf16.msra.mxu1 %v22738_v29 }
0x1b4a   : > { %21005 = vmatprep.subr.bf16.mxu1 %v22748_v40 }
0x1b4d   : > { %21007 = vmatpush3.bf16.msra.mxu1 %v22748_v40 }
0x1b4e   : > { %21009 = vmatprep.subr.bf16.mxu1 %v22758_v13 }
0x1b51   : > { %21011 = vmatpush3.bf16.msra.mxu1 %v22758_v13 }
0x1b52   : > { %21013 = vmatprep.subr.bf16.mxu1 %v21012_v21 }
0x1b54   : > { %20122 = vmatmul.mubr.f32.vlgmr.msra.gmra.mrb[24].mxu1 %v16623_v54  ;;  %v17820_v54 = vld [vmem:[%s22852_s13 + $0x1] ss:$0 sm:$0xff] }
0x1b55   : > { %21015 = vmatpush3.bf16.msra.mxu1 %v21012_v21  ;;  %20140 = vmatprep.mubr.f32.mxu1 %v16611_v15 }
0x1b56   : > { %21017 = vmatprep.subr.bf16.mxu1 %v21016_v50 }
0x1b59   : > { %21019 = vmatpush3.bf16.msra.mxu1 %v21016_v50  ;;  %v17290_v50 = vsub.f32 %v17288_v18, %v17289_v32 }
0x1b5a   : > { %21021 = vmatprep.subr.bf16.mxu1 %v21020_v22 }
0x1b5d   : > { %21023 = vmatpush3.bf16.msra.mxu1 %v21020_v22  ;;  %v17297_v22 = vsub.f32 %v17295_v11, %v17296_v20 }
0x1b5e   : > { %21025 = vmatprep.subr.bf16.mxu1 %v21024_v9 }
0x1b5f   : > { %v17298_v48 = vand.u32 4294901760, %v17297_v22 }
0x1b61   : > { %21027 = vmatpush3.bf16.msra.mxu1 %v21024_v9  ;;  %v17291_v9 = vand.u32 4294901760, %v17290_v50 }
0x1b62   : > { %21029 = vmatprep.subr.bf16.mxu1 %v22728_v57 }
0x1b63   : > { %v21056_v56 = vpack.c.bf16 %v17298_v48, %v17291_v9 }
0x1b64   : > { %20141 = vmatmul.mubr.f32.vlgmr.msra.gmra.mrb[24].mxu1 %v16621_v10 }
0x1b65   : > { %21031 = vmatpush3.bf16.msra.mxu1 %v22728_v57  ;;  %20159 = vmatprep.mubr.f32.mxu1 %v16611_v15 }
0x1b66   : > { %21033 = vmatprep.subr.bf16.mxu1 %v22738_v29 }
0x1b69   : > { %21035 = vmatpush3.bf16.msra.mxu1 %v22738_v29 }
0x1b6a   : > { %21037 = vmatprep.subr.bf16.mxu1 %v22748_v40 }
0x1b6d   : > { %21039 = vmatpush3.bf16.msra.mxu1 %v22748_v40 }
0x1b6e   : > { %21041 = vmatprep.subr.bf16.mxu1 %v22758_v13 }
0x1b71   : > { %21043 = vmatpush3.bf16.msra.mxu1 %v22758_v13 }
0x1b74   : > { %20160 = vmatmul.mubr.f32.vlgmr.msra.gmra.mrb[24].mxu1 %v16621_v10 }
0x1c47   : > { %v20161_v37 = vpop.f32.mrb[24].mxu1 }
0x1c48   : > { %v21108_v57 = vadd.f32 %v20161_v37, %v17818_v58  ;;  %v17108_v26 = vpop.f32.mrb[25].mxu1 }
0x1c49   : > { %v21109_v47 = vadd.f32 %v17818_v58, %v17108_v26 }
0x1c4a   : > { %v17119_v1 = vadd.f32 %v21108_v57, %v22706_v38 }
0x1c4b   : > { %v17118_v29 = vadd.f32 %v21109_v47, %v22708_v61  ;;  %v17166_v61 = vld [vmem:[%s22854_s15] sm:$0xff] }
0x1c4c   : > { %v17123_v43 = vsel %vm7897_vm12, %v17119_v1, 0.0  ;;  %v17184_v45 = vand.u32 4294901760, %v17166_v61 }
0x1c4d   : > { %17124 = vadd.xlane.f32.xlu0 %v17123_v43  ;;  %v17120_v40 = vsel %vm1119_vm2, %v17118_v29, 0.0 }
0x1c4e   : > { %17121 = vadd.xlane.f32.xlu1 %v17120_v40  ;;  %v22804_v60 = vpack.c.bf16 %v17187_v5, %v17184_v45  ;;  %v17274_v41 = vsub.f32 %v17166_v61, %v17184_v45 }
0x1c50   : > { %21045 = vmatprep.subr.bf16.mxu0 %v22804_v60  ;;  %v17275_v63 = vand.u32 4294901760, %v17274_v41  ;;  %v21060_v24 = vpack.c.bf16 %v17281_v12, %v17274_v41 }
0x1c51   : > { %21047 = vmatpush3.bf16.msra.mxu0 %v22804_v60 }
0x1c52   : > { %21049 = vmatprep.subr.bf16.mxu0 %v22806_v35  ;;  %v17276_v36 = vsub.f32 %v17274_v41, %v17275_v63  ;;  %v21076_v27 = vpack.c.bf16 %v17282_v33, %v17275_v63 }
0x1c54   : > { %v17277_v14 = vand.u32 4294901760, %v17276_v36 }
0x1c55   : > { %21051 = vmatpush3.bf16.msra.mxu0 %v22806_v35 }
0x1c56   : > { %v21052_v21 = vpack.c.bf16 %v17284_v16, %v17277_v14 }
0x1c58   : > { %21053 = vmatprep.subr.bf16.mxu0 %v21052_v21 }
0x1cda   : > { %v17125_v13 = vpop.xlane.xlu0 %17124 }
0x1cdb   : > { %v17127_v3 = vmul.f32 0.03125, %v17125_v13  ;;  %v17122_v28 = vpop.xlane.xlu1 %17121 }
0x1cdc   : > { %v17126_v0 = vmul.f32 0.03125, %v17122_v28 }
0x1cdd   : > { %v17129_v59 = vsub.f32 %v17119_v1, %v17127_v3 }
0x1cde   : > { %v17128_v42 = vsub.f32 %v17118_v29, %v17126_v0 }
0x1cdf   : > { %v17131_v6 = vmul.f32 %v17129_v59, %v17129_v59 }
0x1ce0   : > { %v17130_v7 = vmul.f32 %v17128_v42, %v17128_v42 }
0x1ce1   : > { %v17135_v2 = vsel %vm7897_vm12, %v17131_v6, 0.0  ;;  %v17823_v6 = vld [vmem:[%s22855_s16] ss:$0 sm:$0xff] }
0x1ce2   : > { %17136 = vadd.xlane.f32.xlu0 %v17135_v2  ;;  %v17132_v38 = vsel %vm1119_vm2, %v17130_v7, 0.0 }
0x1ce3   : > { %17133 = vadd.xlane.f32.xlu1 %v17132_v38 }
0x1d6f   : > { %v17137_v30 = vpop.xlane.xlu0 %17136 }
0x1d70   : > { %v17139_v31 = vmul.f32 0.03125, %v17137_v30  ;;  %v17134_v10 = vpop.xlane.xlu1 %17133 }
0x1d71   : > { %v17138_v4 = vmul.f32 0.03125, %v17134_v10 }
0x1d72   : > { %v17141_v15 = vadd.f32 1e-05, %v17139_v31 }
0x1d73   : > { %v17140_v23 = vadd.f32 1e-05, %v17138_v4 }
0x1d74   : > { %21540 = vrsqrt.f32 %v17141_v15 }
0x1d75   : > { %21542 = vrsqrt.f32 %v17140_v23 }
0x1d7e   : > { %v21541_v51 = vpop.eup %21540 }
0x1d7f   : > { %v21543_v55 = vpop.eup %21542  ;;  %v17145_v19 = vmul.f32 %v21541_v51, %v17129_v59 }
0x1d80   : > { %v17144_v17 = vmul.f32 %v21543_v55, %v17128_v42 }
0x1d81   : > { %v17155_v52 = vmul.f32 %v17820_v54, %v17145_v19 }
0x1d82   : > { %v17154_v58 = vmul.f32 %v17820_v54, %v17144_v17 }
0x1d83   : > { %v17165_v37 = vadd.f32 %v17822_v39, %v17155_v52 }
0x1d84   : > { %v17164_v57 = vadd.f32 %v17822_v39, %v17154_v58 }
0x1d85   : > { %v17181_v26 = vsel %vm1119_vm2, %v17165_v37, 0 }
0x1d86   : > { %v17178_v47 = vsel %vm1119_vm2, %v17164_v57, 0  ;;  %v17262_v1 = vand.u32 4294901760, %v17181_v26 }
0x1d87   : > { %v17252_v29 = vand.u32 4294901760, %v17178_v47 }
0x1d88   : > { %v17263_v43 = vsub.f32 %v17181_v26, %v17262_v1 }
0x1d89   : > { %v17253_v40 = vsub.f32 %v17178_v47, %v17252_v29 }
0x1d8a   : > { %v17264_v13 = vand.u32 4294901760, %v17263_v43 }
0x1d8b   : > { %v17254_v3 = vand.u32 4294901760, %v17253_v40 }
0x1d8c   : > { %v17265_v28 = vsub.f32 %v17263_v43, %v17264_v13 }
0x1d8d   : > { %v17255_v0 = vsub.f32 %v17253_v40, %v17254_v3 }
0x1d8e   : > { %v17266_v42 = vand.u32 4294901760, %v17265_v28 }
0x1d8f   : > { %v17256_v59 = vand.u32 4294901760, %v17255_v0 }
0x1d91   : > { %20170 = vmatprep.mubr.f32.mxu0 %v17256_v59 }
0x1d92   : > { %20171 = vmatmul.mubr.f32.vlgmr.msra.gmra.mrb[24].mxu0 %v17266_v42 }
0x1d93   : > { %21055 = vmatpush3.bf16.msra.mxu0 %v21052_v21  ;;  %20181 = vmatprep.mubr.f32.mxu0 %v17252_v29 }
0x1d94   : > { %21057 = vmatprep.subr.bf16.mxu0 %v21056_v56 }
0x1d97   : > { %21059 = vmatpush3.bf16.msra.mxu0 %v21056_v56 }
0x1d98   : > { %21061 = vmatprep.subr.bf16.mxu0 %v21060_v24 }
0x1d9a   : > { %20182 = vmatmul.mubr.f32.vlgmr.msra.gmra.mrb[24].mxu0 %v17262_v1 }
0x1d9b   : > { %21063 = vmatpush3.bf16.msra.mxu0 %v21060_v24  ;;  %20192 = vmatprep.mubr.f32.mxu0 %v17253_v40 }
0x1d9c   : > { %21065 = vmatprep.subr.bf16.mxu0 %v21064_v25 }
0x1d9f   : > { %21067 = vmatpush3.bf16.msra.mxu0 %v21064_v25 }
0x1da0   : > { %21069 = vmatprep.subr.bf16.mxu0 %v22804_v60 }
0x1da2   : > { %20193 = vmatmul.mubr.f32.vlgmr.msra.gmra.mrb[24].mxu0 %v17263_v43 }
0x1da3   : > { %21071 = vmatpush3.bf16.msra.mxu0 %v22804_v60  ;;  %20203 = vmatprep.mubr.f32.mxu0 %v17254_v3 }
0x1da4   : > { %21073 = vmatprep.subr.bf16.mxu0 %v22806_v35 }
0x1da7   : > { %21075 = vmatpush3.bf16.msra.mxu0 %v22806_v35 }
0x1da8   : > { %21077 = vmatprep.subr.bf16.mxu0 %v21076_v27 }
0x1daa   : > { %20204 = vmatmul.mubr.f32.vlgmr.msra.gmra.mrb[24].mxu0 %v17264_v13 }
0x1dab   : > { %21079 = vmatpush3.bf16.msra.mxu0 %v21076_v27  ;;  %20214 = vmatprep.mubr.f32.mxu0 %v17252_v29 }
0x1dac   : > { %21081 = vmatprep.subr.bf16.mxu0 %v21080_v34 }
0x1daf   : > { %21083 = vmatpush3.bf16.msra.mxu0 %v21080_v34 }
0x1db0   : > { %21085 = vmatprep.subr.bf16.mxu0 %v22804_v60 }
0x1db2   : > { %20215 = vmatmul.mubr.f32.vlgmr.msra.gmra.mrb[24].mxu0 %v17262_v1 }
0x1db3   : > { %21087 = vmatpush3.bf16.msra.mxu0 %v22804_v60  ;;  %20225 = vmatprep.mubr.f32.mxu0 %v17252_v29 }
0x1db4   : > { %21089 = vmatprep.subr.bf16.mxu0 %v22806_v35 }
0x1db7   : > { %21091 = vmatpush3.bf16.msra.mxu0 %v22806_v35 }
0x1dba   : > { %20226 = vmatmul.mubr.f32.vlgmr.msra.gmra.mrb[24].mxu0 %v17262_v1 }
0x1e8d   : > { %v20227_v7 = vpop.f32.mrb[24].mxu0 }
0x1e8e   : > { %v21110_v2 = vadd.f32 %v20227_v7, %v17823_v6  ;;  %v17701_v38 = vpop.f32.mrb[25].mxu0 }
0x1e8f   : > { %v21111_v61 = vadd.f32 %v17823_v6, %v17701_v38 }
0x1e90   : > { %17714 = vst.msk [vmem:[%s548_s21 + $0x8] sm:$0x1] %vm17713_vm14, %v21110_v2 }
0x1e91   : > { %17712 = vst.msk [vmem:[%s548_s21] sm:$0xff] %vm17711_vm15, %v21111_v61 }
0x1e92 PF: > { %s27_s24 = sadd.s32 1, %s21550_s24  }
0x1e93   : > { %p24_p4 = scmp.ge.s32.totalorder %s27_s24, 4  }
0x1e95   :  { %26 = sbr.rel (!%p24_p4) target bundleno = 3 (0x3), region = 130 }

</bundles_post_ra>
